<compile_context>
chip_gen: v7x
topology: tpu7x:2x2x1
jax: 0.10.0
libtpu: 0.0.40
codegen_flags: <defaults>
</compile_context>

<pallas_src>
import functools

import jax
import jax.numpy as jnp
from jax import lax
from jax.experimental import pallas as pl
from jax.experimental.pallas import tpu as pltpu

_HIGHEST = lax.Precision.HIGHEST


def _mha_kernel(qin_ref, kv_ref, mask_ref, wq_ref, wkv_ref, wr_ref, br_ref,
                gamma_ref, beta_ref, outT_ref, scoresT_ref, *,
                num_heads, head_dim, num_neighbors):
    tb = qin_ref.shape[0]            # batch rows in this tile
    n = num_neighbors
    d = head_dim
    hd = num_heads * d

    # Inputs arrive in their native dtype; cast at the point of use.
    q_in = qin_ref[...].astype(jnp.float32)          # (tb, Dq)
    kv = kv_ref[...].astype(jnp.float32)             # (tb*n, Dk)

    # ---- fused projections (MXU) -------------------------------------------------
    q = jnp.dot(q_in, wq_ref[...], preferred_element_type=jnp.float32,
                precision=_HIGHEST)                                       # (tb, hd)
    kvp = jnp.dot(kv, wkv_ref[...], preferred_element_type=jnp.float32,
                  precision=_HIGHEST)                                     # (tb*n, 2*hd)
    k3 = kvp[:, :hd].reshape(tb, n, hd)                                   # (tb, n, hd)
    v3 = kvp[:, hd:].reshape(tb, n, hd)                                   # (tb, n, hd)

    # ---- attention core (no per-head lane slicing) --------------------------------
    prod = q.reshape(tb, 1, hd) * k3      # single QK elementwise product for all heads
    scale = jnp.float32(d ** -0.5)

    mask = mask_ref[...].astype(jnp.float32)                              # (tb, n)
    bias = jnp.where(mask == 0.0, jnp.float32(-1e10), jnp.float32(0.0))   # computed once

    lane = lax.broadcasted_iota(jnp.int32, (1, 1, hd), 2)

    p_heads = []
    pfull = jnp.zeros((tb, n, hd), jnp.float32)
    for h in range(num_heads):            # static unroll; num_heads is small
        hm = jnp.where((lane >= h * d) & (lane < (h + 1) * d),
                       jnp.float32(1.0), jnp.float32(0.0))                # (1, 1, hd)
        s = jnp.sum(prod * hm, axis=-1) * scale + bias                    # (tb, n)
        m = jnp.max(s, axis=-1, keepdims=True)
        e = jnp.exp(s - m)
        p = e * pl.reciprocal(jnp.sum(e, axis=-1, keepdims=True), approx=True)
        p_heads.append(p)
        pfull = pfull + p[:, :, None] * hm          # spread probs onto this head's lanes

    attn = jnp.sum(pfull * v3, axis=1)                                    # (tb, hd)
    p_cat = jnp.concatenate(p_heads, axis=-1)                             # (tb, H*n)

    # ---- epilogue: residual_fc + bias + residual + LayerNorm -----------------------
    y = jnp.dot(attn, wr_ref[...], preferred_element_type=jnp.float32,
                precision=_HIGHEST)                                       # (tb, Dq)
    y = y + br_ref[...] + q_in
    mean = jnp.mean(y, axis=-1, keepdims=True)
    var = jnp.mean(jnp.square(y - mean), axis=-1, keepdims=True)
    y = (y - mean) * lax.rsqrt(var + jnp.float32(1e-5))
    y = y * gamma_ref[...] + beta_ref[...]                                # (tb, Dq)

    # ---- lane-dense (transposed) stores --------------------------------------------
    # Transpose the two narrow (tb, 32) results via the MXU (identity @ x^T, NT
    # dot_general) so each store is (32, tile_b): batch on the lane axis, unmasked vst.
    dq = y.shape[-1]
    eye_q = jnp.where(lax.broadcasted_iota(jnp.int32, (dq, dq), 0) ==
                      lax.broadcasted_iota(jnp.int32, (dq, dq), 1),
                      jnp.float32(1.0), jnp.float32(0.0))
    outT_ref[...] = lax.dot_general(
        eye_q, y, (((1,), (1,)), ((), ())),
        preferred_element_type=jnp.float32,
        precision=_HIGHEST).astype(outT_ref.dtype)                        # (Dq, tb)

    hn = num_heads * n
    eye_s = jnp.where(lax.broadcasted_iota(jnp.int32, (hn, hn), 0) ==
                      lax.broadcasted_iota(jnp.int32, (hn, hn), 1),
                      jnp.float32(1.0), jnp.float32(0.0))
    scoresT_ref[...] = lax.dot_general(
        eye_s, p_cat, (((1,), (1,)), ((), ())),
        preferred_element_type=jnp.float32,
        precision=_HIGHEST).astype(scoresT_ref.dtype)                     # (H*n, tb)


def multi_head_attention(node_features, node_time_features, neighbor_node_features,
                         neighbor_node_time_features, neighbor_node_edge_features,
                         neighbor_masks, params, *, num_heads=2):
    B, node_dim = node_features.shape
    _, N, _ = neighbor_node_features.shape
    time_dim = node_time_features.shape[-1]
    edge_dim = neighbor_node_edge_features.shape[-1]
    query_dim = node_dim + time_dim
    key_dim = node_dim + edge_dim + time_dim
    assert query_dim % num_heads == 0
    head_dim = query_dim // num_heads
    hd = num_heads * head_dim

    # Wrapper-side concat/reshape is pure XLA layout plumbing; no dtype upcasts here.
    q_in = jnp.concatenate([node_features, node_time_features[:, 0, :]], axis=-1)    # (B, Dq)
    kv_2d = jnp.concatenate(
        [neighbor_node_features, neighbor_node_edge_features,
         neighbor_node_time_features], axis=-1).reshape(B * N, key_dim)              # (B*N, Dk)
    mask = jnp.asarray(neighbor_masks, dtype=jnp.float32)                            # (B, N)

    wq = params["wq"]
    wkv = jnp.concatenate([params["wk"], params["wv"]], axis=-1)                     # (Dk, 2*hd)
    wr = params["wr"]
    br = params["br"].reshape(1, query_dim)
    gamma = params["ln_gamma"].reshape(1, query_dim)
    beta = params["ln_beta"].reshape(1, query_dim)

    # Batch tiling: >=2 grid steps for large B (v7x megacore), 128-lane-aligned tiles,
    # capped at 512 so the tile working set fits the 32 MiB VMEM budget on all gens.
    if B <= 256:
        tile_b = B
    else:
        tile_b = min(512, 128 * ((B + 255) // 256))
    grid = (pl.cdiv(B, tile_b),)

    kernel = functools.partial(_mha_kernel, num_heads=num_heads, head_dim=head_dim,
                               num_neighbors=N)

    out_t, scores_t = pl.pallas_call(
        kernel,
        out_shape=(jax.ShapeDtypeStruct((query_dim, B), jnp.float32),
                   jax.ShapeDtypeStruct((num_heads * N, B), jnp.float32)),
        grid=grid,
        in_specs=[
            pl.BlockSpec((tile_b, query_dim), lambda i: (i, 0)),       # q_in rows
            pl.BlockSpec((tile_b * N, key_dim), lambda i: (i, 0)),     # kv rows (flattened)
            pl.BlockSpec((tile_b, N), lambda i: (i, 0)),               # neighbor mask
            pl.BlockSpec((query_dim, hd), lambda i: (0, 0)),           # Wq       (resident)
            pl.BlockSpec((key_dim, 2 * hd), lambda i: (0, 0)),         # Wk|Wv    (resident)
            pl.BlockSpec((hd, query_dim), lambda i: (0, 0)),           # W_resid  (resident)
            pl.BlockSpec((1, query_dim), lambda i: (0, 0)),            # b_resid
            pl.BlockSpec((1, query_dim), lambda i: (0, 0)),            # LN gamma
            pl.BlockSpec((1, query_dim), lambda i: (0, 0)),            # LN beta
        ],
        out_specs=(pl.BlockSpec((query_dim, tile_b), lambda i: (0, i)),         # out^T
                   pl.BlockSpec((num_heads * N, tile_b), lambda i: (0, i))),    # scores^T
        compiler_params=pltpu.CompilerParams(
            dimension_semantics=("parallel",),
            vmem_limit_bytes=32 * 1024 * 1024),
    )(q_in, kv_2d, mask, wq, wkv, wr, br, gamma, beta)

    out = out_t.T                                       # (B, Dq)
    scores = scores_t.T.reshape(B, num_heads, N)        # (B, H, N)
    return out, scores


def reference(node_features, node_time_features, neighbor_node_features,
              neighbor_node_time_features, neighbor_node_edge_features,
              neighbor_masks, params, *, num_heads=2):
    B, node_dim = node_features.shape
    _, N, _ = neighbor_node_features.shape
    Dq = node_dim + node_time_features.shape[-1]
    D = Dq // num_heads
    q_in = jnp.concatenate([node_features, node_time_features[:, 0, :]], axis=-1)
    kv = jnp.concatenate([neighbor_node_features, neighbor_node_edge_features,
                          neighbor_node_time_features], axis=-1)
    q = jnp.dot(q_in, params["wq"], precision="highest").reshape(B, num_heads, D)
    k = jnp.einsum("bnk,kd->bnd", kv, params["wk"],
                   precision="highest").reshape(B, N, num_heads, D)
    v = jnp.einsum("bnk,kd->bnd", kv, params["wv"],
                   precision="highest").reshape(B, N, num_heads, D)
    s = jnp.einsum("bhd,bnhd->bhn", q, k, precision="highest") * (D ** -0.5)
    s = jnp.where(neighbor_masks[:, None, :] == 0.0, -1e10, s)
    p = jax.nn.softmax(s, axis=-1)                                       # (B, H, N)
    o = jnp.einsum("bhn,bnhd->bhd", p, v, precision="highest").reshape(B, num_heads * D)
    y = jnp.dot(o, params["wr"], precision="highest") + params["br"] + q_in
    mean = y.mean(-1, keepdims=True)
    var = jnp.mean(jnp.square(y - mean), -1, keepdims=True)
    y = (y - mean) / jnp.sqrt(var + 1e-5) * params["ln_gamma"] + params["ln_beta"]
    return y, p


if __name__ == "__main__":
    B, N = 8, 16
    node_feat_dim, edge_feat_dim, time_feat_dim = 24, 16, 8
    num_heads = 2
    query_dim = node_feat_dim + time_feat_dim                # 32
    key_dim = node_feat_dim + edge_feat_dim + time_feat_dim  # 48
    head_dim = query_dim // num_heads                        # 16
    hd = num_heads * head_dim                                # 32

    ks = jax.random.split(jax.random.PRNGKey(0), 13)

    node_features = jax.random.normal(ks[0], (B, node_feat_dim), jnp.float32)
    node_time_features = jax.random.normal(ks[1], (B, 1, time_feat_dim), jnp.float32)
    neighbor_node_features = jax.random.normal(ks[2], (B, N, node_feat_dim), jnp.float32)
    neighbor_node_time_features = jax.random.normal(ks[3], (B, N, time_feat_dim), jnp.float32)
    neighbor_node_edge_features = jax.random.normal(ks[4], (B, N, edge_feat_dim), jnp.float32)
    neighbor_masks = (jax.random.uniform(ks[5], (B, N)) > 0.3).astype(jnp.float32)
    neighbor_masks = neighbor_masks.at[:, 0].set(1.0)   # ensure >=1 valid neighbor per row

    params = {
        "wq": jax.random.normal(ks[6], (query_dim, hd), jnp.float32) / query_dim ** 0.5,
        "wk": jax.random.normal(ks[7], (key_dim, hd), jnp.float32) / key_dim ** 0.5,
        "wv": jax.random.normal(ks[8], (key_dim, hd), jnp.float32) / key_dim ** 0.5,
        "wr": jax.random.normal(ks[9], (hd, query_dim), jnp.float32) / hd ** 0.5,
        "br": 0.1 * jax.random.normal(ks[10], (query_dim,), jnp.float32),
        "ln_gamma": 1.0 + 0.1 * jax.random.normal(ks[11], (query_dim,), jnp.float32),
        "ln_beta": 0.1 * jax.random.normal(ks[12], (query_dim,), jnp.float32),
    }

    out, scores = multi_head_attention(
        node_features, node_time_features, neighbor_node_features,
        neighbor_node_time_features, neighbor_node_edge_features,
        neighbor_masks, params, num_heads=num_heads)
    jax.block_until_ready((out, scores))

    ref_out, ref_scores = reference(
        node_features, node_time_features, neighbor_node_features,
        neighbor_node_time_features, neighbor_node_edge_features,
        neighbor_masks, params, num_heads=num_heads)

    assert out.shape == (B, query_dim)
    assert scores.shape == (B, num_heads, N)
    assert jnp.allclose(out, ref_out, atol=2e-3, rtol=2e-3), "output mismatch vs reference"
    assert jnp.allclose(scores, ref_scores, atol=2e-3, rtol=2e-3), "scores mismatch vs reference"

    print("KERNEL_OK")
</pallas_src>

<mosaic_0001>
module attributes {stable_mosaic.version = 11 : i64} {
  func.func @_mha_kernel(%arg0: i32, %arg1: memref<8x32xf32, #tpu.memory_space<vmem>>, %arg2: memref<128x48xf32, #tpu.memory_space<vmem>>, %arg3: memref<8x16xf32, #tpu.memory_space<vmem>>, %arg4: memref<32x32xf32, #tpu.memory_space<vmem>>, %arg5: memref<48x64xf32, #tpu.memory_space<vmem>>, %arg6: memref<32x32xf32, #tpu.memory_space<vmem>>, %arg7: memref<1x32xf32, #tpu.memory_space<vmem>>, %arg8: memref<1x32xf32, #tpu.memory_space<vmem>>, %arg9: memref<1x32xf32, #tpu.memory_space<vmem>>, %arg10: memref<32x8xf32, #tpu.memory_space<vmem>>, %arg11: memref<32x8xf32, #tpu.memory_space<vmem>>) attributes {dimension_semantics = [#tpu.dimension_semantics<parallel>], iteration_bounds = array<i64: 1>, scalar_prefetch = 0 : i64, scratch_operands = 0 : i64, tpu.core_type = #tpu.core_type<tc>, window_params = [{transform_indices = @transform_0, window_bounds = array<i64: 8, 32>}, {transform_indices = @transform_1, window_bounds = array<i64: 128, 48>}, {transform_indices = @transform_2, window_bounds = array<i64: 8, 16>}, {pipeline_mode = #tpu.pipeline_mode<synchronous>, transform_indices = @transform_3, window_bounds = array<i64: 32, 32>}, {pipeline_mode = #tpu.pipeline_mode<synchronous>, transform_indices = @transform_4, window_bounds = array<i64: 48, 64>}, {pipeline_mode = #tpu.pipeline_mode<synchronous>, transform_indices = @transform_5, window_bounds = array<i64: 32, 32>}, {pipeline_mode = #tpu.pipeline_mode<synchronous>, transform_indices = @transform_6, window_bounds = array<i64: 1, 32>}, {pipeline_mode = #tpu.pipeline_mode<synchronous>, transform_indices = @transform_7, window_bounds = array<i64: 1, 32>}, {pipeline_mode = #tpu.pipeline_mode<synchronous>, transform_indices = @transform_8, window_bounds = array<i64: 1, 32>}, {transform_indices = @transform_9, window_bounds = array<i64: 32, 8>}, {transform_indices = @transform_10, window_bounds = array<i64: 32, 8>}]} {
    %c0 = arith.constant 0 : index
    %c0_0 = arith.constant 0 : index
    %0 = vector.load %arg1[%c0, %c0_0] : memref<8x32xf32, #tpu.memory_space<vmem>>, vector<8x32xf32>
    %c0_1 = arith.constant 0 : index
    %c0_2 = arith.constant 0 : index
    %1 = vector.load %arg2[%c0_1, %c0_2] : memref<128x48xf32, #tpu.memory_space<vmem>>, vector<128x48xf32>
    %c0_3 = arith.constant 0 : index
    %c0_4 = arith.constant 0 : index
    %2 = vector.load %arg4[%c0_3, %c0_4] : memref<32x32xf32, #tpu.memory_space<vmem>>, vector<32x32xf32>
    %cst = arith.constant dense<0.000000e+00> : vector<8x32xf32>
    %3 = tpu.matmul %0, %2, %cst {dimension_numbers = #tpu.dot_dimension_numbers<[1], [0], [0], [1], [0, 0, 1, 1], [], []>, precision = #tpu.contract_precision<fp32>} : vector<8x32xf32>, vector<32x32xf32>, vector<8x32xf32> -> vector<8x32xf32>
    %c0_5 = arith.constant 0 : index
    %c0_6 = arith.constant 0 : index
    %4 = vector.load %arg5[%c0_5, %c0_6] : memref<48x64xf32, #tpu.memory_space<vmem>>, vector<48x64xf32>
    %cst_7 = arith.constant dense<0.000000e+00> : vector<128x64xf32>
    %5 = tpu.matmul %1, %4, %cst_7 {dimension_numbers = #tpu.dot_dimension_numbers<[1], [0], [0], [1], [0, 0, 1, 1], [], []>, precision = #tpu.contract_precision<fp32>} : vector<128x48xf32>, vector<48x64xf32>, vector<128x64xf32> -> vector<128x64xf32>
    %6 = vector.extract_strided_slice %5 {offsets = [0, 0], sizes = [128, 32], strides = [1, 1]} : vector<128x64xf32> to vector<128x32xf32>
    %7 = vector.shape_cast %6 : vector<128x32xf32> to vector<8x16x32xf32>
    %8 = vector.extract_strided_slice %5 {offsets = [0, 32], sizes = [128, 32], strides = [1, 1]} : vector<128x64xf32> to vector<128x32xf32>
    %9 = vector.shape_cast %8 : vector<128x32xf32> to vector<8x16x32xf32>
    %10 = vector.shape_cast %3 : vector<8x32xf32> to vector<8x1x32xf32>
    %11 = vector.broadcast %10 : vector<8x1x32xf32> to vector<8x16x32xf32>
    %12 = arith.mulf %11, %7 : vector<8x16x32xf32>
    %c0_8 = arith.constant 0 : index
    %c0_9 = arith.constant 0 : index
    %13 = vector.load %arg3[%c0_8, %c0_9] : memref<8x16xf32, #tpu.memory_space<vmem>>, vector<8x16xf32>
    %cst_10 = arith.constant 0.000000e+00 : f32
    %14 = vector.broadcast %cst_10 : f32 to vector<8x16xf32>
    %15 = arith.cmpf oeq, %13, %14 : vector<8x16xf32>
    %cst_11 = arith.constant -1.000000e+10 : f32
    %cst_12 = arith.constant 0.000000e+00 : f32
    %16 = vector.broadcast %cst_11 : f32 to vector<8x16xf32>
    %17 = vector.broadcast %cst_12 : f32 to vector<8x16xf32>
    %18 = arith.select %15, %16, %17 : vector<8x16xi1>, vector<8x16xf32>
    %19 = tpu.iota {dimensions = array<i32: 2>} : vector<1x1x32xi32>
    %cst_13 = arith.constant 0.000000e+00 : f32
    %20 = vector.broadcast %cst_13 : f32 to vector<8x16x32xf32>
    %c0_i32 = arith.constant 0 : i32
    %21 = vector.broadcast %c0_i32 : i32 to vector<1x1x32xi32>
    %22 = arith.cmpi sge, %19, %21 : vector<1x1x32xi32>
    %c16_i32 = arith.constant 16 : i32
    %23 = vector.broadcast %c16_i32 : i32 to vector<1x1x32xi32>
    %24 = arith.cmpi slt, %19, %23 : vector<1x1x32xi32>
    %25 = arith.andi %22, %24 : vector<1x1x32xi1>
    %cst_14 = arith.constant 1.000000e+00 : f32
    %cst_15 = arith.constant 0.000000e+00 : f32
    %26 = vector.broadcast %cst_14 : f32 to vector<1x1x32xf32>
    %27 = vector.broadcast %cst_15 : f32 to vector<1x1x32xf32>
    %28 = arith.select %25, %26, %27 : vector<1x1x32xi1>, vector<1x1x32xf32>
    %29 = vector.broadcast %28 : vector<1x1x32xf32> to vector<8x16x32xf32>
    %30 = arith.mulf %12, %29 : vector<8x16x32xf32>
    %cst_16 = arith.constant dense<0.000000e+00> : vector<8x16xf32>
    %31 = vector.multi_reduction <add>, %30, %cst_16 [2] : vector<8x16x32xf32> to vector<8x16xf32>
    %cst_17 = arith.constant 2.500000e-01 : f32
    %32 = vector.broadcast %cst_17 : f32 to vector<8x16xf32>
    %33 = arith.mulf %31, %32 : vector<8x16xf32>
    %34 = arith.addf %33, %18 : vector<8x16xf32>
    %cst_18 = arith.constant dense<0xFF800000> : vector<8xf32>
    %35 = vector.multi_reduction <maximumf>, %34, %cst_18 [1] : vector<8x16xf32> to vector<8xf32>
    %36 = vector.shape_cast %35 : vector<8xf32> to vector<8x1xf32>
    %37 = vector.broadcast %36 : vector<8x1xf32> to vector<8x16xf32>
    %38 = arith.subf %34, %37 : vector<8x16xf32>
    %39 = math.exp %38 : vector<8x16xf32>
    %cst_19 = arith.constant dense<0.000000e+00> : vector<8xf32>
    %40 = vector.multi_reduction <add>, %39, %cst_19 [1] : vector<8x16xf32> to vector<8xf32>
    %41 = vector.shape_cast %40 : vector<8xf32> to vector<8x1xf32>
    %42 = tpu.reciprocal %41 {approx = true} : vector<8x1xf32> -> vector<8x1xf32>
    %43 = vector.broadcast %42 : vector<8x1xf32> to vector<8x16xf32>
    %44 = arith.mulf %39, %43 : vector<8x16xf32>
    %45 = vector.shape_cast %44 : vector<8x16xf32> to vector<8x16x1xf32>
    %46 = vector.broadcast %45 : vector<8x16x1xf32> to vector<8x16x32xf32>
    %47 = vector.broadcast %28 : vector<1x1x32xf32> to vector<8x16x32xf32>
    %48 = arith.mulf %46, %47 : vector<8x16x32xf32>
    %49 = arith.addf %20, %48 : vector<8x16x32xf32>
    %c16_i32_20 = arith.constant 16 : i32
    %50 = vector.broadcast %c16_i32_20 : i32 to vector<1x1x32xi32>
    %51 = arith.cmpi sge, %19, %50 : vector<1x1x32xi32>
    %c32_i32 = arith.constant 32 : i32
    %52 = vector.broadcast %c32_i32 : i32 to vector<1x1x32xi32>
    %53 = arith.cmpi slt, %19, %52 : vector<1x1x32xi32>
    %54 = arith.andi %51, %53 : vector<1x1x32xi1>
    %cst_21 = arith.constant 1.000000e+00 : f32
    %cst_22 = arith.constant 0.000000e+00 : f32
    %55 = vector.broadcast %cst_21 : f32 to vector<1x1x32xf32>
    %56 = vector.broadcast %cst_22 : f32 to vector<1x1x32xf32>
    %57 = arith.select %54, %55, %56 : vector<1x1x32xi1>, vector<1x1x32xf32>
    %58 = vector.broadcast %57 : vector<1x1x32xf32> to vector<8x16x32xf32>
    %59 = arith.mulf %12, %58 : vector<8x16x32xf32>
    %cst_23 = arith.constant dense<0.000000e+00> : vector<8x16xf32>
    %60 = vector.multi_reduction <add>, %59, %cst_23 [2] : vector<8x16x32xf32> to vector<8x16xf32>
    %cst_24 = arith.constant 2.500000e-01 : f32
    %61 = vector.broadcast %cst_24 : f32 to vector<8x16xf32>
    %62 = arith.mulf %60, %61 : vector<8x16xf32>
    %63 = arith.addf %62, %18 : vector<8x16xf32>
    %cst_25 = arith.constant dense<0xFF800000> : vector<8xf32>
    %64 = vector.multi_reduction <maximumf>, %63, %cst_25 [1] : vector<8x16xf32> to vector<8xf32>
    %65 = vector.shape_cast %64 : vector<8xf32> to vector<8x1xf32>
    %66 = vector.broadcast %65 : vector<8x1xf32> to vector<8x16xf32>
    %67 = arith.subf %63, %66 : vector<8x16xf32>
    %68 = math.exp %67 : vector<8x16xf32>
    %cst_26 = arith.constant dense<0.000000e+00> : vector<8xf32>
    %69 = vector.multi_reduction <add>, %68, %cst_26 [1] : vector<8x16xf32> to vector<8xf32>
    %70 = vector.shape_cast %69 : vector<8xf32> to vector<8x1xf32>
    %71 = tpu.reciprocal %70 {approx = true} : vector<8x1xf32> -> vector<8x1xf32>
    %72 = vector.broadcast %71 : vector<8x1xf32> to vector<8x16xf32>
    %73 = arith.mulf %68, %72 : vector<8x16xf32>
    %74 = vector.shape_cast %73 : vector<8x16xf32> to vector<8x16x1xf32>
    %75 = vector.broadcast %74 : vector<8x16x1xf32> to vector<8x16x32xf32>
    %76 = vector.broadcast %57 : vector<1x1x32xf32> to vector<8x16x32xf32>
    %77 = arith.mulf %75, %76 : vector<8x16x32xf32>
    %78 = arith.addf %49, %77 : vector<8x16x32xf32>
    %79 = arith.mulf %78, %9 : vector<8x16x32xf32>
    %cst_27 = arith.constant dense<0.000000e+00> : vector<8x32xf32>
    %80 = vector.multi_reduction <add>, %79, %cst_27 [1] : vector<8x16x32xf32> to vector<8x32xf32>
    %81 = tpu.concatenate %44, %73 in 1 : vector<8x16xf32>, vector<8x16xf32> -> vector<8x32xf32>
    %c0_28 = arith.constant 0 : index
    %c0_29 = arith.constant 0 : index
    %82 = vector.load %arg6[%c0_28, %c0_29] : memref<32x32xf32, #tpu.memory_space<vmem>>, vector<32x32xf32>
    %cst_30 = arith.constant dense<0.000000e+00> : vector<8x32xf32>
    %83 = tpu.matmul %80, %82, %cst_30 {dimension_numbers = #tpu.dot_dimension_numbers<[1], [0], [0], [1], [0, 0, 1, 1], [], []>, precision = #tpu.contract_precision<fp32>} : vector<8x32xf32>, vector<32x32xf32>, vector<8x32xf32> -> vector<8x32xf32>
    %c0_31 = arith.constant 0 : index
    %c0_32 = arith.constant 0 : index
    %84 = vector.load %arg7[%c0_31, %c0_32] : memref<1x32xf32, #tpu.memory_space<vmem>>, vector<1x32xf32>
    %85 = vector.broadcast %84 : vector<1x32xf32> to vector<8x32xf32>
    %86 = arith.addf %83, %85 : vector<8x32xf32>
    %87 = arith.addf %86, %0 : vector<8x32xf32>
    %cst_33 = arith.constant dense<0.000000e+00> : vector<8xf32>
    %88 = vector.multi_reduction <add>, %87, %cst_33 [1] : vector<8x32xf32> to vector<8xf32>
    %89 = vector.shape_cast %88 : vector<8xf32> to vector<8x1xf32>
    %cst_34 = arith.constant 3.200000e+01 : f32
    %90 = vector.broadcast %cst_34 : f32 to vector<8x1xf32>
    %91 = arith.divf %89, %90 : vector<8x1xf32>
    %92 = vector.broadcast %91 : vector<8x1xf32> to vector<8x32xf32>
    %93 = arith.subf %87, %92 : vector<8x32xf32>
    %94 = arith.mulf %93, %93 : vector<8x32xf32>
    %cst_35 = arith.constant dense<0.000000e+00> : vector<8xf32>
    %95 = vector.multi_reduction <add>, %94, %cst_35 [1] : vector<8x32xf32> to vector<8xf32>
    %96 = vector.shape_cast %95 : vector<8xf32> to vector<8x1xf32>
    %cst_36 = arith.constant 3.200000e+01 : f32
    %97 = vector.broadcast %cst_36 : f32 to vector<8x1xf32>
    %98 = arith.divf %96, %97 : vector<8x1xf32>
    %99 = vector.broadcast %91 : vector<8x1xf32> to vector<8x32xf32>
    %100 = arith.subf %87, %99 : vector<8x32xf32>
    %cst_37 = arith.constant 9.99999974E-6 : f32
    %101 = vector.broadcast %cst_37 : f32 to vector<8x1xf32>
    %102 = arith.addf %98, %101 : vector<8x1xf32>
    %103 = math.rsqrt %102 : vector<8x1xf32>
    %104 = vector.broadcast %103 : vector<8x1xf32> to vector<8x32xf32>
    %105 = arith.mulf %100, %104 : vector<8x32xf32>
    %c0_38 = arith.constant 0 : index
    %c0_39 = arith.constant 0 : index
    %106 = vector.load %arg8[%c0_38, %c0_39] : memref<1x32xf32, #tpu.memory_space<vmem>>, vector<1x32xf32>
    %107 = vector.broadcast %106 : vector<1x32xf32> to vector<8x32xf32>
    %108 = arith.mulf %105, %107 : vector<8x32xf32>
    %c0_40 = arith.constant 0 : index
    %c0_41 = arith.constant 0 : index
    %109 = vector.load %arg9[%c0_40, %c0_41] : memref<1x32xf32, #tpu.memory_space<vmem>>, vector<1x32xf32>
    %110 = vector.broadcast %109 : vector<1x32xf32> to vector<8x32xf32>
    %111 = arith.addf %108, %110 : vector<8x32xf32>
    %112 = tpu.iota {dimensions = array<i32: 0>} : vector<32x32xi32>
    %113 = tpu.iota {dimensions = array<i32: 1>} : vector<32x32xi32>
    %114 = arith.cmpi eq, %112, %113 : vector<32x32xi32>
    %cst_42 = arith.constant 1.000000e+00 : f32
    %cst_43 = arith.constant 0.000000e+00 : f32
    %115 = vector.broadcast %cst_42 : f32 to vector<32x32xf32>
    %116 = vector.broadcast %cst_43 : f32 to vector<32x32xf32>
    %117 = arith.select %114, %115, %116 : vector<32x32xi1>, vector<32x32xf32>
    %cst_44 = arith.constant dense<0.000000e+00> : vector<32x8xf32>
    %118 = tpu.matmul %117, %111, %cst_44 {dimension_numbers = #tpu.dot_dimension_numbers<[1], [1], [0], [0], [0, 0, 1, 0], [], []>, precision = #tpu.contract_precision<fp32>} : vector<32x32xf32>, vector<8x32xf32>, vector<32x8xf32> -> vector<32x8xf32>
    %c0_45 = arith.constant 0 : index
    %c0_46 = arith.constant 0 : index
    %119 = vector.load %arg10[%c0_45, %c0_46] : memref<32x8xf32, #tpu.memory_space<vmem>>, vector<32x8xf32>
    tpu.vector_store %arg10[%c0_45, %c0_46], %118 {strides = array<i32>} : memref<32x8xf32, #tpu.memory_space<vmem>>, vector<32x8xf32>,
    %120 = tpu.iota {dimensions = array<i32: 0>} : vector<32x32xi32>
    %121 = tpu.iota {dimensions = array<i32: 1>} : vector<32x32xi32>
    %122 = arith.cmpi eq, %120, %121 : vector<32x32xi32>
    %cst_47 = arith.constant 1.000000e+00 : f32
    %cst_48 = arith.constant 0.000000e+00 : f32
    %123 = vector.broadcast %cst_47 : f32 to vector<32x32xf32>
    %124 = vector.broadcast %cst_48 : f32 to vector<32x32xf32>
    %125 = arith.select %122, %123, %124 : vector<32x32xi1>, vector<32x32xf32>
    %cst_49 = arith.constant dense<0.000000e+00> : vector<32x8xf32>
    %126 = tpu.matmul %125, %81, %cst_49 {dimension_numbers = #tpu.dot_dimension_numbers<[1], [1], [0], [0], [0, 0, 1, 0], [], []>, precision = #tpu.contract_precision<fp32>} : vector<32x32xf32>, vector<8x32xf32>, vector<32x8xf32> -> vector<32x8xf32>
    %c0_50 = arith.constant 0 : index
    %c0_51 = arith.constant 0 : index
    %127 = vector.load %arg11[%c0_50, %c0_51] : memref<32x8xf32, #tpu.memory_space<vmem>>, vector<32x8xf32>
    tpu.vector_store %arg11[%c0_50, %c0_51], %126 {strides = array<i32>} : memref<32x8xf32, #tpu.memory_space<vmem>>, vector<32x8xf32>,
    return
  }
  func.func @transform_0(%arg0: i32) -> (i32, i32) {
    %c0_i32 = arith.constant 0 : i32
    %c0_i32_0 = arith.constant 0 : i32
    return %arg0, %c0_i32 : i32, i32
  }
  func.func @transform_1(%arg0: i32) -> (i32, i32) {
    %c0_i32 = arith.constant 0 : i32
    %c0_i32_0 = arith.constant 0 : i32
    return %arg0, %c0_i32 : i32, i32
  }
  func.func @transform_2(%arg0: i32) -> (i32, i32) {
    %c0_i32 = arith.constant 0 : i32
    %c0_i32_0 = arith.constant 0 : i32
    return %arg0, %c0_i32 : i32, i32
  }
  func.func @transform_3(%arg0: i32) -> (i32, i32) {
    %c0_i32 = arith.constant 0 : i32
    %c0_i32_0 = arith.constant 0 : i32
    %c0_i32_1 = arith.constant 0 : i32
    return %c0_i32, %c0_i32_0 : i32, i32
  }
  func.func @transform_4(%arg0: i32) -> (i32, i32) {
    %c0_i32 = arith.constant 0 : i32
    %c0_i32_0 = arith.constant 0 : i32
    %c0_i32_1 = arith.constant 0 : i32
    return %c0_i32, %c0_i32_0 : i32, i32
  }
  func.func @transform_5(%arg0: i32) -> (i32, i32) {
    %c0_i32 = arith.constant 0 : i32
    %c0_i32_0 = arith.constant 0 : i32
    %c0_i32_1 = arith.constant 0 : i32
    return %c0_i32, %c0_i32_0 : i32, i32
  }
  func.func @transform_6(%arg0: i32) -> (i32, i32) {
    %c0_i32 = arith.constant 0 : i32
    %c0_i32_0 = arith.constant 0 : i32
    %c0_i32_1 = arith.constant 0 : i32
    return %c0_i32, %c0_i32_0 : i32, i32
  }
  func.func @transform_7(%arg0: i32) -> (i32, i32) {
    %c0_i32 = arith.constant 0 : i32
    %c0_i32_0 = arith.constant 0 : i32
    %c0_i32_1 = arith.constant 0 : i32
    return %c0_i32, %c0_i32_0 : i32, i32
  }
  func.func @transform_8(%arg0: i32) -> (i32, i32) {
    %c0_i32 = arith.constant 0 : i32
    %c0_i32_0 = arith.constant 0 : i32
    %c0_i32_1 = arith.constant 0 : i32
    return %c0_i32, %c0_i32_0 : i32, i32
  }
  func.func @transform_9(%arg0: i32) -> (i32, i32) {
    %c0_i32 = arith.constant 0 : i32
    %c0_i32_0 = arith.constant 0 : i32
    return %c0_i32, %arg0 : i32, i32
  }
  func.func @transform_10(%arg0: i32) -> (i32, i32) {
    %c0_i32 = arith.constant 0 : i32
    %c0_i32_0 = arith.constant 0 : i32
    return %c0_i32, %arg0 : i32, i32
  }
}

</mosaic_0001>

<bundles_post_ra>
// kernel: tpu_custom_call.1
= control target key start
LH: loop header
LB: loop body
LE: loop exit
PB: predicated region body
PF: predicated region fallthrough
CT: control target
= control target key end

     0   :  { %vm550_vm0 = vcmask 392192   ;;  %v8236_v3 = vmov 0.0|0.0   ;;  %vm6422_vm1 = vmmov 0   ;;  %v8227_v4 = vmov 0.0   ;;  %s8203_s4 = inlined_call_operand.vmem [shape: f32[48,64], index: 4, kind: input, shape index: {}]   ;;  %s8204_s1 = inlined_call_operand.vmem [shape: f32[128,48], index: 1, kind: input, shape index: {}]   ;;  %s8205_s3 = inlined_call_operand.vmem [shape: f32[32,32], index: 3, kind: input, shape index: {}]   ;;  %s8206_s0 = inlined_call_operand.vmem [shape: f32[8,32], index: 0, kind: input, shape index: {}]   ;;  %s8207_s2 = inlined_call_operand.vmem [shape: f32[8,16], index: 2, kind: input, shape index: {}]   ;;  %s8208_s5 = inlined_call_operand.vmem [shape: f32[32,32], index: 5, kind: input, shape index: {}]   ;;  %s8209_s6 = inlined_call_operand.vmem [shape: f32[1,32], index: 6, kind: input, shape index: {}]   ;;  %s8210_s7 = inlined_call_operand.vmem [shape: f32[1,32], index: 7, kind: input, shape index: {}]   ;;  %s8211_s8 = inlined_call_operand.vmem [shape: f32[1,32], index: 8, kind: input, shape index: {}]   ;;  %s8212_s9 = inlined_call_operand.vmem [shape: f32[32,8], index: 9, kind: output, shape index: {0}]   ;;  %s8213_s10 = inlined_call_operand.vmem [shape: f32[32,8], index: 10, kind: output, shape index: {1}]  }
   0x1   :  { %v544_v0 = vld [vmem:[%s8203_s4] sm:$0xff]  ;;  %v545_v1 = vld [vmem:[%s8203_s4 + $0x8] sm:$0xff]  ;;  %v6491_v2 = vld [vmem:[%s8203_s4 + $0x10] sm:$0xff]  ;;  %6068 = vmatprep.subr.bf16.mxu0 %v8236_v3  ;;  %5632 = vmatprep.mubr.msk.f32.mxu0 %vm6422_vm1, %v8227_v4  ;;  %vm55_vm2 = vcmask 261120   ;;  %vm2144_vm8 = vcmask 130112   ;;  %vm2209_vm9 = vcmask 1041409  }
   0x2   :  { %v600_v5 = vand.u32 4294901760, %v544_v0  ;;  %v603_v6 = vand.u32 4294901760, %v545_v1  ;;  %v6499_v7 = vld [vmem:[%s8203_s4 + $0x18] sm:$0xff]  ;;  %v606_v8 = vand.u32 4294901760, %v6491_v2  ;;  %v6505_v9 = vld [vmem:[%s8203_s4 + $0x20] sm:$0xff]  ;;  %v6510_v10 = vld [vmem:[%s8203_s4 + $0x28] sm:$0xff] }
   0x3   :  { %v609_v11 = vand.u32 4294901760, %v6499_v7  ;;  %v612_v12 = vand.u32 4294901760, %v6505_v9  ;;  %v615_v13 = vand.u32 4294901760, %v6510_v10  ;;  %v35_v14 = vld [vmem:[%s8204_s1] sm:$0xff]  ;;  %v36_v15 = vld [vmem:[%s8204_s1 + $0x8] sm:$0xff]  ;;  %v37_v16 = vld [vmem:[%s8204_s1 + $0x10] sm:$0xff] }
   0x4   :  { %v6524_v17 = vpack.c.bf16 %v603_v6, %v600_v5  ;;  %v552_v18 = vsel %vm550_vm0, %v35_v14, 0  ;;  %v555_v19 = vsel %vm550_vm0, %v36_v15, 0  ;;  %v558_v20 = vsel %vm550_vm0, %v37_v16, 0  ;;  %v38_v21 = vld [vmem:[%s8204_s1 + $0x18] sm:$0xff]  ;;  %v39_v22 = vld [vmem:[%s8204_s1 + $0x20] sm:$0xff]  ;;  %v40_v31 = vld [vmem:[%s8204_s1 + $0x28] sm:$0xff] }
   0x5   :  { %v6539_v23 = vpack.c.bf16 %v609_v11, %v606_v8  ;;  %v6545_v24 = vpack.c.bf16 %v615_v13, %v612_v12  ;;  %v6547_v25 = vand.u32 4294901760, %v552_v18  ;;  %v6549_v26 = vand.u32 4294901760, %v555_v19  ;;  %v41_v52 = vld [vmem:[%s8204_s1 + $0x30] sm:$0xff]  ;;  %v42_v57 = vld [vmem:[%s8204_s1 + $0x38] sm:$0xff]  ;;  %v43_v62 = vld [vmem:[%s8204_s1 + $0x40] sm:$0xff] }
   0x6   :  { %6105 = vmatprep.subr.bf16.mxu1 %v6524_v17  ;;  %v6552_v27 = vand.u32 4294901760, %v558_v20  ;;  %v561_v28 = vsel %vm550_vm0, %v38_v21, 0  ;;  %v6555_v29 = vsub.f32 %v544_v0, %v600_v5  ;;  %v6557_v30 = vsub.f32 %v545_v1, %v603_v6 }
   0x7   :  { %6107 = vmatpush3.bf16.msra.mxu1 %v6524_v17  ;;  %v6564_v32 = vsub.f32 %v552_v18, %v6547_v25  ;;  %v6567_v33 = vsub.f32 %v555_v19, %v6549_v26  ;;  %v6569_v34 = vand.u32 4294901760, %v561_v28  ;;  %v564_v35 = vsel %vm550_vm0, %v39_v22, 0  ;;  %v44_v18 = vld [vmem:[%s8204_s1 + $0x48] sm:$0xff]  ;;  %v45_v19 = vld [vmem:[%s8204_s1 + $0x50] sm:$0xff] }
   0x8   :  { %6109 = vmatprep.subr.bf16.mxu1 %v6539_v23  ;;  %v6574_v36 = vsub.f32 %v558_v20, %v6552_v27  ;;  %v8234_v37 = vand.u32 4294901760, %v6555_v29  ;;  %v8233_v38 = vand.u32 4294901760, %v6557_v30  ;;  %v6578_v39 = vand.u32 4294901760, %v564_v35 }
   0x9   :  { %v8226_v40 = vand.u32 4294901760, %v6564_v32  ;;  %v8225_v41 = vand.u32 4294901760, %v6567_v33  ;;  %v6583_v42 = vsub.f32 %v561_v28, %v6569_v34  ;;  %v567_v43 = vsel %vm550_vm0, %v40_v31, 0 }
   0xa   :  { %v8224_v44 = vand.u32 4294901760, %v6574_v36  ;;  %v834_v45 = vsub.f32 %v6555_v29, %v8234_v37  ;;  %v841_v46 = vsub.f32 %v6557_v30, %v8233_v38  ;;  %v6594_v47 = vsub.f32 %v564_v35, %v6578_v39 }
   0xb   :  { %6111 = vmatpush3.bf16.msra.mxu1 %v6539_v23  ;;  %v673_v48 = vsub.f32 %v6564_v32, %v8226_v40  ;;  %v683_v49 = vsub.f32 %v6567_v33, %v8225_v41  ;;  %v8222_v50 = vand.u32 4294901760, %v6583_v42  ;;  %v6604_v51 = vand.u32 4294901760, %v567_v43 }
   0xc   :  { %6113 = vmatprep.subr.bf16.mxu1 %v6545_v24  ;;  %v693_v53 = vsub.f32 %v6574_v36, %v8224_v44  ;;  %v835_v54 = vand.u32 4294901760, %v834_v45  ;;  %v842_v55 = vand.u32 4294901760, %v841_v46  ;;  %v8220_v56 = vand.u32 4294901760, %v6594_v47  ;;  %v54_v44 = vld [vmem:[%s8205_s3 + $0x18] sm:$0xff] }
   0xd   :  { %v674_v58 = vand.u32 4294901760, %v673_v48  ;;  %v684_v59 = vand.u32 4294901760, %v683_v49  ;;  %v703_v60 = vsub.f32 %v6583_v42, %v8222_v50  ;;  %v6621_v61 = vsub.f32 %v567_v43, %v6604_v51  ;;  %v46_v49 = vld [vmem:[%s8204_s1 + $0x58] sm:$0xff] }
   0xe   :  { %v694_v63 = vand.u32 4294901760, %v693_v53  ;;  %v6116_v0 = vpack.c.bf16 %v842_v55, %v835_v54  ;;  %v713_v1 = vsub.f32 %v6594_v47, %v8220_v56  ;;  %v570_v5 = vsel %vm550_vm0, %v41_v52, 0 }
   0xf   :  { %6115 = vmatpush3.bf16.msra.mxu1 %v6545_v24  ;;  %5702 = vmatprep.mubr.f32.mxu1 %v674_v58  ;;  %v704_v6 = vand.u32 4294901760, %v703_v60  ;;  %v8219_v14 = vand.u32 4294901760, %v6621_v61  ;;  %v6632_v15 = vand.u32 4294901760, %v570_v5  ;;  %v573_v16 = vsel %vm550_vm0, %v42_v57, 0 }
  0x10   :  { %6117 = vmatprep.subr.bf16.mxu1 %v6116_v0  ;;  %v714_v20 = vand.u32 4294901760, %v713_v1  ;;  %v6641_v21 = vand.u32 4294901760, %v573_v16  ;;  %v576_v22 = vsel %vm550_vm0, %v43_v62, 0  ;;  %v6647_v28 = vsub.f32 %v6491_v2, %v606_v8 }
  0x11   :  { %v723_v31 = vsub.f32 %v6621_v61, %v8219_v14  ;;  %v6653_v35 = vsub.f32 %v570_v5, %v6632_v15  ;;  %v6655_v43 = vand.u32 4294901760, %v576_v22  ;;  %v6660_v45 = vsub.f32 %v6499_v7, %v609_v11 }
  0x12   :  { %5703 = vmatmul.mubr.f32.vlgmr.msra.gmra.mrb[0].mxu1 %v684_v59  ;;  %v6663_v46 = vsub.f32 %v573_v16, %v6641_v21  ;;  %v8232_v2 = vand.u32 4294901760, %v6647_v28  ;;  %v579_v8 = vsel %vm550_vm0, %v44_v18, 0  ;;  %v582_v48 = vsel %vm550_vm0, %v45_v19, 0 }
  0x13   :  { %5705 = vmatprep.mubr.f32.mxu1 %v694_v63  ;;  %6119 = vmatpush3.bf16.msra.mxu1 %v6116_v0  ;;  %v724_v52 = vand.u32 4294901760, %v723_v31  ;;  %v8215_v7 = vand.u32 4294901760, %v6653_v35  ;;  %v6673_v11 = vsub.f32 %v576_v22, %v6655_v43  ;;  %v8231_v53 = vand.u32 4294901760, %v6660_v45  ;;  %v47_v0 = vld [vmem:[%s8204_s1 + $0x60] sm:$0xff] }
  0x14   :  { %v8214_v54 = vand.u32 4294901760, %v6663_v46  ;;  %v848_v55 = vsub.f32 %v6647_v28, %v8232_v2  ;;  %v6680_v57 = vand.u32 4294901760, %v579_v8  ;;  %v6682_v58 = vand.u32 4294901760, %v582_v48 }
  0x15   :  { %v733_v59 = vsub.f32 %v6653_v35, %v8215_v7  ;;  %v8216_v60 = vand.u32 4294901760, %v6673_v11  ;;  %v855_v62 = vsub.f32 %v6660_v45, %v8231_v53  ;;  %v585_v63 = vsel %vm550_vm0, %v46_v49, 0 }
  0x16   :  { %5706 = vmatmul.mubr.f32.gmra.mrb[2].mxu1 %v704_v6  ;;  %v743_v1 = vsub.f32 %v6663_v46, %v8214_v54  ;;  %v849_v5 = vand.u32 4294901760, %v848_v55  ;;  %v6699_v16 = vsub.f32 %v579_v8, %v6680_v57  ;;  %v6702_v18 = vsub.f32 %v582_v48, %v6682_v58  ;;  %v48_v6 = vld [vmem:[%s8204_s1 + $0x68] sm:$0xff] }
  0x17   :  { %5708 = vmatprep.mubr.f32.mxu1 %v714_v20  ;;  %v734_v19 = vand.u32 4294901760, %v733_v59  ;;  %v753_v22 = vsub.f32 %v6673_v11, %v8216_v60  ;;  %v856_v31 = vand.u32 4294901760, %v855_v62  ;;  %v6707_v49 = vand.u32 4294901760, %v585_v63  ;;  %v49_v62 = vld [vmem:[%s8204_s1 + $0x70] sm:$0xff] }
  0x18   :  { %v744_v55 = vand.u32 4294901760, %v743_v1  ;;  %v8218_v8 = vand.u32 4294901760, %v6699_v16  ;;  %v8217_v54 = vand.u32 4294901760, %v6702_v18  ;;  %v588_v48 = vsel %vm550_vm0, %v47_v0, 0 }
  0x19   :  { %v754_v20 = vand.u32 4294901760, %v753_v22  ;;  %v6120_v59 = vpack.c.bf16 %v856_v31, %v849_v5  ;;  %v6716_v7 = vsub.f32 %v585_v63, %v6707_v49  ;;  %v6718_v60 = vand.u32 4294901760, %v588_v48 }
  0x1a   :  { %5709 = vmatmul.mubr.f32.gmra.mrb[4].mxu1 %v724_v52  ;;  %v763_v1 = vsub.f32 %v6699_v16, %v8218_v8  ;;  %v773_v0 = vsub.f32 %v6702_v18, %v8217_v54  ;;  %v591_v5 = vsel %vm550_vm0, %v48_v6, 0  ;;  %v6733_v63 = vsub.f32 %v6505_v9, %v612_v12  ;;  %v50_v6 = vld [vmem:[%s8204_s1 + $0x78] sm:$0xff] }
  0x1b   :  { %8309 = vst [vmem:[#allocation2_spill] sm:$0xff] %v6716_v7  ;;  %5711 = vmatprep.mubr.f32.mxu1 %v734_v19  ;;  %6121 = vmatprep.subr.bf16.mxu1 %v6120_v59  ;;  %v8221_v22 = vand.u32 4294901760, %v6716_v7  ;;  %v6737_v52 = vsub.f32 %v588_v48, %v6718_v60  ;;  %v6739_v31 = vand.u32 4294901760, %v591_v5  ;;  %v6744_v54 = vsub.f32 %v6510_v10, %v615_v13 }
  0x1c   :  { %6123 = vmatpush3.bf16.msra.mxu1 %v6120_v59  ;;  %v8230_v9 = vand.u32 4294901760, %v6733_v63  ;;  %v594_v12 = vsel %vm550_vm0, %v49_v62, 0  ;;  %v764_v13 = vand.u32 4294901760, %v763_v1  ;;  %v597_v62 = vsel %vm550_vm0, %v50_v6, 0  ;;  %v51_v1 = vld [vmem:[%s8205_s3] sm:$0xff]  ;;  %v52_v6 = vld [vmem:[%s8205_s3 + $0x8] sm:$0xff] }
  0x1d   :  { %8310 = vst [vmem:[#allocation3_spill] sm:$0xff] %v6737_v52  ;;  %v783_v19 = vsub.f32 %v6716_v7, %v8221_v22  ;;  %v8223_v48 = vand.u32 4294901760, %v6737_v52  ;;  %v6756_v8 = vsub.f32 %v591_v5, %v6739_v31  ;;  %v8229_v10 = vand.u32 4294901760, %v6744_v54 }
  0x1e   :  { %5712 = vmatmul.mubr.f32.gmra.mrb[6].mxu1 %v744_v55  ;;  %v862_v59 = vsub.f32 %v6733_v63, %v8230_v9  ;;  %v6762_v14 = vand.u32 4294901760, %v594_v12  ;;  %v774_v56 = vand.u32 4294901760, %v773_v0  ;;  %v6781_v50 = vand.u32 4294901760, %v597_v62 }
  0x1f   :  { %8311 = vst [vmem:[#allocation4_spill] sm:$0xff] %v6756_v8  ;;  %5714 = vmatprep.mubr.f32.mxu1 %v754_v20  ;;  %v793_v22 = vsub.f32 %v6737_v52, %v8223_v48  ;;  %v8235_v5 = vand.u32 4294901760, %v6756_v8  ;;  %v869_v55 = vsub.f32 %v6744_v54, %v8229_v10  ;;  %v53_v48 = vld [vmem:[%s8205_s3 + $0x10] sm:$0xff]  ;;  %v784_v41 = vand.u32 4294901760, %v783_v19 }
  0x20   :  { %v863_v20 = vand.u32 4294901760, %v862_v59  ;;  %v6779_v0 = vsub.f32 %v594_v12, %v6762_v14  ;;  %v6794_v12 = vpack.c.bf16 %v6557_v30, %v6555_v29  ;;  %v6798_v10 = vsub.f32 %v597_v62, %v6781_v50 }
  0x21   :  { %v803_v40 = vsub.f32 %v6756_v8, %v8235_v5  ;;  %v870_v59 = vand.u32 4294901760, %v869_v55  ;;  %v60_v9 = vand.u32 4294901760, %v51_v1  ;;  %v63_v53 = vand.u32 4294901760, %v52_v6  ;;  %v34_v55 = vld [vmem:[%s8206_s0] sm:$0xff] }
  0x22   :  { %8312 = vst [vmem:[#allocation5_spill] sm:$0xff] %v6779_v0  ;;  %5715 = vmatmul.mubr.f32.gmra.mrb[8].mxu1 %v764_v13  ;;  %v8240_v4 = vand.u32 4294901760, %v6779_v0  ;;  %8313 = vst [vmem:[#allocation6_spill] sm:$0xff] %v6798_v10  ;;  %v794_v2 = vand.u32 4294901760, %v793_v22  ;;  %v66_v38 = vand.u32 4294901760, %v53_v48  ;;  %v69_v37 = vand.u32 4294901760, %v54_v44 }
  0x23   :  { %5717 = vmatprep.mubr.f32.mxu1 %v774_v56  ;;  %v6124_v19 = vpack.c.bf16 %v870_v59, %v863_v20  ;;  %v8243_v5 = vand.u32 4294901760, %v6798_v10  ;;  %v6807_v3 = vpack.c.bf16 %v63_v53, %v60_v9  ;;  %v6809_v62 = vsub.f32 %v51_v1, %v60_v9 }
  0x24   :  { %v813_v13 = vsub.f32 %v6779_v0, %v8240_v4  ;;  %v804_v8 = vand.u32 4294901760, %v803_v40  ;;  %v6811_v56 = vsub.f32 %v52_v6, %v63_v53  ;;  %v6813_v22 = vpack.c.bf16 %v69_v37, %v66_v38 }
  0x25   :  { %6125 = vmatprep.subr.bf16.mxu1 %v6124_v19  ;;  %v6815_v20 = vsub.f32 %v53_v48, %v66_v38  ;;  %v823_v4 = vsub.f32 %v6798_v10, %v8243_v5  ;;  %6070 = vmatpush3.bf16.msra.mxu0 %v6807_v3  ;;  %v6821_v0 = vsub.f32 %v54_v44, %v69_v37  ;;  %v57_v9 = vsel %vm55_vm2, %v34_v55, 0 }
  0x26   :  { %5718 = vmatmul.mubr.f32.gmra.mrb[10].mxu1 %v784_v41  ;;  %v814_v59 = vand.u32 4294901760, %v813_v13  ;;  %v6824_v40 = vand.u32 4294901760, %v57_v9  ;;  %v8246_v53 = vand.u32 4294901760, %v6809_v62  ;;  %v8244_v38 = vand.u32 4294901760, %v6811_v56 }
  0x27   :  { %5720 = vmatprep.mubr.f32.mxu1 %v794_v2  ;;  %6127 = vmatpush3.bf16.msra.mxu1 %v6124_v19  ;;  %v8245_v41 = vand.u32 4294901760, %v6815_v20  ;;  %v8314_v48 = vmov 0.0|0.0   ;;  %v824_v2 = vand.u32 4294901760, %v823_v4  ;;  %v8251_v19 = vand.u32 4294901760, %v6821_v0 }
  0x28   :  { %6129 = vmatprep.subr.bf16.mxu1 %v6794_v12  ;;  %6071 = vmatprep.subr.bf16.mxu0 %v8314_v48  ;;  %v6832_v1 = vsub.f32 %v57_v9, %v6824_v40  ;;  %v142_v37 = vsub.f32 %v6809_v62, %v8246_v53  ;;  %v149_v44 = vsub.f32 %v6811_v56, %v8244_v38  ;;  %v8315_v4 = vand.u32 4294901760, %v6555_v29 }
  0x29   :  { %6073 = vmatpush3.bf16.msra.mxu0 %v6813_v22  ;;  %v156_v6 = vsub.f32 %v6815_v20, %v8245_v41  ;;  %v8316_v5 = vand.u32 4294901760, %v6557_v30  ;;  %v8318_v53 = vand.u32 4294901760, %v6660_v45  ;;  %v8320_v29 = vand.u32 4294901760, %v6744_v54 }
  0x2a   :  { %5721 = vmatmul.mubr.f32.gmra.mrb[12].mxu1 %v804_v8  ;;  %v130_v55 = vand.u32 4294901760, %v6832_v1  ;;  %6074 = vmatprep.subr.bf16.mxu0 %v8314_v48  ;;  %v143_v13 = vand.u32 4294901760, %v142_v37  ;;  %v150_v9 = vand.u32 4294901760, %v149_v44  ;;  %v163_v8 = vsub.f32 %v6821_v0, %v8251_v19 }
  0x2b   :  { %5723 = vmatprep.mubr.f32.mxu1 %v814_v59  ;;  %v6854_v38 = vpack.c.bf16 %v8316_v5, %v8315_v4  ;;  %v8317_v59 = vand.u32 4294901760, %v6647_v28  ;;  %v157_v44 = vand.u32 4294901760, %v156_v6  ;;  %v8319_v19 = vand.u32 4294901760, %v6733_v63  ;;  %v8329_v4 = vld [vmem:[#allocation4_spill] sm:$0xff] }
  0x2c   :  { %v131_v41 = vsub.f32 %v6832_v1, %v130_v55  ;;  %v6075_v37 = vpack.c.bf16 %v150_v9, %v143_v13  ;;  %v164_v52 = vand.u32 4294901760, %v163_v8  ;;  %v6132_v5 = vpack.c.bf16 %v6660_v45, %v6647_v28 }
  0x2d   :  { %v6861_v10 = vpack.c.bf16 %v8318_v53, %v8317_v59  ;;  %v6867_v7 = vpack.c.bf16 %v8320_v29, %v8319_v19  ;;  %v8321_v6 = vmov 0.0   ;;  %v6081_v28 = vpack.c.bf16 %v6811_v56, %v6809_v62  ;;  %v8330_v59 = vld [vmem:[#allocation5_spill] sm:$0xff] }
  0x2e   :  { %5724 = vmatmul.mubr.f32.gmra.mrb[14].mxu1 %v824_v2  ;;  %v132_v30 = vand.u32 4294901760, %v131_v41  ;;  %v6078_v53 = vpack.c.bf16 %v164_v52, %v157_v44  ;;  %v6136_v2 = vpack.c.bf16 %v6744_v54, %v6733_v63  ;;  %v6084_v45 = vpack.c.bf16 %v6821_v0, %v6815_v20 }
  0x2f   :  { %5738 = vmatprep.mubr.f32.mxu1 %v6547_v25  ;;  %v8322_v54 = vand.u32 4294901760, %v6809_v62  ;;  %v8323_v63 = vand.u32 4294901760, %v6811_v56  ;;  %v8324_v41 = vand.u32 4294901760, %v6815_v20  ;;  %v8332_v44 = vand.u32 4294901760, %v6564_v32 }
  0x30   :  { %5633 = vmatmul.mubr.f32.vlgmr.msra.gmra.mrb[0].mxu0 %v132_v30  ;;  %v8333_v29 = vand.u32 4294901760, %v6567_v33  ;;  %v8334_v30 = vand.u32 4294901760, %v6574_v36  ;;  %vm2211_vm10 = vcmask 1042434   ;;  %vm2213_vm11 = vcmask 1043459  }
  0x31   :  { %6076 = vmatpush3.bf16.msra.mxu0 %v6075_v37  ;;  %5643 = vmatprep.mubr.msk.f32.mxu0 %vm6422_vm1, %v8321_v6  ;;  %v6093_v52 = vpack.c.bf16 %v8323_v63, %v8322_v54  ;;  %v8331_v37 = vld [vmem:[#allocation6_spill] sm:$0xff]  ;;  %vm2215_vm12 = vcmask 1044484   ;;  %vm2217_vm13 = vcmask 1045509   ;;  %vm2219_vm14 = vcmask 1046534  }
  0x32   :  { %5739 = vmatmul.mubr.f32.vlgmr.msra.gmra.mrb[0].mxu1 %v6549_v26  ;;  %6077 = vmatprep.subr.bf16.mxu0 %v8314_v48  ;;  %vm2221_vm15 = vcmask 1047559   ;;  %vm2224_vm0 = vcmask 130048  }
  0x33   :  { %5741 = vmatprep.mubr.f32.mxu1 %v6552_v27  ;;  %6131 = vmatpush3.bf16.msra.mxu1 %v6794_v12  ;;  %v1760_v12 = vlaneseq }
  0x34   :  { %6133 = vmatprep.subr.bf16.mxu1 %v6132_v5 }
  0x35   :  { %6079 = vmatpush3.bf16.msra.mxu0 %v6078_v53  ;;  %v6923_v62 = vshrl.u32 %v1760_v12, 7  ;;  %v8336_v53 = vand.u32 4294901760, %v6594_v47 }
  0x36   :  { %5742 = vmatmul.mubr.f32.gmra.mrb[2].mxu1 %v6569_v34  ;;  %6080 = vmatprep.subr.bf16.mxu0 %v8314_v48 }
  0x37   :  { %5744 = vmatprep.mubr.f32.mxu1 %v6578_v39  ;;  %6135 = vmatpush3.bf16.msra.mxu1 %v6132_v5  ;;  %8326 = vst [vmem:[#allocation7_spill] sm:$0xff] %v6923_v62  ;;  %v6931_v56 = vsub.s32 0, %v6923_v62  ;;  %v8335_v5 = vand.u32 4294901760, %v6583_v42 }
  0x38   :  { %6137 = vmatprep.subr.bf16.mxu1 %v6136_v2  ;;  %5644 = vmatmul.mubr.f32.vlgmr.msra.gmra.mrb[0].mxu0 %v6824_v40 }
  0x39   :  { %6082 = vmatpush3.bf16.msra.mxu0 %v6081_v28  ;;  %5654 = vmatprep.mubr.msk.f32.mxu0 %vm6422_vm1, %v8321_v6 }
  0x3a   :  { %5745 = vmatmul.mubr.f32.gmra.mrb[4].mxu1 %v6604_v51  ;;  %6083 = vmatprep.subr.bf16.mxu0 %v8314_v48 }
  0x3b   :  { %5747 = vmatprep.mubr.f32.mxu1 %v6632_v15  ;;  %6139 = vmatpush3.bf16.msra.mxu1 %v6136_v2 }
  0x3c   :  { %6141 = vmatprep.subr.bf16.mxu1 %v6524_v17 }
  0x3d   :  { %6085 = vmatpush3.bf16.msra.mxu0 %v6084_v45 }
  0x3e   :  { %5748 = vmatmul.mubr.f32.gmra.mrb[6].mxu1 %v6641_v21  ;;  %6086 = vmatprep.subr.bf16.mxu0 %v8314_v48 }
  0x3f   :  { %5750 = vmatprep.mubr.f32.mxu1 %v6655_v43 }
  0x40   :  { %5655 = vmatmul.mubr.f32.vlgmr.msra.gmra.mrb[0].mxu0 %v6832_v1  ;;  %v8325_v1 = vand.u32 4294901760, %v6821_v0  ;;  %v1861_v0 = vld [vmem:[%s8207_s2] sm:$0xff]  ;;  %s6426_s2 = smov 96  }
  0x41   :  { %6088 = vmatpush3.bf16.msra.mxu0 %v6807_v3  ;;  %5665 = vmatprep.mubr.msk.f32.mxu0 %vm6422_vm1, %v8321_v6  ;;  %vm1862_vm3 = vcmp.eq.f32.partialorder %v1861_v0, 0.0 }
  0x42   :  { %5751 = vmatmul.mubr.f32.gmra.mrb[8].mxu1 %v6680_v57  ;;  %6089 = vmatprep.subr.bf16.mxu0 %v8314_v48  ;;  %v6096_v19 = vpack.c.bf16 %v8325_v1, %v8324_v41  ;;  %v6935_v20 = vsel %vm1862_vm3, -1e+10, %v8321_v6  ;;  %vm3529_vm3 = vcmask 261312  }
  0x43   :  { %5753 = vmatprep.mubr.f32.mxu1 %v6682_v58  ;;  %v1954_v13 = vrot.slane %v6935_v20, %v6931_v56 }
  0x45   :  { %6091 = vmatpush3.bf16.msra.mxu0 %v6813_v22  ;;  %1960 = vbcast.lane.b32.xlu1 %v1954_v13, 264 }
  0x46   :  { %5754 = vmatmul.mubr.f32.gmra.mrb[10].mxu1 %v6707_v49  ;;  %6092 = vmatprep.subr.bf16.mxu0 %v8314_v48 }
  0x47   :  { %5756 = vmatprep.mubr.f32.mxu1 %v6718_v60  ;;  %1956 = vbcast.lane.b32.xlu0 %v1954_v13, 256 }
  0x48   :  { %5666 = vmatmul.mubr.f32.vlgmr.msra.gmra.mrb[0].mxu0 %v130_v55  ;;  %v6938_v55 = vsub.s32 1, %v6923_v62 }
  0x49   :  { %6094 = vmatpush3.bf16.msra.mxu0 %v6093_v52  ;;  %5676 = vmatprep.mubr.msk.f32.mxu0 %vm6422_vm1, %v8321_v6 }
  0x4a   :  { %5757 = vmatmul.mubr.f32.gmra.mrb[12].mxu1 %v6739_v31  ;;  %6095 = vmatprep.subr.bf16.mxu0 %v8314_v48  ;;  %v1965_v9 = vrot.slane %v6935_v20, %v6938_v55 }
  0x4b   :  { %5759 = vmatprep.mubr.f32.mxu1 %v6762_v14 }
  0x4c   :  { %1967 = vbcast.lane.b32.xlu1 %v1965_v9, 256 }
  0x4d   :  { %6097 = vmatpush3.bf16.msra.mxu0 %v6096_v19 }
  0x4e   :  { %5760 = vmatmul.mubr.f32.gmra.mrb[14].mxu1 %v6781_v50  ;;  %6098 = vmatprep.subr.bf16.mxu0 %v8314_v48 }
  0x4f   :  { %5774 = vmatprep.mubr.f32.mxu1 %v6564_v32  ;;  %v8337_v32 = vand.u32 4294901760, %v6621_v61 }
  0x50   :  { %5677 = vmatmul.mubr.f32.vlgmr.msra.gmra.mrb[0].mxu0 %v6824_v40  ;;  %1971 = vbcast.lane.b32.xlu1 %v1965_v9, 264 }
  0x51   :  { %6100 = vmatpush3.bf16.msra.mxu0 %v6807_v3  ;;  %5687 = vmatprep.mubr.msk.f32.mxu0 %vm6422_vm1, %v8321_v6  ;;  %v6955_v3 = vsub.s32 2, %v6923_v62 }
  0x52   :  { %5775 = vmatmul.mubr.f32.vlgmr.msra.gmra.mrb[0].mxu1 %v6567_v33  ;;  %6101 = vmatprep.subr.bf16.mxu0 %v8314_v48  ;;  %v8338_v33 = vand.u32 4294901760, %v6653_v35 }
  0x53   :  { %5777 = vmatprep.mubr.f32.mxu1 %v6574_v36  ;;  %6143 = vmatpush3.bf16.msra.mxu1 %v6524_v17  ;;  %v1976_v8 = vrot.slane %v6935_v20, %v6955_v3  ;;  %v8339_v36 = vand.u32 4294901760, %v6663_v46 }
  0x54   :  { %6145 = vmatprep.subr.bf16.mxu1 %v6539_v23 }
  0x55   :  { %6103 = vmatpush3.bf16.msra.mxu0 %v6813_v22  ;;  %1978 = vbcast.lane.b32.xlu0 %v1976_v8, 256  ;;  %v8327_v22 = vld [vmem:[#allocation2_spill] sm:$0xff] }
  0x56   :  { %5778 = vmatmul.mubr.f32.gmra.mrb[2].mxu1 %v6583_v42  ;;  %6176 = vmatprep.subr.bf16.mxu0 %v8314_v48  ;;  %v8340_v42 = vand.u32 4294901760, %v6673_v11 }
  0x57   :  { %5780 = vmatprep.mubr.f32.mxu1 %v6594_v47  ;;  %6147 = vmatpush3.bf16.msra.mxu1 %v6539_v23  ;;  %v8341_v47 = vand.u32 4294901760, %v6699_v16 }
  0x58   :  { %6149 = vmatprep.subr.bf16.mxu1 %v6545_v24  ;;  %5688 = vmatmul.mubr.f32.vlgmr.msra.gmra.mrb[0].mxu0 %v6824_v40  ;;  %v8328_v40 = vld [vmem:[#allocation3_spill] sm:$0xff] }
  0x59   :  { %5914 = vmatprep.mubr.msk.f32.mxu0 %vm6422_vm1, %v8321_v6  ;;  %1982 = vbcast.lane.b32.xlu1 %v1976_v8, 264 }
  0x5a   :  { %5781 = vmatmul.mubr.f32.gmra.mrb[4].mxu1 %v6621_v61  ;;  %v8343_v61 = vand.u32 4294901760, %v8327_v22 }
  0x5b   :  { %5783 = vmatprep.mubr.f32.mxu1 %v6653_v35  ;;  %6151 = vmatpush3.bf16.msra.mxu1 %v6545_v24  ;;  %v8344_v35 = vand.u32 4294901760, %v8328_v40 }
  0x5c   :  { %6153 = vmatprep.subr.bf16.mxu1 %v6854_v38 }
  0x5e   :  { %5784 = vmatmul.mubr.f32.gmra.mrb[6].mxu1 %v6663_v46  ;;  %v8346_v46 = vand.u32 4294901760, %v8330_v59 }
  0x5f   :  { %5786 = vmatprep.mubr.f32.mxu1 %v6673_v11  ;;  %v8347_v11 = vand.u32 4294901760, %v8331_v37 }
  0x62   :  { %5787 = vmatmul.mubr.f32.gmra.mrb[8].mxu1 %v6699_v16 }
  0x63   :  { %5789 = vmatprep.mubr.f32.mxu1 %v6702_v18 }
  0x66   :  { %5790 = vmatmul.mubr.f32.gmra.mrb[10].mxu1 %v8327_v22 }
  0x67   :  { %5792 = vmatprep.mubr.f32.mxu1 %v8328_v40 }
  0x6a   :  { %5793 = vmatmul.mubr.f32.gmra.mrb[12].mxu1 %v8329_v4 }
  0x6b   :  { %5795 = vmatprep.mubr.f32.mxu1 %v8330_v59 }
  0x6e   :  { %5796 = vmatmul.mubr.f32.gmra.mrb[14].mxu1 %v8331_v37 }
  0x6f   :  { %5810 = vmatprep.mubr.f32.mxu1 %v8332_v44 }
  0x72   :  { %5811 = vmatmul.mubr.f32.vlgmr.msra.gmra.mrb[0].mxu1 %v8333_v29 }
  0x73   :  { %5813 = vmatprep.mubr.f32.mxu1 %v8334_v30  ;;  %6155 = vmatpush3.bf16.msra.mxu1 %v6854_v38 }
  0x74   :  { %6157 = vmatprep.subr.bf16.mxu1 %v6861_v10 }
  0x76   :  { %5814 = vmatmul.mubr.f32.gmra.mrb[2].mxu1 %v8335_v5 }
  0x77   :  { %5816 = vmatprep.mubr.f32.mxu1 %v8336_v53  ;;  %6159 = vmatpush3.bf16.msra.mxu1 %v6861_v10  ;;  %v8342_v10 = vand.u32 4294901760, %v6702_v18 }
  0x78   :  { %6161 = vmatprep.subr.bf16.mxu1 %v6867_v7 }
  0x7a   :  { %5817 = vmatmul.mubr.f32.gmra.mrb[4].mxu1 %v8337_v32 }
  0x7b   :  { %5819 = vmatprep.mubr.f32.mxu1 %v8338_v33  ;;  %6163 = vmatpush3.bf16.msra.mxu1 %v6867_v7  ;;  %v8345_v7 = vand.u32 4294901760, %v8329_v4 }
  0x7c   :  { %6165 = vmatprep.subr.bf16.mxu1 %v6524_v17 }
  0x7e   :  { %5820 = vmatmul.mubr.f32.gmra.mrb[6].mxu1 %v8339_v36 }
  0x7f   :  { %5822 = vmatprep.mubr.f32.mxu1 %v8340_v42 }
  0x82   :  { %5823 = vmatmul.mubr.f32.gmra.mrb[8].mxu1 %v8341_v47 }
  0x83   :  { %5825 = vmatprep.mubr.f32.mxu1 %v8342_v10 }
  0x86   :  { %5826 = vmatmul.mubr.f32.gmra.mrb[10].mxu1 %v8343_v61 }
  0x87   :  { %5828 = vmatprep.mubr.f32.mxu1 %v8344_v35 }
  0x8a   :  { %5829 = vmatmul.mubr.f32.gmra.mrb[12].mxu1 %v8345_v7 }
  0x8b   :  { %5831 = vmatprep.mubr.f32.mxu1 %v8346_v46 }
  0x8e   :  { %5832 = vmatmul.mubr.f32.gmra.mrb[14].mxu1 %v8347_v11 }
  0x8f   :  { %5846 = vmatprep.mubr.f32.mxu1 %v6547_v25 }
  0x92   :  { %5847 = vmatmul.mubr.f32.vlgmr.msra.gmra.mrb[0].mxu1 %v6549_v26 }
  0x93   :  { %5849 = vmatprep.mubr.f32.mxu1 %v6552_v27  ;;  %6167 = vmatpush3.bf16.msra.mxu1 %v6524_v17  ;;  %v7040_v17 = vsub.s32 3, %v6923_v62 }
  0x94   :  { %6169 = vmatprep.subr.bf16.mxu1 %v6539_v23 }
  0x96   :  { %5850 = vmatmul.mubr.f32.gmra.mrb[2].mxu1 %v6569_v34 }
  0x97   :  { %5852 = vmatprep.mubr.f32.mxu1 %v6578_v39  ;;  %6171 = vmatpush3.bf16.msra.mxu1 %v6539_v23  ;;  %v7043_v23 = vsub.s32 4, %v6923_v62 }
  0x98   :  { %6173 = vmatprep.subr.bf16.mxu1 %v6545_v24 }
  0x99   :  { %v1998_v16 = vrot.slane %v6935_v20, %v7043_v23 }
  0x9a   :  { %5853 = vmatmul.mubr.f32.gmra.mrb[4].mxu1 %v6604_v51 }
  0x9b   :  { %5855 = vmatprep.mubr.f32.mxu1 %v6632_v15  ;;  %6175 = vmatpush3.bf16.msra.mxu1 %v6545_v24  ;;  %v1987_v24 = vrot.slane %v6935_v20, %v7040_v17 }
  0x9d   :  { %1993 = vbcast.lane.b32.xlu1 %v1987_v24, 264  ;;  %1989 = vbcast.lane.b32.xlu0 %v1987_v24, 256 }
  0x9e   :  { %5856 = vmatmul.mubr.f32.gmra.mrb[6].mxu1 %v6641_v21 }
  0x9f   :  { %5858 = vmatprep.mubr.f32.mxu1 %v6655_v43 }
  0xa1   :  { %2004 = vbcast.lane.b32.xlu1 %v1998_v16, 264  ;;  %2000 = vbcast.lane.b32.xlu0 %v1998_v16, 256 }
  0xa2   :  { %5859 = vmatmul.mubr.f32.gmra.mrb[8].mxu1 %v6680_v57 }
  0xa3   :  { %5861 = vmatprep.mubr.f32.mxu1 %v6682_v58 }
  0xa6   :  { %5862 = vmatmul.mubr.f32.gmra.mrb[10].mxu1 %v6707_v49 }
  0xa7   :  { %5864 = vmatprep.mubr.f32.mxu1 %v6718_v60 }
  0xaa   :  { %5865 = vmatmul.mubr.f32.gmra.mrb[12].mxu1 %v6739_v31 }
  0xab   :  { %5867 = vmatprep.mubr.f32.mxu1 %v6762_v14 }
  0xae   :  { %5868 = vmatmul.mubr.f32.gmra.mrb[14].mxu1 %v6781_v50 }
  0xaf   :  { %5882 = vmatprep.mubr.f32.mxu1 %v6547_v25  ;;  %v7052_v25 = vsub.s32 5, %v6923_v62 }
  0xb2   :  { %5883 = vmatmul.mubr.f32.vlgmr.msra.gmra.mrb[0].mxu1 %v6549_v26  ;;  %v2009_v26 = vrot.slane %v6935_v20, %v7052_v25 }
  0xb3   :  { %5885 = vmatprep.mubr.f32.mxu1 %v6552_v27  ;;  %v7059_v27 = vsub.s32 6, %v6923_v62 }
  0xb4   :  { %2015 = vbcast.lane.b32.xlu1 %v2009_v26, 264  ;;  %2011 = vbcast.lane.b32.xlu0 %v2009_v26, 256 }
  0xb5   :  { %8348 = vst [vmem:[#allocation2_spill] sm:$0xff] %v7059_v27  ;;  %v2020_v18 = vrot.slane %v6935_v20, %v7059_v27 }
  0xb6   :  { %5886 = vmatmul.mubr.f32.gmra.mrb[2].mxu1 %v6569_v34  ;;  %v7066_v34 = vsub.s32 7, %v6923_v62 }
  0xb7   :  { %5888 = vmatprep.mubr.f32.mxu1 %v6578_v39 }
  0xb8   :  { %8349 = vst [vmem:[#allocation3_spill] sm:$0xff] %v7066_v34  ;;  %2026 = vbcast.lane.b32.xlu1 %v2020_v18, 264  ;;  %v2031_v39 = vrot.slane %v6935_v20, %v7066_v34  ;;  %2022 = vbcast.lane.b32.xlu0 %v2020_v18, 256 }
  0xba   :  { %5889 = vmatmul.mubr.f32.gmra.mrb[4].mxu1 %v6604_v51 }
  0xbb   :  { %5891 = vmatprep.mubr.f32.mxu1 %v6632_v15 }
  0xbc   :  { %2037 = vbcast.lane.b32.xlu1 %v2031_v39, 264  ;;  %2033 = vbcast.lane.b32.xlu0 %v2031_v39, 256 }
  0xbe   :  { %5892 = vmatmul.mubr.f32.gmra.mrb[6].mxu1 %v6641_v21  ;;  %v6424_v21 = vmov 1966171168  }
  0xbf   :  { %5894 = vmatprep.mubr.f32.mxu1 %v6655_v43  ;;  %v1758_v43 = vunpack.c.l.s4 %v6424_v21 }
  0xc1   :  { %v1759_v38 = vunpack.c.0.s8 %v1758_v43 }
  0xc2   :  { %5895 = vmatmul.mubr.f32.gmra.mrb[8].mxu1 %v6680_v57 }
  0xc3   :  { %5897 = vmatprep.mubr.f32.mxu1 %v6682_v58  ;;  %v1762_v57 = vsub.s32 %v1759_v38, %v6923_v62  ;;  %v7081_v58 = vand.u32 127, %v1760_v12 }
  0xc5   :  { %8350 = vst [vmem:[#allocation4_spill] sm:$0xff] %v7081_v58  ;;  %vm2634_vm4 = vcmp.ge.s32.totalorder %v7081_v58, 16  ;;  %vm2635_vm5 = vcmp.lt.s32.totalorder %v7081_v58, 32  ;;  %vm1867_vm6 = vcmp.lt.s32.totalorder %v7081_v58, 16 }
  0xc6   :  { %5898 = vmatmul.mubr.f32.gmra.mrb[10].mxu1 %v6707_v49  ;;  %vm2636_vm7 = vmand %vm2634_vm4, %vm2635_vm5 }
  0xc7   :  { %5900 = vmatprep.mubr.f32.mxu1 %v6718_v60  ;;  %v7091_v28 = vsel %vm2636_vm7, 1.0, %v8321_v6  ;;  %vm4750_vm7 = vcmask 64512  }
  0xc8   :  { %8352 = vst [vmem:[#allocation6_spill] sm:$0xff] %v7091_v28 }
  0xca   :  { %5901 = vmatmul.mubr.f32.gmra.mrb[12].mxu1 %v6739_v31  ;;  %v7088_v31 = vsel %vm1867_vm6, 1.0, %v8321_v6 }
  0xcb   :  { %5903 = vmatprep.mubr.f32.mxu1 %v6762_v14  ;;  %8351 = vst [vmem:[#allocation5_spill] sm:$0xff] %v7088_v31 }
  0xce   :  { %5904 = vmatmul.mubr.f32.gmra.mrb[14].mxu1 %v6781_v50 }
 0x12b   :  { %v540_v51 = vpop.f32.mrb[0].mxu0 }
 0x12c   :  { %v5689_v15 = vpop.f32.mrb[1].mxu0  ;;  %v1763_v2 = vrot.slane %v540_v51, %v1762_v57  ;;  %v1756_v52 = vcombine.high %v540_v51, %v540_v51 }
 0x12e   :  { %v1771_v60 = vcombine.high %v1763_v2, %v1763_v2  ;;  %v1779_v49 = vrot.slane %v1763_v2, %v1762_v57  ;;  %v1770_v59 = vrot.slane %v1756_v52, %v1762_v57 }
 0x130   :  { %v1808_v50 = vrot.slane %v1779_v49, %v6931_v56  ;;  %v1793_v14 = vrot.slane %v1771_v60, %v1762_v57  ;;  %v1801_v0 = vcombine.high %v1779_v49, %v1779_v49  ;;  %v1772_v10 = vcombine.high %v1770_v59, %v1770_v59 }
 0x131   :  { %v1786_v35 = vrot.slane %v1770_v59, %v1762_v57 }
 0x132   :  { %v1812_v41 = vrot.slane %v1793_v14, %v6931_v56  ;;  %v1816_v37 = vrot.slane %v1801_v0, %v6931_v56  ;;  %v1803_v29 = vcombine.high %v1793_v14, %v1793_v14  ;;  %v1800_v15 = vrot.slane %v1772_v10, %v1762_v57 }
 0x133   :  { %v1824_v51 = vrot.slane %v1786_v35, %v6931_v56 }
 0x134   :  { %v1820_v61 = vrot.slane %v1803_v29, %v6931_v56  ;;  %v1828_v57 = vrot.slane %v1800_v15, %v6931_v56 }
 0x185   :  { %v7093_v45 = vpop.f32.mrb[0].mxu1 }
 0x186   :  { %8353 = vst [vmem:[#allocation8_spill] sm:$0xff] %v7093_v45  ;;  %v1846_v54 = vmul.f32 %v7093_v45, %v1808_v50  ;;  %v7096_v63 = vpop.f32.mrb[1].mxu1 }
 0x187   :  { %8354 = vst [vmem:[#allocation9_spill] sm:$0xff] %v7096_v63  ;;  %v1845_v12 = vmul.f32 %v1808_v50, %v7096_v63  ;;  %v2139_v63 = vadd.s32 4294967288, %v7081_v58 }
 0x188   :  { %v2639_v1 = vmul.f32 %v7091_v28, %v1846_v54  ;;  %v1871_v19 = vmul.f32 %v7088_v31, %v1846_v54  ;;  %v1802_v54 = vcombine.high %v1786_v35, %v1786_v35 }
 0x189   :  { %v7102_v20 = vpop.f32.mrb[2].mxu1  ;;  %v1870_v40 = vmul.f32 %v7088_v31, %v1845_v12  ;;  %v2638_v5 = vmul.f32 %v7091_v28, %v1845_v12 }
 0x18a   :  { %8355 = vst [vmem:[#allocation10_spill] sm:$0xff] %v7102_v20  ;;  %v1848_v13 = vmul.f32 %v7102_v20, %v1812_v41  ;;  %v7105_v9 = vpop.f32.mrb[3].mxu1  ;;  %v2657_v8 = vsel %vm55_vm2, %v2639_v1, 0.0  ;;  %v1889_v22 = vsel %vm55_vm2, %v1871_v19, 0.0 }
 0x18b   :  { %8356 = vst [vmem:[#allocation11_spill] sm:$0xff] %v7105_v9  ;;  %v1847_v4 = vmul.f32 %v1812_v41, %v7105_v9  ;;  %2658 = vadd.xlane.f32.xlu1 %v2657_v8  ;;  %1890 = vadd.xlane.f32.xlu0 %v1889_v22  ;;  %v1886_v33 = vsel %vm55_vm2, %v1870_v40, 0.0  ;;  %v2654_v16 = vsel %vm55_vm2, %v2638_v5, 0.0  ;;  %v1832_v22 = vrot.slane %v1802_v54, %v6931_v56 }
 0x18c   :  { %v1873_v44 = vmul.f32 %v7088_v31, %v1848_v13  ;;  %v2641_v42 = vmul.f32 %v7091_v28, %v1848_v13  ;;  %v1804_v40 = vcombine.high %v1800_v15, %v1800_v15 }
 0x18d   :  { %v7113_v30 = vpop.f32.mrb[4].mxu1  ;;  %v2640_v46 = vmul.f32 %v7091_v28, %v1847_v4  ;;  %v1872_v18 = vmul.f32 %v7088_v31, %v1847_v4  ;;  %v6425_v4 = vmov 0  }
 0x18e   :  { %8357 = vst [vmem:[#allocation12_spill] sm:$0xff] %v7113_v30  ;;  %v1850_v53 = vmul.f32 %v7113_v30, %v1816_v37  ;;  %v7117_v32 = vpop.f32.mrb[5].mxu1  ;;  %v1895_v36 = vsel %vm55_vm2, %v1873_v44, 0.0  ;;  %v2663_v26 = vsel %vm55_vm2, %v2641_v42, 0.0  ;;  %6349 = vset.pattern.permute.xlu0 %v6425_v4  ;;  %6348 = vset.pattern.permute.xlu1 %v6425_v4  ;;  %v1836_v42 = vrot.slane %v1804_v40, %v6931_v56 }
 0x18f   :  { %8358 = vst [vmem:[#allocation13_spill] sm:$0xff] %v7117_v32  ;;  %v1849_v47 = vmul.f32 %v1816_v37, %v7117_v32  ;;  %1887 = vadd.xlane.f32.xlu0 %v1886_v33  ;;  %1896 = vadd.xlane.f32.xlu1 %v1895_v36  ;;  %v2660_v43 = vsel %vm55_vm2, %v2640_v46, 0.0  ;;  %v1892_v60 = vsel %vm55_vm2, %v1872_v18, 0.0 }
 0x190   :  { %v1875_v50 = vmul.f32 %v7088_v31, %v1850_v53  ;;  %v2643_v12 = vmul.f32 %v7091_v28, %v1850_v53 }
 0x191   :  { %v7124_v7 = vpop.f32.mrb[6].mxu1  ;;  %v1874_v49 = vmul.f32 %v7088_v31, %v1849_v47  ;;  %v2642_v13 = vmul.f32 %v7091_v28, %v1849_v47 }
 0x192   :  { %8359 = vst [vmem:[#allocation14_spill] sm:$0xff] %v7124_v7  ;;  %v1852_v11 = vmul.f32 %v7124_v7, %v1820_v61  ;;  %v7128_v24 = vpop.f32.mrb[7].mxu1  ;;  %v1901_v0 = vsel %vm55_vm2, %v1875_v50, 0.0  ;;  %v2669_v37 = vsel %vm55_vm2, %v2643_v12, 0.0 }
 0x193   :  { %8360 = vst [vmem:[#allocation15_spill] sm:$0xff] %v7128_v24  ;;  %v1851_v39 = vmul.f32 %v1820_v61, %v7128_v24  ;;  %2655 = vadd.xlane.f32.xlu0 %v2654_v16  ;;  %2664 = vadd.xlane.f32.xlu1 %v2663_v26  ;;  %v1898_v19 = vsel %vm55_vm2, %v1874_v49, 0.0  ;;  %v2666_v5 = vsel %vm55_vm2, %v2642_v13, 0.0 }
 0x194   :  { %v1877_v53 = vmul.f32 %v7088_v31, %v1852_v11  ;;  %v2645_v10 = vmul.f32 %v7091_v28, %v1852_v11 }
 0x195   :  { %v7135_v21 = vpop.f32.mrb[8].mxu1  ;;  %v1876_v33 = vmul.f32 %v7088_v31, %v1851_v39  ;;  %v2644_v26 = vmul.f32 %v7091_v28, %v1851_v39 }
 0x196   :  { %8361 = vst [vmem:[#allocation16_spill] sm:$0xff] %v7135_v21  ;;  %v1854_v38 = vmul.f32 %v7135_v21, %v1824_v51  ;;  %v7139_v2 = vpop.f32.mrb[9].mxu1  ;;  %v1907_v46 = vsel %vm55_vm2, %v1877_v53, 0.0 }
 0x197   :  { %8362 = vst [vmem:[#allocation17_spill] sm:$0xff] %v7139_v2  ;;  %v1853_v14 = vmul.f32 %v1824_v51, %v7139_v2  ;;  %2661 = vadd.xlane.f32.xlu0 %v2660_v43  ;;  %1893 = vadd.xlane.f32.xlu1 %v1892_v60  ;;  %v1904_v16 = vsel %vm55_vm2, %v1876_v33, 0.0  ;;  %v2675_v51 = vsel %vm55_vm2, %v2645_v10, 0.0  ;;  %v2672_v15 = vsel %vm55_vm2, %v2644_v26, 0.0 }
 0x198   :  { %v1879_v11 = vmul.f32 %v7088_v31, %v1854_v38  ;;  %v2647_v39 = vmul.f32 %v7091_v28, %v1854_v38 }
 0x199   :  { %v7146_v52 = vpop.f32.mrb[10].mxu1  ;;  %v1878_v43 = vmul.f32 %v7088_v31, %v1853_v14  ;;  %v2646_v50 = vmul.f32 %v7091_v28, %v1853_v14 }
 0x19a   :  { %8363 = vst [vmem:[#allocation18_spill] sm:$0xff] %v7146_v52  ;;  %v1856_v41 = vmul.f32 %v7146_v52, %v1828_v57  ;;  %v7150_v1 = vpop.f32.mrb[11].mxu1  ;;  %v1913_v60 = vsel %vm55_vm2, %v1879_v11, 0.0  ;;  %v1961_v11 = vpop.permute.xlu1 %1960 }
 0x19b   :  { %8364 = vst [vmem:[#allocation19_spill] sm:$0xff] %v7150_v1  ;;  %v1855_v8 = vmul.f32 %v1828_v57, %v7150_v1  ;;  %1899 = vadd.xlane.f32.xlu0 %v1898_v19  ;;  %1902 = vadd.xlane.f32.xlu1 %v1901_v0  ;;  %v1910_v49 = vsel %vm55_vm2, %v1878_v43, 0.0  ;;  %v2681_v57 = vsel %vm55_vm2, %v2647_v39, 0.0  ;;  %v2678_v54 = vsel %vm55_vm2, %v2646_v50, 0.0 }
 0x19c   :  { %v1881_v12 = vmul.f32 %v7088_v31, %v1856_v41  ;;  %v2649_v38 = vmul.f32 %v7091_v28, %v1856_v41 }
 0x19d   :  { %v7157_v59 = vpop.f32.mrb[12].mxu1  ;;  %v1880_v19 = vmul.f32 %v7088_v31, %v1855_v8  ;;  %v2648_v14 = vmul.f32 %v7091_v28, %v1855_v8 }
 0x19e   :  { %8365 = vst [vmem:[#allocation20_spill] sm:$0xff] %v7157_v59  ;;  %v1858_v44 = vmul.f32 %v7157_v59, %v1832_v22  ;;  %v7161_v29 = vpop.f32.mrb[13].mxu1  ;;  %v1919_v0 = vsel %vm55_vm2, %v1881_v12, 0.0  ;;  %v1968_v43 = vpop.permute.xlu1 %1967 }
 0x19f   :  { %8366 = vst [vmem:[#allocation21_spill] sm:$0xff] %v7161_v29  ;;  %v1857_v36 = vmul.f32 %v1832_v22, %v7161_v29  ;;  %2667 = vadd.xlane.f32.xlu0 %v2666_v5  ;;  %2670 = vadd.xlane.f32.xlu1 %v2669_v37  ;;  %v1916_v13 = vsel %vm55_vm2, %v1880_v19, 0.0  ;;  %v2687_v22 = vsel %vm55_vm2, %v2649_v38, 0.0  ;;  %v2684_v40 = vsel %vm55_vm2, %v2648_v14, 0.0 }
 0x1a0   :  { %v1883_v4 = vmul.f32 %v7088_v31, %v1858_v44  ;;  %v2651_v41 = vmul.f32 %v7091_v28, %v1858_v44 }
 0x1a1   :  { %v7168_v47 = vpop.f32.mrb[14].mxu1  ;;  %v1882_v37 = vmul.f32 %v7088_v31, %v1857_v36  ;;  %v2650_v8 = vmul.f32 %v7091_v28, %v1857_v36 }
 0x1a2   :  { %8367 = vst [vmem:[#allocation22_spill] sm:$0xff] %v7168_v47  ;;  %v1860_v61 = vmul.f32 %v7168_v47, %v1836_v42  ;;  %v7172_v35 = vpop.f32.mrb[15].mxu1  ;;  %v1925_v5 = vsel %vm55_vm2, %v1883_v4, 0.0  ;;  %v2693_v33 = vsel %vm55_vm2, %v2651_v41, 0.0 }
 0x1a3   :  { %8368 = vst [vmem:[#allocation23_spill] sm:$0xff] %v7172_v35  ;;  %v1859_v18 = vmul.f32 %v1836_v42, %v7172_v35  ;;  %1908 = vadd.xlane.f32.xlu1 %v1907_v46  ;;  %1905 = vadd.xlane.f32.xlu0 %v1904_v16  ;;  %v1922_v53 = vsel %vm55_vm2, %v1882_v37, 0.0  ;;  %v2690_v42 = vsel %vm55_vm2, %v2650_v8, 0.0 }
 0x1a4   :  { %v1885_v10 = vmul.f32 %v7088_v31, %v1860_v61  ;;  %v2653_v44 = vmul.f32 %v7091_v28, %v1860_v61 }
 0x1a5   :  { %v1884_v46 = vmul.f32 %v7088_v31, %v1859_v18  ;;  %v2652_v36 = vmul.f32 %v7091_v28, %v1859_v18 }
 0x1a6   :  { %v1931_v16 = vsel %vm55_vm2, %v1885_v10, 0.0 }
 0x1a7   :  { %2676 = vadd.xlane.f32.xlu1 %v2675_v51  ;;  %2673 = vadd.xlane.f32.xlu0 %v2672_v15  ;;  %v1928_v26 = vsel %vm55_vm2, %v1884_v46, 0.0  ;;  %v2699_v51 = vsel %vm55_vm2, %v2653_v44, 0.0  ;;  %v2696_v15 = vsel %vm55_vm2, %v2652_v36, 0.0 }
 0x1ab   :  { %1914 = vadd.xlane.f32.xlu1 %v1913_v60  ;;  %1911 = vadd.xlane.f32.xlu0 %v1910_v49  ;;  %v1972_v60 = vpop.permute.xlu1 %1971  ;;  %v1957_v49 = vpop.permute.xlu0 %1956 }
 0x1af   :  { %2682 = vadd.xlane.f32.xlu1 %v2681_v57  ;;  %2679 = vadd.xlane.f32.xlu0 %v2678_v54  ;;  %v1983_v39 = vpop.permute.xlu1 %1982  ;;  %v1979_v50 = vpop.permute.xlu0 %1978 }
 0x1b3   :  { %1920 = vadd.xlane.f32.xlu1 %v1919_v0  ;;  %1917 = vadd.xlane.f32.xlu0 %v1916_v13  ;;  %v7212_v57 = vpop.permute.xlu1 %1993  ;;  %v7214_v54 = vpop.permute.xlu0 %1989 }
 0x1b7   :  { %2688 = vadd.xlane.f32.xlu1 %v2687_v22  ;;  %2685 = vadd.xlane.f32.xlu0 %v2684_v40  ;;  %v7216_v61 = vpop.permute.xlu1 %2004  ;;  %v7218_v18 = vpop.permute.xlu0 %2000 }
 0x1bb   :  { %1926 = vadd.xlane.f32.xlu1 %v1925_v5  ;;  %1923 = vadd.xlane.f32.xlu0 %v1922_v53  ;;  %v7220_v12 = vpop.permute.xlu1 %2015  ;;  %v7222_v19 = vpop.permute.xlu0 %2011 }
 0x1bf   :  { %2694 = vadd.xlane.f32.xlu1 %v2693_v33  ;;  %2691 = vadd.xlane.f32.xlu0 %v2690_v42  ;;  %v7224_v0 = vpop.permute.xlu1 %2026  ;;  %v7226_v13 = vpop.permute.xlu0 %2022 }
 0x1c3   :  { %1932 = vadd.xlane.f32.xlu1 %v1931_v16  ;;  %1929 = vadd.xlane.f32.xlu0 %v1928_v26  ;;  %v7228_v38 = vpop.permute.xlu1 %2037  ;;  %v7230_v14 = vpop.permute.xlu0 %2033 }
 0x1c7   :  { %2700 = vadd.xlane.f32.xlu1 %v2699_v51  ;;  %2697 = vadd.xlane.f32.xlu0 %v2696_v15 }
 0x218   :  { %v2659_v22 = vpop.xlane.xlu1 %2658  ;;  %v1891_v40 = vpop.xlane.xlu0 %1890 }
 0x219   :  { %v2703_v4 = vmul.f32 0.25, %v2659_v22  ;;  %v1935_v37 = vmul.f32 0.25, %v1891_v40 }
 0x21b   :  { %v7232_v5 = vadd.f32 %v2703_v4, %v1961_v11  ;;  %v7234_v53 = vadd.f32 %v1961_v11, %v1935_v37 }
 0x21c   :  { %v1888_v41 = vpop.xlane.xlu0 %1887  ;;  %v1897_v8 = vpop.xlane.xlu1 %1896 }
 0x21d   :  { %v1934_v33 = vmul.f32 0.25, %v1888_v41  ;;  %2091 = vperm.xlu1 %6348, %v7234_v53   ;;  %2754 = vperm.xlu0 %6349, %v7232_v5   ;;  %v1937_v10 = vmul.f32 0.25, %v1897_v8 }
 0x21f   :  { %v7238_v42 = vadd.f32 %v1957_v49, %v1934_v33  ;;  %v7241_v44 = vadd.f32 %v1972_v60, %v1937_v10 }
 0x220   :  { %v2656_v46 = vpop.xlane.xlu0 %2655  ;;  %v2665_v16 = vpop.xlane.xlu1 %2664 }
 0x221   :  { %v2702_v26 = vmul.f32 0.25, %v2656_v46  ;;  %2088 = vperm.xlu0 %6349, %v7238_v42   ;;  %v2705_v51 = vmul.f32 0.25, %v2665_v16 }
 0x223   :  { %v7243_v36 = vadd.f32 %v2702_v26, %v1957_v49  ;;  %v7247_v40 = vadd.f32 %v2705_v51, %v1972_v60 }
 0x224   :  { %v2662_v15 = vpop.xlane.xlu0 %2661  ;;  %v1894_v11 = vpop.xlane.xlu1 %1893 }
 0x225   :  { %v1936_v22 = vmul.f32 0.25, %v1894_v11  ;;  %2751 = vperm.xlu1 %6348, %v7243_v36   ;;  %2097 = vperm.xlu0 %6349, %v7241_v44   ;;  %v2704_v4 = vmul.f32 0.25, %v2662_v15 }
 0x227   :  { %v7249_v37 = vadd.f32 %v1968_v43, %v1936_v22  ;;  %v7253_v49 = vadd.f32 %v2704_v4, %v1968_v43 }
 0x228   :  { %v1900_v41 = vpop.xlane.xlu0 %1899  ;;  %v1903_v8 = vpop.xlane.xlu1 %1902 }
 0x229   :  { %v1939_v33 = vmul.f32 0.25, %v1903_v8  ;;  %2094 = vperm.xlu1 %6348, %v7249_v37   ;;  %2760 = vperm.xlu0 %6349, %v7247_v40   ;;  %v1938_v10 = vmul.f32 0.25, %v1900_v41 }
 0x22b   :  { %v7255_v46 = vadd.f32 %v1983_v39, %v1939_v33  ;;  %v7259_v60 = vadd.f32 %v1979_v50, %v1938_v10 }
 0x22c   :  { %v2668_v16 = vpop.xlane.xlu0 %2667  ;;  %v2671_v26 = vpop.xlane.xlu1 %2670 }
 0x22d   :  { %v2707_v11 = vmul.f32 0.25, %v2671_v26  ;;  %2757 = vperm.xlu1 %6348, %v7253_v49   ;;  %2103 = vperm.xlu0 %6349, %v7255_v46   ;;  %v2706_v51 = vmul.f32 0.25, %v2668_v16 }
 0x22f   :  { %v7261_v15 = vadd.f32 %v2707_v11, %v1983_v39  ;;  %v7265_v43 = vadd.f32 %v2706_v51, %v1979_v50 }
 0x230   :  { %v1909_v22 = vpop.xlane.xlu1 %1908  ;;  %v1906_v8 = vpop.xlane.xlu0 %1905 }
 0x231   :  { %v1941_v6 = vmul.f32 0.25, %v1909_v22  ;;  %2100 = vperm.xlu1 %6348, %v7259_v60   ;;  %2766 = vperm.xlu0 %6349, %v7261_v15   ;;  %v1940_v41 = vmul.f32 0.25, %v1906_v8 }
 0x233   :  { %v7268_v4 = vadd.f32 %v7212_v57, %v1941_v6  ;;  %v7273_v39 = vadd.f32 %v7214_v54, %v1940_v41 }
 0x234   :  { %v2677_v33 = vpop.xlane.xlu1 %2676  ;;  %v2674_v26 = vpop.xlane.xlu0 %2673 }
 0x235   :  { %v2709_v10 = vmul.f32 0.25, %v2677_v33  ;;  %2763 = vperm.xlu1 %6348, %v7265_v43   ;;  %2109 = vperm.xlu0 %6349, %v7268_v4   ;;  %v2708_v11 = vmul.f32 0.25, %v2674_v26 }
 0x237   :  { %v7276_v16 = vadd.f32 %v2709_v10, %v7212_v57  ;;  %v7281_v6 = vadd.f32 %v2708_v11, %v7214_v54 }
 0x238   :  { %v1915_v50 = vpop.xlane.xlu1 %1914  ;;  %v1912_v51 = vpop.xlane.xlu0 %1911 }
 0x239   :  { %v1943_v22 = vmul.f32 0.25, %v1915_v50  ;;  %2106 = vperm.xlu1 %6348, %v7273_v39   ;;  %2772 = vperm.xlu0 %6349, %v7276_v16   ;;  %v1942_v33 = vmul.f32 0.25, %v1912_v51 }
 0x23b   :  { %v7284_v8 = vadd.f32 %v7216_v61, %v1943_v22  ;;  %v7289_v57 = vadd.f32 %v7218_v18, %v1942_v33 }
 0x23c   :  { %v2683_v41 = vpop.xlane.xlu1 %2682  ;;  %v2680_v31 = vpop.xlane.xlu0 %2679 }
 0x23d   :  { %v2711_v28 = vmul.f32 0.25, %v2683_v41  ;;  %2769 = vperm.xlu1 %6348, %v7281_v6   ;;  %2115 = vperm.xlu0 %6349, %v7284_v8   ;;  %v2710_v10 = vmul.f32 0.25, %v2680_v31 }
 0x23f   :  { %v7292_v26 = vadd.f32 %v2711_v28, %v7216_v61  ;;  %v7297_v51 = vadd.f32 %v2710_v10, %v7218_v18 }
 0x240   :  { %v1921_v54 = vpop.xlane.xlu1 %1920  ;;  %v1918_v11 = vpop.xlane.xlu0 %1917 }
 0x241   :  { %v1945_v50 = vmul.f32 0.25, %v1921_v54  ;;  %2112 = vperm.xlu1 %6348, %v7289_v57   ;;  %2778 = vperm.xlu0 %6349, %v7292_v26   ;;  %v1944_v41 = vmul.f32 0.25, %v1918_v11 }
 0x243   :  { %v7300_v22 = vadd.f32 %v7220_v12, %v1945_v50  ;;  %v7305_v31 = vadd.f32 %v7222_v19, %v1944_v41 }
 0x244   :  { %v2689_v33 = vpop.xlane.xlu1 %2688  ;;  %v2686_v48 = vpop.xlane.xlu0 %2685 }
 0x245   :  { %8369 = vst [vmem:[#allocation24_spill] sm:$0xff] %v7300_v22  ;;  %v2713_v35 = vmul.f32 0.25, %v2689_v33  ;;  %2775 = vperm.xlu1 %6348, %v7297_v51   ;;  %2121 = vperm.xlu0 %6349, %v7300_v22   ;;  %v2712_v61 = vmul.f32 0.25, %v2686_v48 }
 0x247   :  { %v7308_v28 = vadd.f32 %v2713_v35, %v7220_v12  ;;  %v7313_v11 = vadd.f32 %v2712_v61, %v7222_v19 }
 0x248   :  { %v1927_v18 = vpop.xlane.xlu1 %1926  ;;  %v1924_v10 = vpop.xlane.xlu0 %1923 }
 0x249   :  { %8370 = vst [vmem:[#allocation25_spill] sm:$0xff] %v7308_v28  ;;  %v1947_v54 = vmul.f32 0.25, %v1927_v18  ;;  %2118 = vperm.xlu1 %6348, %v7305_v31   ;;  %2784 = vperm.xlu0 %6349, %v7308_v28   ;;  %8371 = vst [vmem:[#allocation26_spill] sm:$0xff] %v7313_v11  ;;  %v1946_v33 = vmul.f32 0.25, %v1924_v10 }
 0x24b   :  { %v7316_v50 = vadd.f32 %v7224_v0, %v1947_v54  ;;  %v7321_v48 = vadd.f32 %v7226_v13, %v1946_v33 }
 0x24c   :  { %v2695_v41 = vpop.xlane.xlu1 %2694  ;;  %v2692_v47 = vpop.xlane.xlu0 %2691 }
 0x24d   :  { %8372 = vst [vmem:[#allocation27_spill] sm:$0xff] %v7316_v50  ;;  %v2715_v29 = vmul.f32 0.25, %v2695_v41  ;;  %2781 = vperm.xlu1 %6348, %v7313_v11   ;;  %2127 = vperm.xlu0 %6349, %v7316_v50   ;;  %8373 = vst [vmem:[#allocation28_spill] sm:$0xff] %v7321_v48  ;;  %v2714_v12 = vmul.f32 0.25, %v2692_v47 }
 0x24f   :  { %v7324_v35 = vadd.f32 %v2715_v29, %v7224_v0  ;;  %v7329_v10 = vadd.f32 %v2714_v12, %v7226_v13 }
 0x250   :  { %v1933_v19 = vpop.xlane.xlu1 %1932  ;;  %v1930_v61 = vpop.xlane.xlu0 %1929 }
 0x251   :  { %8374 = vst [vmem:[#allocation29_spill] sm:$0xff] %v7324_v35  ;;  %v1949_v18 = vmul.f32 0.25, %v1933_v19  ;;  %2124 = vperm.xlu1 %6348, %v7321_v48   ;;  %2790 = vperm.xlu0 %6349, %v7324_v35   ;;  %8375 = vst [vmem:[#allocation30_spill] sm:$0xff] %v7329_v10  ;;  %v1948_v41 = vmul.f32 0.25, %v1930_v61 }
 0x253   :  { %v7332_v54 = vadd.f32 %v7228_v38, %v1949_v18  ;;  %v7337_v29 = vadd.f32 %v7230_v14, %v1948_v41 }
 0x254   :  { %v2701_v33 = vpop.xlane.xlu1 %2700  ;;  %v2698_v59 = vpop.xlane.xlu0 %2697 }
 0x255   :  { %8376 = vst [vmem:[#allocation31_spill] sm:$0xff] %v7332_v54  ;;  %v2717_v1 = vmul.f32 0.25, %v2701_v33  ;;  %2787 = vperm.xlu1 %6348, %v7329_v10   ;;  %2133 = vperm.xlu0 %6349, %v7332_v54   ;;  %8377 = vst [vmem:[#allocation32_spill] sm:$0xff] %v7337_v29  ;;  %v2716_v0 = vmul.f32 0.25, %v2698_v59  ;;  %v7365_v54 = vsub.s32 %v7081_v58, %v6923_v62 }
 0x257   :  { %v7340_v47 = vadd.f32 %v2717_v1, %v7228_v38  ;;  %v7345_v13 = vadd.f32 %v2716_v0, %v7230_v14 }
 0x259   :  { %8378 = vst [vmem:[#allocation33_spill] sm:$0xff] %v7340_v47  ;;  %2796 = vperm.xlu0 %6349, %v7340_v47   ;;  %2130 = vperm.xlu1 %6348, %v7337_v29   ;;  %8379 = vst [vmem:[#allocation34_spill] sm:$0xff] %v7345_v13  ;;  %v7368_v29 = vsub.s32 %v2139_v63, %v6923_v62 }
 0x25d   :  { %2793 = vperm.xlu1 %6348, %v7345_v13  }
 0x29c   :  { %v2755_v12 = vpop.permute.xlu0 %2754  ;;  %v2092_v19 = vpop.permute.xlu1 %2091 }
 0x29d   :  { %v2143_v11 = vrot.slane %v2092_v19, %v7368_v29  ;;  %v2805_v63 = vrot.slane %v2755_v12, %v7368_v29 }
 0x2a0   :  { %v2089_v61 = vpop.permute.xlu0 %2088 }
 0x2a1   :  { %v2138_v50 = vrot.slane %v2089_v61, %v7365_v54 }
 0x2a4   :  { %v2752_v18 = vpop.permute.xlu1 %2751  ;;  %v2098_v33 = vpop.permute.xlu0 %2097 }
 0x2a5   :  { %v2801_v48 = vrot.slane %v2752_v18, %v7365_v54  ;;  %v2153_v28 = vrot.slane %v2098_v33, %v7368_v29  ;;  %v2145_v33 = vsel %vm2144_vm8, %v2143_v11, %v2138_v50 }
 0x2a7   :  { %v2806_v19 = vsel %vm2144_vm8, %v2805_v63, %v2801_v48 }
 0x2a8   :  { %v2095_v41 = vpop.permute.xlu1 %2094  ;;  %v2761_v52 = vpop.permute.xlu0 %2760 }
 0x2a9   :  { %v2149_v35 = vrot.slane %v2095_v41, %v7365_v54 }
 0x2ab   :  { %v2154_v41 = vsel %vm2144_vm8, %v2153_v28, %v2149_v35 }
 0x2ac   :  { %v2758_v21 = vpop.permute.xlu1 %2757  ;;  %v2104_v1 = vpop.permute.xlu0 %2103  ;;  %v2210_v35 = vsel %vm2209_vm9, %v2154_v41, %v2145_v33 }
 0x2ad   :  { %v2162_v62 = vrot.slane %v2104_v1, %v7368_v29  ;;  %v2810_v22 = vrot.slane %v2758_v21, %v7365_v54 }
 0x2b0   :  { %v2101_v38 = vpop.permute.xlu1 %2100  ;;  %v7348_v59 = vpop.permute.xlu0 %2766 }
 0x2b1   :  { %v2158_v58 = vrot.slane %v2101_v38, %v7365_v54 }
 0x2b3   :  { %v2163_v38 = vsel %vm2144_vm8, %v2162_v62, %v2158_v58 }
 0x2b4   :  { %v7350_v2 = vpop.permute.xlu1 %2763  ;;  %v2110_v7 = vpop.permute.xlu0 %2109 }
 0x2b5   :  { %v2171_v12 = vrot.slane %v2110_v7, %v7368_v29  ;;  %v2819_v11 = vrot.slane %v7350_v2, %v7365_v54  ;;  %v2823_v2 = vrot.slane %v7348_v59, %v7368_v29 }
 0x2b7   :  { %v2824_v41 = vsel %vm2144_vm8, %v2823_v2, %v2819_v11 }
 0x2b8   :  { %v2107_v24 = vpop.permute.xlu1 %2106  ;;  %v7352_v14 = vpop.permute.xlu0 %2772 }
 0x2b9   :  { %v2167_v61 = vrot.slane %v2107_v24, %v7365_v54  ;;  %v2814_v24 = vrot.slane %v2761_v52, %v7368_v29  ;;  %v2212_v52 = vsel %vm2211_vm10, %v2163_v38, %v2210_v35  ;;  %v2832_v63 = vrot.slane %v7352_v14, %v7368_v29 }
 0x2bb   :  { %v2172_v50 = vsel %vm2144_vm8, %v2171_v12, %v2167_v61  ;;  %v2815_v1 = vsel %vm2144_vm8, %v2814_v24, %v2810_v22 }
 0x2bc   :  { %v7354_v0 = vpop.permute.xlu1 %2769  ;;  %v2116_v30 = vpop.permute.xlu0 %2115  ;;  %v2214_v22 = vsel %vm2213_vm11, %v2172_v50, %v2212_v52 }
 0x2bd   :  { %v2828_v48 = vrot.slane %v7354_v0, %v7365_v54  ;;  %v2180_v62 = vrot.slane %v2116_v30, %v7368_v29 }
 0x2c0   :  { %v2113_v32 = vpop.permute.xlu1 %2112  ;;  %v7356_v20 = vpop.permute.xlu0 %2778 }
 0x2c1   :  { %v2176_v28 = vrot.slane %v2113_v32, %v7365_v54  ;;  %v2841_v14 = vrot.slane %v7356_v20, %v7368_v29 }
 0x2c3   :  { %v2181_v0 = vsel %vm2144_vm8, %v2180_v62, %v2176_v28 }
 0x2c4   :  { %v7358_v9 = vpop.permute.xlu1 %2775  ;;  %v2122_v45 = vpop.permute.xlu0 %2121  ;;  %v2216_v35 = vsel %vm2215_vm12, %v2181_v0, %v2214_v22 }
 0x2c5   :  { %v2837_v30 = vrot.slane %v7358_v9, %v7365_v54 }
 0x2c7   :  { %v2842_v24 = vsel %vm2144_vm8, %v2841_v14, %v2837_v30 }
 0x2c8   :  { %v2119_v47 = vpop.permute.xlu1 %2118  ;;  %v7361_v13 = vpop.permute.xlu0 %2784 }
 0x2c9   :  { %v2185_v21 = vrot.slane %v2119_v47, %v7365_v54  ;;  %v2189_v47 = vrot.slane %v2122_v45, %v7368_v29  ;;  %v2833_v45 = vsel %vm2144_vm8, %v2832_v63, %v2828_v48 }
 0x2cb   :  { %v2190_v61 = vsel %vm2144_vm8, %v2189_v47, %v2185_v21 }
 0x2cc   :  { %v7371_v10 = vpop.permute.xlu1 %2781  ;;  %v2128_v34 = vpop.permute.xlu0 %2127  ;;  %v2218_v21 = vsel %vm2217_vm13, %v2190_v61, %v2216_v35 }
 0x2cd   :  { %v2846_v59 = vrot.slane %v7371_v10, %v7365_v54  ;;  %v2870_v10 = vsel %vm2209_vm9, %v2815_v1, %v2806_v19 }
 0x2ce   :  { %v2871_v50 = vsel %vm2211_vm10, %v2824_v41, %v2870_v10 }
 0x2d0   :  { %v2125_v27 = vpop.permute.xlu1 %2124  ;;  %v2791_v18 = vpop.permute.xlu0 %2790 }
 0x2d1   :  { %v2194_v58 = vrot.slane %v2125_v27, %v7365_v54  ;;  %v2198_v27 = vrot.slane %v2128_v34, %v7368_v29  ;;  %v2850_v34 = vrot.slane %v7361_v13, %v7368_v29  ;;  %v2859_v20 = vrot.slane %v2791_v18, %v7368_v29 }
 0x2d3   :  { %v2199_v33 = vsel %vm2144_vm8, %v2198_v27, %v2194_v58  ;;  %v2851_v48 = vsel %vm2144_vm8, %v2850_v34, %v2846_v59  ;;  %v2872_v58 = vsel %vm2213_vm11, %v2833_v45, %v2871_v50 }
 0x2d4   :  { %v2788_v32 = vpop.permute.xlu1 %2787  ;;  %v2134_v7 = vpop.permute.xlu0 %2133  ;;  %v2220_v62 = vsel %vm2219_vm14, %v2199_v33, %v2218_v21  ;;  %v2873_v2 = vsel %vm2215_vm12, %v2842_v24, %v2872_v58 }
 0x2d5   :  { %v2855_v9 = vrot.slane %v2788_v32, %v7365_v54  ;;  %v2207_v12 = vrot.slane %v2134_v7, %v7368_v29  ;;  %v2874_v47 = vsel %vm2217_vm13, %v2851_v48, %v2873_v2 }
 0x2d7   :  { %v2860_v32 = vsel %vm2144_vm8, %v2859_v20, %v2855_v9 }
 0x2d8   :  { %v2131_v38 = vpop.permute.xlu1 %2130  ;;  %v2797_v11 = vpop.permute.xlu0 %2796  ;;  %v2875_v0 = vsel %vm2219_vm14, %v2860_v32, %v2874_v47 }
 0x2d9   :  { %v2203_v28 = vrot.slane %v2131_v38, %v7365_v54  ;;  %v2868_v18 = vrot.slane %v2797_v11, %v7368_v29 }
 0x2db   :  { %v2208_v13 = vsel %vm2144_vm8, %v2207_v12, %v2203_v28 }
 0x2dc   :  { %v2794_v19 = vpop.permute.xlu1 %2793  ;;  %v2222_v7 = vsel %vm2221_vm15, %v2208_v13, %v2220_v62 }
 0x2dd   :  { %v2864_v1 = vrot.slane %v2794_v19, %v7365_v54  ;;  %v2225_v52 = vsel %vm2224_vm0, %v2222_v7, -inf }
 0x2de   :  { %2226 = vmax.xlane.f32.xlu1 %v2225_v52 }
 0x2df   :  { %v2869_v63 = vsel %vm2144_vm8, %v2868_v18, %v2864_v1 }
 0x2e0   :  { %v2876_v30 = vsel %vm2221_vm15, %v2869_v63, %v2875_v0 }
 0x2e1   :  { %v2878_v27 = vsel %vm2224_vm0, %v2876_v30, -inf }
 0x2e2   :  { %2879 = vmax.xlane.f32.xlu0 %v2878_v27 }
 0x36b   :  { %v7444_v41 = vpop.xlane.xlu1 %2226 }
 0x36c   :  { %v2232_v22 = vrot.slane %v7444_v41, %v6931_v56  ;;  %v2236_v61 = vrot.slane %v7444_v41, %v6938_v55  ;;  %v2240_v24 = vrot.slane %v7444_v41, %v6955_v3  ;;  %v2244_v58 = vrot.slane %v7444_v41, %v7040_v17 }
 0x36e   :  { %v2269_v59 = vsub.f32 %v7238_v42, %v2232_v22  ;;  %v2270_v45 = vsub.f32 %v7234_v53, %v2232_v22  ;;  %v2272_v14 = vsub.f32 %v7241_v44, %v2236_v61  ;;  %v2271_v33 = vsub.f32 %v7249_v37, %v2236_v61 }
 0x36f   :  { %v7454_v28 = vpop.xlane.xlu0 %2879  ;;  %v2273_v48 = vsub.f32 %v7259_v60, %v2240_v24  ;;  %v2275_v18 = vsub.f32 %v7273_v39, %v2244_v58  ;;  %v2276_v52 = vsub.f32 %v7268_v4, %v2244_v58 }
 0x370   :  { %v2285_v9 = vmul.f32 1.442695, %v2269_v59  ;;  %v2287_v38 = vmul.f32 1.442695, %v2270_v45  ;;  %v2291_v34 = vmul.f32 1.442695, %v2272_v14  ;;  %v2885_v35 = vrot.slane %v7454_v28, %v6931_v56 }
 0x371   :  { %v2289_v12 = vmul.f32 1.442695, %v2271_v33  ;;  %v2889_v53 = vrot.slane %v7454_v28, %v6938_v55  ;;  %v2893_v13 = vrot.slane %v7454_v28, %v6955_v3  ;;  %v2293_v32 = vmul.f32 1.442695, %v2273_v48 }
 0x372   :  { %6350 = vpow2.f32 %v2285_v9  ;;  %v2922_v42 = vsub.f32 %v7243_v36, %v2885_v35  ;;  %v2923_v44 = vsub.f32 %v7232_v5, %v2885_v35  ;;  %v2897_v1 = vrot.slane %v7454_v28, %v7040_v17 }
 0x373   :  { %6352 = vpow2.f32 %v2287_v38  ;;  %v2924_v20 = vsub.f32 %v7253_v49, %v2889_v53  ;;  %v2925_v21 = vsub.f32 %v7247_v40, %v2889_v53  ;;  %v2274_v49 = vsub.f32 %v7255_v46, %v2240_v24 }
 0x374   :  { %6354 = vpow2.f32 %v2291_v34  ;;  %v2938_v11 = vmul.f32 1.442695, %v2922_v42  ;;  %v2940_v50 = vmul.f32 1.442695, %v2923_v44  ;;  %v2926_v19 = vsub.f32 %v7265_v43, %v2893_v13  ;;  %v8380_v42 = vld [vmem:[#allocation24_spill] sm:$0xff] }
 0x375   :  { %6356 = vpow2.f32 %v2289_v12  ;;  %v2942_v62 = vmul.f32 1.442695, %v2924_v20  ;;  %v2944_v40 = vmul.f32 1.442695, %v2925_v21  ;;  %v2295_v7 = vmul.f32 1.442695, %v2274_v49 }
 0x376   :  { %6358 = vpow2.f32 %v2938_v11  ;;  %v2927_v60 = vsub.f32 %v7261_v15, %v2893_v13  ;;  %v2946_v46 = vmul.f32 1.442695, %v2926_v19  ;;  %v2248_v15 = vrot.slane %v7444_v41, %v7043_v23  ;;  %v8381_v11 = vld [vmem:[#allocation2_spill] sm:$0xff] }
 0x377   :  { %6360 = vpow2.f32 %v2940_v50  ;;  %v2297_v43 = vmul.f32 1.442695, %v2275_v18  ;;  %v2928_v39 = vsub.f32 %v7281_v6, %v2897_v1  ;;  %v2299_v0 = vmul.f32 1.442695, %v2276_v52  ;;  %v8382_v50 = vld [vmem:[#allocation26_spill] sm:$0xff]  ;;  %v8385_v18 = vld [vmem:[#allocation27_spill] sm:$0xff] }
 0x378   :  { %6362 = vpow2.f32 %v2942_v62  ;;  %v2948_v2 = vmul.f32 1.442695, %v2927_v60  ;;  %v2929_v4 = vsub.f32 %v7276_v16, %v2897_v1  ;;  %v2277_v22 = vsub.f32 %v7289_v57, %v2248_v15  ;;  %v8383_v62 = vld [vmem:[#allocation25_spill] sm:$0xff] }
 0x379   :  { %6364 = vpow2.f32 %v2944_v40  ;;  %v2901_v61 = vrot.slane %v7454_v28, %v7043_v23  ;;  %v2950_v6 = vmul.f32 1.442695, %v2928_v39  ;;  %v2278_v59 = vsub.f32 %v7284_v8, %v2248_v15  ;;  %v8386_v15 = vld [vmem:[#allocation3_spill] sm:$0xff] }
 0x37a   :  { %6366 = vpow2.f32 %v2293_v32  ;;  %v2952_v16 = vmul.f32 1.442695, %v2929_v4  ;;  %v2252_v57 = vrot.slane %v7444_v41, %v7052_v25  ;;  %v2301_v33 = vmul.f32 1.442695, %v2277_v22  ;;  %v8384_v32 = vld [vmem:[#allocation28_spill] sm:$0xff] }
 0x37b   :  { %6368 = vpow2.f32 %v2295_v7  ;;  %v2930_v9 = vsub.f32 %v7297_v51, %v2901_v61  ;;  %v2303_v38 = vmul.f32 1.442695, %v2278_v59  ;;  %v2931_v8 = vsub.f32 %v7292_v26, %v2901_v61  ;;  %v8388_v61 = vld [vmem:[#allocation29_spill] sm:$0xff] }
 0x37c   :  { %v7462_v37 = vpop.eup %6350  ;;  %6370 = vpow2.f32 %v2946_v46  ;;  %v2279_v35 = vsub.f32 %v7305_v31, %v2252_v57  ;;  %v2905_v53 = vrot.slane %v7454_v28, %v7052_v25  ;;  %v2280_v44 = vsub.f32 %v8380_v42, %v2252_v57  ;;  %v8389_v57 = vld [vmem:[#allocation32_spill] sm:$0xff] }
 0x37d   :  { %v7464_v10 = vpop.eup %6352  ;;  %2334 = vperm.xlu0 %6349, %v7462_v37   ;;  %6372 = vpow2.f32 %v2948_v2  ;;  %v2954_v51 = vmul.f32 1.442695, %v2930_v9  ;;  %v2956_v26 = vmul.f32 1.442695, %v2931_v8  ;;  %v2256_v31 = vrot.slane %v7444_v41, %v8381_v11 }
 0x37e   :  { %2337 = vperm.xlu1 %6348, %v7464_v10   ;;  %v7472_v36 = vpop.eup %6354  ;;  %6374 = vpow2.f32 %v2297_v43  ;;  %v2305_v21 = vmul.f32 1.442695, %v2279_v35  ;;  %v2932_v48 = vsub.f32 %v8382_v50, %v2905_v53  ;;  %v2307_v13 = vmul.f32 1.442695, %v2280_v44  ;;  %v8393_v44 = vld [vmem:[#allocation34_spill] sm:$0xff] }
 0x37f   :  { %v7474_v5 = vpop.eup %6356  ;;  %6376 = vpow2.f32 %v2299_v0  ;;  %v2933_v49 = vsub.f32 %v8383_v62, %v2905_v53  ;;  %v2281_v19 = vsub.f32 %v8384_v32, %v2256_v31  ;;  %v2909_v7 = vrot.slane %v7454_v28, %v8381_v11  ;;  %v8387_v0 = vld [vmem:[#allocation30_spill] sm:$0xff] }
 0x380   :  { %v7490_v47 = vpop.eup %6358  ;;  %6378 = vpow2.f32 %v2950_v6  ;;  %v2958_v60 = vmul.f32 1.442695, %v2932_v48  ;;  %v2282_v1 = vsub.f32 %v8385_v18, %v2256_v31  ;;  %v2260_v43 = vrot.slane %v7444_v41, %v8386_v15  ;;  %v8394_v31 = vld [vmem:[#allocation33_spill] sm:$0xff] }
 0x381   :  { %2343 = vperm.xlu0 %6349, %v7472_v36   ;;  %v7492_v63 = vpop.eup %6360  ;;  %6380 = vpow2.f32 %v2952_v16  ;;  %v2960_v46 = vmul.f32 1.442695, %v2933_v49  ;;  %v2309_v39 = vmul.f32 1.442695, %v2281_v19  ;;  %v2934_v4 = vsub.f32 %v8387_v0, %v2909_v7  ;;  %v8407_v0 = vld [vmem:[#allocation11_spill] sm:$0xff] }
 0x382   :  { %2340 = vperm.xlu1 %6348, %v7474_v5   ;;  %v7500_v30 = vpop.eup %6362  ;;  %6382 = vpow2.f32 %v2301_v33  ;;  %v2311_v22 = vmul.f32 1.442695, %v2282_v1  ;;  %v2935_v6 = vsub.f32 %v8388_v61, %v2909_v7  ;;  %v2283_v33 = vsub.f32 %v8389_v57, %v2260_v43  ;;  %v8410_v61 = vld [vmem:[#allocation12_spill] sm:$0xff]  ;;  %v8412_v57 = vld [vmem:[#allocation14_spill] sm:$0xff] }
 0x383   :  { %v7502_v27 = vpop.eup %6364  ;;  %6384 = vpow2.f32 %v2303_v38  ;;  %v2913_v41 = vrot.slane %v7454_v28, %v8386_v15  ;;  %v2962_v9 = vmul.f32 1.442695, %v2934_v4  ;;  %v8390_v38 = vld [vmem:[#allocation31_spill] sm:$0xff]  ;;  %v8408_v4 = vld [vmem:[#allocation10_spill] sm:$0xff] }
 0x384   :  { %v7510_v45 = vpop.eup %6366  ;;  %6386 = vpow2.f32 %v2954_v51  ;;  %v2284_v8 = vsub.f32 %v8390_v38, %v2260_v43  ;;  %v2964_v35 = vmul.f32 1.442695, %v2935_v6  ;;  %v2313_v42 = vmul.f32 1.442695, %v2283_v33  ;;  %v8405_v43 = vld [vmem:[#allocation9_spill] sm:$0xff]  ;;  %v8411_v6 = vld [vmem:[#allocation15_spill] sm:$0xff] }
 0x385   :  { %2990 = vperm.xlu0 %6349, %v7492_v63   ;;  %v7512_v14 = vpop.eup %6368  ;;  %6388 = vpow2.f32 %v2956_v26  ;;  %v2936_v26 = vsub.f32 %v8393_v44, %v2913_v41  ;;  %v8413_v33 = vld [vmem:[#allocation17_spill] sm:$0xff] }
 0x386   :  { %2987 = vperm.xlu1 %6348, %v7490_v47   ;;  %v7520_v34 = vpop.eup %6370  ;;  %6390 = vpow2.f32 %v2305_v21  ;;  %v2315_v28 = vmul.f32 1.442695, %v2284_v8  ;;  %v2937_v21 = vsub.f32 %v8394_v31, %v2913_v41  ;;  %v8414_v41 = vld [vmem:[#allocation16_spill] sm:$0xff] }
 0x387   :  { %v7522_v12 = vpop.eup %6372  ;;  %6392 = vpow2.f32 %v2307_v13  ;;  %v2966_v13 = vmul.f32 1.442695, %v2936_v26 }
 0x388   :  { %v7530_v24 = vpop.eup %6374  ;;  %6394 = vpow2.f32 %v2958_v60  ;;  %v2968_v62 = vmul.f32 1.442695, %v2937_v21 }
 0x389   :  { %2996 = vperm.xlu0 %6349, %v7502_v27   ;;  %v7532_v20 = vpop.eup %6376  ;;  %6396 = vpow2.f32 %v2960_v46 }
 0x38a   :  { %2993 = vperm.xlu1 %6348, %v7500_v30   ;;  %v7540_v40 = vpop.eup %6378  ;;  %6398 = vpow2.f32 %v2309_v39  ;;  %v8406_v39 = vld [vmem:[#allocation8_spill] sm:$0xff] }
 0x38b   :  { %v7542_v58 = vpop.eup %6380  ;;  %6400 = vpow2.f32 %v2311_v22  ;;  %v8409_v22 = vld [vmem:[#allocation13_spill] sm:$0xff] }
 0x38c   :  { %v7550_v52 = vpop.eup %6382  ;;  %6402 = vpow2.f32 %v2962_v9 }
 0x38d   :  { %2349 = vperm.xlu0 %6349, %v7512_v14   ;;  %v7552_v2 = vpop.eup %6384  ;;  %6404 = vpow2.f32 %v2964_v35 }
 0x38e   :  { %2346 = vperm.xlu1 %6348, %v7510_v45   ;;  %v7560_v59 = vpop.eup %6386  ;;  %6406 = vpow2.f32 %v2313_v42 }
 0x38f   :  { %v7562_v16 = vpop.eup %6388  ;;  %6408 = vpow2.f32 %v2315_v28 }
 0x390   :  { %v7570_v53 = vpop.eup %6390  ;;  %6410 = vpow2.f32 %v2966_v13 }
 0x391   :  { %3002 = vperm.xlu0 %6349, %v7522_v12   ;;  %8391 = vst [vmem:[#allocation24_spill] sm:$0xff] %v7570_v53  ;;  %v7572_v51 = vpop.eup %6392  ;;  %6412 = vpow2.f32 %v2968_v62 }
 0x392   :  { %2999 = vperm.xlu1 %6348, %v7520_v34   ;;  %8392 = vst [vmem:[#allocation26_spill] sm:$0xff] %v7572_v51  ;;  %v7578_v50 = vpop.eup %6394 }
 0x393   :  { %8395 = vst [vmem:[#allocation25_spill] sm:$0xff] %v7578_v50  ;;  %v7580_v48 = vpop.eup %6396 }
 0x394   :  { %8396 = vst [vmem:[#allocation28_spill] sm:$0xff] %v7580_v48  ;;  %v7584_v49 = vpop.eup %6398 }
 0x395   :  { %2355 = vperm.xlu0 %6349, %v7532_v20   ;;  %8397 = vst [vmem:[#allocation27_spill] sm:$0xff] %v7584_v49  ;;  %v7586_v32 = vpop.eup %6400 }
 0x396   :  { %2352 = vperm.xlu1 %6348, %v7530_v24   ;;  %8398 = vst [vmem:[#allocation30_spill] sm:$0xff] %v7586_v32  ;;  %v7590_v19 = vpop.eup %6402 }
 0x397   :  { %8399 = vst [vmem:[#allocation29_spill] sm:$0xff] %v7590_v19  ;;  %v7592_v7 = vpop.eup %6404 }
 0x398   :  { %8400 = vst [vmem:[#allocation32_spill] sm:$0xff] %v7592_v7  ;;  %v7596_v60 = vpop.eup %6406 }
 0x399   :  { %3008 = vperm.xlu0 %6349, %v7542_v58   ;;  %8401 = vst [vmem:[#allocation31_spill] sm:$0xff] %v7596_v60  ;;  %v7598_v18 = vpop.eup %6408 }
 0x39a   :  { %3005 = vperm.xlu1 %6348, %v7540_v40   ;;  %8402 = vst [vmem:[#allocation34_spill] sm:$0xff] %v7598_v18  ;;  %v7602_v1 = vpop.eup %6410 }
 0x39b   :  { %8403 = vst [vmem:[#allocation33_spill] sm:$0xff] %v7602_v1  ;;  %v7604_v46 = vpop.eup %6412 }
 0x39c   :  { %8404 = vst [vmem:[#allocation35_spill] sm:$0xff] %v7604_v46 }
 0x39d   :  { %2361 = vperm.xlu0 %6349, %v7552_v2  }
 0x39e   :  { %2358 = vperm.xlu1 %6348, %v7550_v52  }
 0x3a1   :  { %3014 = vperm.xlu0 %6349, %v7562_v16  }
 0x3a2   :  { %3011 = vperm.xlu1 %6348, %v7560_v59  }
 0x3a5   :  { %2367 = vperm.xlu0 %6349, %v7572_v51  }
 0x3a6   :  { %2364 = vperm.xlu1 %6348, %v7570_v53  }
 0x3a9   :  { %3020 = vperm.xlu0 %6349, %v7580_v48  }
 0x3aa   :  { %3017 = vperm.xlu1 %6348, %v7578_v50  }
 0x3ad   :  { %2373 = vperm.xlu0 %6349, %v7586_v32  }
 0x3ae   :  { %2370 = vperm.xlu1 %6348, %v7584_v49  }
 0x3b1   :  { %3026 = vperm.xlu0 %6349, %v7592_v7  }
 0x3b2   :  { %3023 = vperm.xlu1 %6348, %v7590_v19  }
 0x3b5   :  { %2379 = vperm.xlu0 %6349, %v7598_v18  }
 0x3b6   :  { %2376 = vperm.xlu1 %6348, %v7596_v60  }
 0x3b9   :  { %3032 = vperm.xlu0 %6349, %v7604_v46  }
 0x3ba   :  { %3029 = vperm.xlu1 %6348, %v7602_v1  }
 0x3bd   :  { %3305 = vrot.lane.b32.xlu0 %v8406_v39, %s6426_s2 }
 0x3be   :  { %3303 = vrot.lane.b32.xlu1 %v8405_v43, %s6426_s2 }
 0x3c1   :  { %3309 = vrot.lane.b32.xlu0 %v8408_v4, %s6426_s2 }
 0x3c2   :  { %3307 = vrot.lane.b32.xlu1 %v8407_v0, %s6426_s2 }
 0x3c5   :  { %3313 = vrot.lane.b32.xlu0 %v8410_v61, %s6426_s2 }
 0x3c6   :  { %3311 = vrot.lane.b32.xlu1 %v8409_v22, %s6426_s2 }
 0x3c9   :  { %3317 = vrot.lane.b32.xlu0 %v8412_v57, %s6426_s2 }
 0x3ca   :  { %3315 = vrot.lane.b32.xlu1 %v8411_v6, %s6426_s2 }
 0x3cd   :  { %3321 = vrot.lane.b32.xlu0 %v8414_v41, %s6426_s2 }
 0x3ce   :  { %3319 = vrot.lane.b32.xlu1 %v8413_v33, %s6426_s2 }
 0x3fc   :  { %v2335_v38 = vpop.permute.xlu0 %2334 }
 0x3fd   :  { %v2338_v9 = vpop.permute.xlu1 %2337  ;;  %v2384_v19 = vrot.slane %v2335_v38, %v7365_v54 }
 0x3fe   :  { %v2388_v15 = vrot.slane %v2338_v9, %v7368_v29 }
 0x400   :  { %v2344_v35 = vpop.permute.xlu0 %2343 }
 0x401   :  { %v2341_v8 = vpop.permute.xlu1 %2340  ;;  %v2397_v60 = vrot.slane %v2344_v35, %v7368_v29 }
 0x402   :  { %v2393_v1 = vrot.slane %v2341_v8, %v7365_v54  ;;  %v2389_v8 = vsel %vm2144_vm8, %v2388_v15, %v2384_v19 }
 0x404   :  { %v7630_v44 = vpop.permute.xlu0 %2990  ;;  %v2398_v11 = vsel %vm2144_vm8, %v2397_v60, %v2393_v1 }
 0x405   :  { %v7628_v42 = vpop.permute.xlu1 %2987  ;;  %v2453_v1 = vsel %vm2209_vm9, %v2398_v11, %v2389_v8 }
 0x408   :  { %v2997_v28 = vpop.permute.xlu0 %2996 }
 0x409   :  { %v2994_v26 = vpop.permute.xlu1 %2993  ;;  %v3050_v9 = vrot.slane %v2997_v28, %v7368_v29 }
 0x40a   :  { %v3046_v35 = vrot.slane %v2994_v26, %v7365_v54 }
 0x40c   :  { %v2350_v21 = vpop.permute.xlu0 %2349  ;;  %v3051_v11 = vsel %vm2144_vm8, %v3050_v9, %v3046_v35 }
 0x40d   :  { %v2347_v31 = vpop.permute.xlu1 %2346  ;;  %v2406_v49 = vrot.slane %v2350_v21, %v7368_v29 }
 0x40e   :  { %v2402_v7 = vrot.slane %v2347_v31, %v7365_v54 }
 0x410   :  { %v3003_v62 = vpop.permute.xlu0 %3002  ;;  %v2407_v38 = vsel %vm2144_vm8, %v2406_v49, %v2402_v7  ;;  %v3041_v49 = vrot.slane %v7630_v44, %v7368_v29 }
 0x411   :  { %v3000_v13 = vpop.permute.xlu1 %2999  ;;  %v3059_v21 = vrot.slane %v3003_v62, %v7368_v29 }
 0x412   :  { %v3055_v31 = vrot.slane %v3000_v13, %v7365_v54 }
 0x414   :  { %v2356_v39 = vpop.permute.xlu0 %2355 }
 0x415   :  { %v2353_v43 = vpop.permute.xlu1 %2352  ;;  %v2415_v48 = vrot.slane %v2356_v39, %v7368_v29  ;;  %v2454_v39 = vsel %vm2211_vm10, %v2407_v38, %v2453_v1 }
 0x416   :  { %v2411_v50 = vrot.slane %v2353_v43, %v7365_v54  ;;  %v3037_v43 = vrot.slane %v7628_v42, %v7365_v54 }
 0x418   :  { %v3009_v4 = vpop.permute.xlu0 %3008  ;;  %v2416_v7 = vsel %vm2144_vm8, %v2415_v48, %v2411_v50 }
 0x419   :  { %v3006_v0 = vpop.permute.xlu1 %3005  ;;  %v2455_v48 = vsel %vm2213_vm11, %v2416_v7, %v2454_v39 }
 0x41a   :  { %v3064_v42 = vrot.slane %v3006_v0, %v7365_v54 }
 0x41c   :  { %v2362_v61 = vpop.permute.xlu0 %2361 }
 0x41d   :  { %v2359_v22 = vpop.permute.xlu1 %2358  ;;  %v2424_v60 = vrot.slane %v2362_v61, %v7368_v29  ;;  %v3060_v61 = vsel %vm2144_vm8, %v3059_v21, %v3055_v31 }
 0x41e   :  { %v2420_v51 = vrot.slane %v2359_v22, %v7365_v54  ;;  %v3068_v22 = vrot.slane %v3009_v4, %v7368_v29 }
 0x420   :  { %v3015_v57 = vpop.permute.xlu0 %3014  ;;  %v3069_v9 = vsel %vm2144_vm8, %v3068_v22, %v3064_v42 }
 0x421   :  { %v3012_v6 = vpop.permute.xlu1 %3011  ;;  %v3077_v50 = vrot.slane %v3015_v57, %v7368_v29  ;;  %v3042_v57 = vsel %vm2144_vm8, %v3041_v49, %v3037_v43 }
 0x422   :  { %v3073_v44 = vrot.slane %v3012_v6, %v7365_v54 }
 0x424   :  { %v2368_v41 = vpop.permute.xlu0 %2367  ;;  %v3078_v31 = vsel %vm2144_vm8, %v3077_v50, %v3073_v44 }
 0x425   :  { %v2365_v33 = vpop.permute.xlu1 %2364  ;;  %v2433_v19 = vrot.slane %v2368_v41, %v7368_v29 }
 0x426   :  { %v2429_v15 = vrot.slane %v2365_v33, %v7365_v54  ;;  %v2425_v33 = vsel %vm2144_vm8, %v2424_v60, %v2420_v51 }
 0x427   :  { %v2456_v38 = vsel %vm2215_vm12, %v2425_v33, %v2455_v48 }
 0x428   :  { %v3021_v18 = vpop.permute.xlu0 %3020 }
 0x429   :  { %v3018_v46 = vpop.permute.xlu1 %3017  ;;  %v3086_v41 = vrot.slane %v3021_v18, %v7368_v29  ;;  %v3106_v18 = vsel %vm2209_vm9, %v3051_v11, %v3042_v57 }
 0x42a   :  { %v3107_v60 = vsel %vm2211_vm10, %v3060_v61, %v3106_v18 }
 0x42c   :  { %v2374_v53 = vpop.permute.xlu0 %2373 }
 0x42d   :  { %v2371_v32 = vpop.permute.xlu1 %2370  ;;  %v2442_v13 = vrot.slane %v2374_v53, %v7368_v29  ;;  %v2434_v53 = vsel %vm2144_vm8, %v2433_v19, %v2429_v15 }
 0x42e   :  { %v2438_v28 = vrot.slane %v2371_v32, %v7365_v54  ;;  %v3082_v32 = vrot.slane %v3018_v46, %v7365_v54  ;;  %v2457_v21 = vsel %vm2217_vm13, %v2434_v53, %v2456_v38 }
 0x430   :  { %v3027_v62 = vpop.permute.xlu0 %3026  ;;  %v2443_v0 = vsel %vm2144_vm8, %v2442_v13, %v2438_v28  ;;  %v3087_v1 = vsel %vm2144_vm8, %v3086_v41, %v3082_v32 }
 0x431   :  { %v3024_v26 = vpop.permute.xlu1 %3023  ;;  %v3095_v35 = vrot.slane %v3027_v62, %v7368_v29  ;;  %v2458_v43 = vsel %vm2219_vm14, %v2443_v0, %v2457_v21 }
 0x432   :  { %v3091_v4 = vrot.slane %v3024_v26, %v7365_v54  ;;  %v3108_v26 = vsel %vm2213_vm11, %v3069_v9, %v3107_v60 }
 0x433   :  { %v3109_v62 = vsel %vm2215_vm12, %v3078_v31, %v3108_v26 }
 0x434   :  { %v2380_v6 = vpop.permute.xlu0 %2379  ;;  %v3096_v49 = vsel %vm2144_vm8, %v3095_v35, %v3091_v4  ;;  %v3110_v42 = vsel %vm2217_vm13, %v3087_v1, %v3109_v62 }
 0x435   :  { %v2377_v8 = vpop.permute.xlu1 %2376  ;;  %v2451_v46 = vrot.slane %v2380_v6, %v7368_v29  ;;  %v3111_v61 = vsel %vm2219_vm14, %v3096_v49, %v3110_v42  ;;  %v8420_v42 = vld [vmem:[#allocation30_spill] sm:$0xff] }
 0x436   :  { %v2447_v51 = vrot.slane %v2377_v8, %v7365_v54 }
 0x438   :  { %v2452_v19 = vsel %vm2144_vm8, %v2451_v46, %v2447_v51  ;;  %v3033_v28 = vpop.permute.xlu0 %3032 }
 0x439   :  { %v3030_v15 = vpop.permute.xlu1 %3029  ;;  %v2459_v13 = vsel %vm2221_vm15, %v2452_v19, %v2458_v43  ;;  %v3104_v11 = vrot.slane %v3033_v28, %v7368_v29 }
 0x43a   :  { %v3100_v7 = vrot.slane %v3030_v15, %v7365_v54  ;;  %v2461_v39 = vsel %vm2224_vm0, %v2459_v13, 0.0  ;;  %v8416_v13 = vld [vmem:[#allocation24_spill] sm:$0xff] }
 0x43b   :  { %2462 = vadd.xlane.f32.xlu1 %v2461_v39  ;;  %v8419_v39 = vld [vmem:[#allocation2_spill] sm:$0xff] }
 0x43c   :  { %v3105_v22 = vsel %vm2144_vm8, %v3104_v11, %v3100_v7  ;;  %v7700_v48 = vpop.permute.xlu0 %3305  ;;  %v8415_v7 = vld [vmem:[#allocation26_spill] sm:$0xff]  ;;  %v8418_v11 = vld [vmem:[#allocation25_spill] sm:$0xff] }
 0x43d   :  { %v3112_v33 = vsel %vm2221_vm15, %v3105_v22, %v3111_v61  ;;  %v7698_v50 = vpop.permute.xlu1 %3303  ;;  %v8421_v61 = vld [vmem:[#allocation27_spill] sm:$0xff] }
 0x43e   :  { %v3114_v44 = vsel %vm2224_vm0, %v3112_v33, 0.0 }
 0x43f   :  { %3115 = vadd.xlane.f32.xlu0 %v3114_v44 }
 0x440   :  { %v7704_v32 = vpop.permute.xlu0 %3309 }
 0x441   :  { %v7702_v53 = vpop.permute.xlu1 %3307 }
 0x444   :  { %v7708_v8 = vpop.permute.xlu0 %3313 }
 0x445   :  { %v7706_v41 = vpop.permute.xlu1 %3311 }
 0x448   :  { %v7712_v4 = vpop.permute.xlu0 %3317 }
 0x449   :  { %v7710_v0 = vpop.permute.xlu1 %3315 }
 0x44c   :  { %v7716_v51 = vpop.permute.xlu0 %3321 }
 0x44d   :  { %v7714_v35 = vpop.permute.xlu1 %3319 }
 0x4c8   :  { %v2463_v6 = vpop.xlane.xlu1 %2462 }
 0x4c9   :  { %6414 = vrcp.f32 %v2463_v6 }
 0x4cc   :  { %v3116_v57 = vpop.xlane.xlu0 %3115 }
 0x4cd   :  { %6416 = vrcp.f32 %v3116_v57  ;;  %v8423_v57 = vld [vmem:[#allocation29_spill] sm:$0xff] }
 0x4d3   :  { %v7718_v9 = vpop.eup %6414 }
 0x4d4   :  { %v2469_v38 = vrot.slane %v7718_v9, %v6931_v56  ;;  %v2473_v31 = vrot.slane %v7718_v9, %v6938_v55 }
 0x4d6   :  { %v2507_v46 = vmul.f32 %v7464_v10, %v2469_v38  ;;  %v2506_v18 = vmul.f32 %v7462_v37, %v2469_v38  ;;  %v2508_v60 = vmul.f32 %v7474_v5, %v2473_v31  ;;  %v2509_v1 = vmul.f32 %v7472_v36, %v2473_v31  ;;  %v8425_v31 = vld [vmem:[#allocation34_spill] sm:$0xff] }
 0x4d7   :  { %v7726_v21 = vpop.eup %6416  ;;  %v2477_v36 = vrot.slane %v7718_v9, %v6955_v3 }
 0x4d8   :  { %2529 = vperm.xlu1 %6348, %v2507_v46   ;;  %2524 = vperm.xlu0 %6349, %v2506_v18   ;;  %v3122_v15 = vrot.slane %v7726_v21, %v6931_v56  ;;  %v3126_v19 = vrot.slane %v7726_v21, %v6938_v55  ;;  %v3146_v44 = vrot.slane %v7726_v21, %v8419_v39  ;;  %v8424_v46 = vld [vmem:[#allocation3_spill] sm:$0xff] }
 0x4d9   :  { %v2511_v56 = vmul.f32 %v7512_v14, %v2477_v36  ;;  %v2497_v18 = vrot.slane %v7718_v9, %v8424_v46 }
 0x4da   :  { %v3160_v10 = vmul.f32 %v7492_v63, %v3122_v15  ;;  %v3159_v37 = vmul.f32 %v7490_v47, %v3122_v15  ;;  %v3162_v43 = vmul.f32 %v7502_v27, %v3126_v19  ;;  %v3161_v5 = vmul.f32 %v7500_v30, %v3126_v19 }
 0x4db   :  { %v2510_v63 = vmul.f32 %v7510_v45, %v2477_v36  ;;  %v3130_v47 = vrot.slane %v7726_v21, %v6955_v3  ;;  %v2481_v30 = vrot.slane %v7718_v9, %v7040_v17  ;;  %v3134_v45 = vrot.slane %v7726_v21, %v7040_v17 }
 0x4dc   :  { %2534 = vperm.xlu1 %6348, %v2508_v60   ;;  %2539 = vperm.xlu0 %6349, %v2509_v1   ;;  %v3171_v38 = vmul.f32 %v8423_v57, %v3146_v44  ;;  %v2521_v60 = vmul.f32 %v8425_v31, %v2497_v18  ;;  %v8426_v1 = vld [vmem:[#allocation31_spill] sm:$0xff]  ;;  %v8436_v31 = vld [vmem:[#allocation4_spill] sm:$0xff] }
 0x4dd   :  { %v3164_v55 = vmul.f32 %v7522_v12, %v3130_v47  ;;  %v3163_v27 = vmul.f32 %v7520_v34, %v3130_v47  ;;  %v2513_v26 = vmul.f32 %v7532_v20, %v2481_v30  ;;  %v2512_v14 = vmul.f32 %v7530_v24, %v2481_v30  ;;  %v8434_v47 = vld [vmem:[#allocation23_spill] sm:$0xff]  ;;  %v3605_v30 = vld [vmem:[%s8208_s5 + $0x10] sm:$0xff] }
 0x4de   :  { %v3166_v3 = vmul.f32 %v7542_v58, %v3134_v45  ;;  %v3165_v12 = vmul.f32 %v7540_v40, %v3134_v45  ;;  %v2485_v34 = vrot.slane %v7718_v9, %v7043_v23  ;;  %v3138_v24 = vrot.slane %v7726_v21, %v7043_v23  ;;  %v8417_v23 = vld [vmem:[#allocation28_spill] sm:$0xff]  ;;  %v3606_v45 = vld [vmem:[%s8208_s5 + $0x18] sm:$0xff] }
 0x4df   :  { %v2489_v40 = vrot.slane %v7718_v9, %v7052_v25  ;;  %v2520_v15 = vmul.f32 %v8426_v1, %v2497_v18  ;;  %v3524_v1 = vadd.s32 4294967272, %v8436_v31 }
 0x4e0   :  { %3182 = vperm.xlu0 %6349, %v3160_v10   ;;  %3177 = vperm.xlu1 %6348, %v3159_v37   ;;  %v2515_v49 = vmul.f32 %v7552_v2, %v2485_v34  ;;  %v2514_v20 = vmul.f32 %v7550_v52, %v2485_v34  ;;  %v3168_v17 = vmul.f32 %v7562_v16, %v3138_v24  ;;  %v8427_v37 = vld [vmem:[#allocation33_spill] sm:$0xff] }
 0x4e1   :  { %v3167_v58 = vmul.f32 %v7560_v59, %v3138_v24  ;;  %v2517_v28 = vmul.f32 %v8415_v7, %v2489_v40  ;;  %v2516_v2 = vmul.f32 %v8416_v13, %v2489_v40  ;;  %v3142_v52 = vrot.slane %v7726_v21, %v7052_v25  ;;  %v8422_v25 = vld [vmem:[#allocation32_spill] sm:$0xff] }
 0x4e2   :  { %v2493_v59 = vrot.slane %v7718_v9, %v8419_v39  ;;  %v3172_v6 = vmul.f32 %v8422_v25, %v3146_v44  ;;  %v3150_v10 = vrot.slane %v7726_v21, %v8424_v46  ;;  %v8430_v9 = vld [vmem:[#allocation19_spill] sm:$0xff]  ;;  %v8433_v21 = vld [vmem:[#allocation22_spill] sm:$0xff]  ;;  %v8435_v40 = vmov 0.0|0.0  }
 0x4e3   :  { %v3170_v62 = vmul.f32 %v8417_v23, %v3142_v52  ;;  %v3169_v16 = vmul.f32 %v8418_v11, %v3142_v52 }
 0x4e4   :  { %3192 = vperm.xlu0 %6349, %v3162_v43   ;;  %3187 = vperm.xlu1 %6348, %v3161_v5   ;;  %v2519_v22 = vmul.f32 %v8420_v42, %v2493_v59  ;;  %v2518_v33 = vmul.f32 %v8421_v61, %v2493_v59  ;;  %v3173_v19 = vmul.f32 %v8427_v37, %v3150_v10  ;;  %v8428_v43 = vld [vmem:[#allocation18_spill] sm:$0xff]  ;;  %v8429_v5 = vld [vmem:[#allocation35_spill] sm:$0xff] }
 0x4e5   :  { %v3174_v36 = vmul.f32 %v8429_v5, %v3150_v10  ;;  %v8437_v5 = vld [vmem:[#allocation7_spill] sm:$0xff] }
 0x4e8   :  { %2549 = vperm.xlu0 %6349, %v2511_v56   ;;  %2544 = vperm.xlu1 %6348, %v2510_v63   ;;  %v8431_v56 = vld [vmem:[#allocation20_spill] sm:$0xff]  ;;  %v8432_v63 = vld [vmem:[#allocation21_spill] sm:$0xff] }
 0x4ec   :  { %3202 = vperm.xlu0 %6349, %v3164_v55   ;;  %3197 = vperm.xlu1 %6348, %v3163_v27   ;;  %v3603_v55 = vld [vmem:[%s8208_s5] sm:$0xff]  ;;  %v3604_v27 = vld [vmem:[%s8208_s5 + $0x8] sm:$0xff] }
 0x4f0   :  { %2559 = vperm.xlu0 %6349, %v2513_v26   ;;  %2554 = vperm.xlu1 %6348, %v2512_v14   ;;  %v3632_v26 = vand.u32 4294901760, %v3603_v55  ;;  %v3635_v14 = vand.u32 4294901760, %v3604_v27 }
 0x4f2   :  { %v7810_v34 = vpack.c.bf16 %v3635_v14, %v3632_v26 }
 0x4f4   :  { %3212 = vperm.xlu0 %6349, %v3166_v3   ;;  %3207 = vperm.xlu1 %6348, %v3165_v12   ;;  %v3638_v3 = vand.u32 4294901760, %v3605_v30  ;;  %v3641_v12 = vand.u32 4294901760, %v3606_v45 }
 0x4f5   :  { %6178 = vmatpush3.bf16.msra.mxu0 %v7810_v34 }
 0x4f6   :  { %v7816_v24 = vsub.f32 %v3605_v30, %v3638_v3  ;;  %6179 = vmatprep.subr.bf16.mxu0 %v8435_v40 }
 0x4f8   :  { %2569 = vperm.xlu0 %6349, %v2515_v49   ;;  %2564 = vperm.xlu1 %6348, %v2514_v20   ;;  %v7812_v49 = vsub.f32 %v3603_v55, %v3632_v26  ;;  %v7814_v20 = vsub.f32 %v3604_v27, %v3635_v14  ;;  %v3727_v52 = vand.u32 4294901760, %v7816_v24 }
 0x4fa   :  { %v3713_v7 = vand.u32 4294901760, %v7812_v49 }
 0x4fc   :  { %3222 = vperm.xlu0 %6349, %v3168_v17   ;;  %3217 = vperm.xlu1 %6348, %v3167_v58   ;;  %v7818_v17 = vsub.f32 %v3606_v45, %v3641_v12  ;;  %v7821_v58 = vpack.c.bf16 %v3641_v12, %v3638_v3  ;;  %v3714_v13 = vsub.f32 %v7812_v49, %v3713_v7 }
 0x4fe   :  { %6181 = vmatpush3.bf16.msra.mxu0 %v7821_v58  ;;  %v3734_v23 = vand.u32 4294901760, %v7818_v17 }
 0x4ff   :  { %6182 = vmatprep.subr.bf16.mxu0 %v8435_v40 }
 0x500   :  { %2579 = vperm.xlu0 %6349, %v2517_v28   ;;  %2574 = vperm.xlu1 %6348, %v2516_v2   ;;  %v3720_v28 = vand.u32 4294901760, %v7814_v20  ;;  %v3735_v39 = vsub.f32 %v7818_v17, %v3734_v23 }
 0x502   :  { %v3721_v2 = vsub.f32 %v7814_v20, %v3720_v28  ;;  %v7842_v25 = vpack.c.bf16 %v3720_v28, %v3713_v7 }
 0x504   :  { %3232 = vperm.xlu0 %6349, %v3170_v62   ;;  %3227 = vperm.xlu1 %6348, %v3169_v16   ;;  %v3715_v62 = vand.u32 4294901760, %v3714_v13  ;;  %v3722_v11 = vand.u32 4294901760, %v3721_v2  ;;  %v3728_v16 = vsub.f32 %v7816_v24, %v3727_v52 }
 0x506   :  { %v7834_v59 = vpack.c.bf16 %v3722_v11, %v3715_v62  ;;  %v3729_v42 = vand.u32 4294901760, %v3728_v16 }
 0x508   :  { %2589 = vperm.xlu0 %6349, %v2519_v22   ;;  %2584 = vperm.xlu1 %6348, %v2518_v33   ;;  %v3736_v22 = vand.u32 4294901760, %v3735_v39 }
 0x50a   :  { %v7836_v61 = vpack.c.bf16 %v3736_v22, %v3729_v42 }
 0x50c   :  { %3242 = vperm.xlu0 %6349, %v3172_v6   ;;  %3237 = vperm.xlu1 %6348, %v3171_v38   ;;  %v7846_v38 = vpack.c.bf16 %v3734_v23, %v3727_v52 }
 0x510   :  { %2599 = vperm.xlu0 %6349, %v2521_v60   ;;  %2594 = vperm.xlu1 %6348, %v2520_v15   ;;  %v3519_v60 = vadd.s32 4294967280, %v8436_v31 }
 0x514   :  { %3325 = vrot.lane.b32.xlu0 %v8428_v43, %s6426_s2  ;;  %3247 = vperm.xlu1 %6348, %v3173_v19  }
 0x518   :  { %3252 = vperm.xlu0 %6349, %v3174_v36   ;;  %3323 = vrot.lane.b32.xlu1 %v8430_v9, %s6426_s2  ;;  %v7857_v36 = vsub.s32 %v3519_v60, %v8437_v5  ;;  %v7860_v9 = vsub.s32 %v3524_v1, %v8437_v5 }
 0x51c   :  { %3329 = vrot.lane.b32.xlu0 %v8431_v56, %s6426_s2  ;;  %3327 = vrot.lane.b32.xlu1 %v8432_v63, %s6426_s2 }
 0x520   :  { %3333 = vrot.lane.b32.xlu0 %v8433_v21, %s6426_s2  ;;  %3331 = vrot.lane.b32.xlu1 %v8434_v47, %s6426_s2 }
 0x557   :  { %v7844_v6 = vpop.permute.xlu1 %2529  ;;  %v2525_v57 = vpop.permute.xlu0 %2524 }
 0x558   :  { %v3446_v46 = vrot.slane %v7844_v6, %v7368_v29  ;;  %v3442_v18 = vrot.slane %v2525_v57, %v7365_v54 }
 0x55a   :  { %v3447_v15 = vsel %vm2144_vm8, %v3446_v46, %v3442_v18 }
 0x55b   :  { %v2535_v10 = vpop.permute.xlu1 %2534  ;;  %v2540_v37 = vpop.permute.xlu0 %2539 }
 0x55c   :  { %v3451_v19 = vrot.slane %v2535_v10, %v7365_v54  ;;  %v3455_v43 = vrot.slane %v2540_v37, %v7368_v29 }
 0x55e   :  { %v3456_v56 = vsel %vm2144_vm8, %v3455_v43, %v3451_v19 }
 0x55f   :  { %v3511_v63 = vsel %vm2209_vm9, %v3456_v56, %v3447_v15  ;;  %v3178_v21 = vpop.permute.xlu1 %3177  ;;  %v3183_v47 = vpop.permute.xlu0 %3182 }
 0x560   :  { %v3523_v55 = vrot.slane %v3178_v21, %v7857_v36  ;;  %v3528_v27 = vrot.slane %v3183_v47, %v7860_v9 }
 0x562   :  { %v3530_v30 = vsel %vm3529_vm3, %v3528_v27, %v3523_v55 }
 0x563   :  { %v3188_v26 = vpop.permute.xlu1 %3187  ;;  %v3193_v14 = vpop.permute.xlu0 %3192 }
 0x564   :  { %v3534_v45 = vrot.slane %v3188_v26, %v7857_v36  ;;  %v3538_v3 = vrot.slane %v3193_v14, %v7860_v9 }
 0x566   :  { %v3539_v12 = vsel %vm3529_vm3, %v3538_v3, %v3534_v45 }
 0x567   :  { %v2545_v7 = vpop.permute.xlu1 %2544  ;;  %v2550_v28 = vpop.permute.xlu0 %2549  ;;  %v3594_v13 = vsel %vm2209_vm9, %v3539_v12, %v3530_v30  ;;  %v8438_v12 = vld [vmem:[#allocation6_spill] sm:$0xff] }
 0x568   :  { %v3460_v2 = vrot.slane %v2545_v7, %v7365_v54  ;;  %v3464_v52 = vrot.slane %v2550_v28, %v7368_v29 }
 0x56a   :  { %v3465_v23 = vsel %vm2144_vm8, %v3464_v52, %v3460_v2 }
 0x56b   :  { %v3198_v62 = vpop.permute.xlu1 %3197  ;;  %v3203_v11 = vpop.permute.xlu0 %3202  ;;  %v3512_v16 = vsel %vm2211_vm10, %v3465_v23, %v3511_v63  ;;  %v8439_v23 = vld [vmem:[#allocation5_spill] sm:$0xff] }
 0x56c   :  { %v3543_v39 = vrot.slane %v3198_v62, %v7857_v36  ;;  %v3547_v42 = vrot.slane %v3203_v11, %v7860_v9 }
 0x56e   :  { %v3548_v22 = vsel %vm3529_vm3, %v3547_v42, %v3543_v39  ;;  %v2604_v39 = vmul.f32 %v2535_v10, %v8439_v23  ;;  %v3255_v42 = vmul.f32 %v3178_v21, %v8438_v12 }
 0x56f   :  { %v2555_v46 = vpop.permute.xlu1 %2554  ;;  %v2560_v18 = vpop.permute.xlu0 %2559  ;;  %v3595_v60 = vsel %vm2211_vm10, %v3548_v22, %v3594_v13  ;;  %v3257_v13 = vmul.f32 %v3188_v26, %v8438_v12  ;;  %v3258_v22 = vmul.f32 %v3193_v14, %v8438_v12  ;;  %v2603_v14 = vmul.f32 %v7844_v6, %v8439_v23 }
 0x570   :  { %v3469_v1 = vrot.slane %v2555_v46, %v7365_v54  ;;  %v3473_v15 = vrot.slane %v2560_v18, %v7368_v29  ;;  %v2606_v6 = vmul.f32 %v2545_v7, %v8439_v23 }
 0x572   :  { %v3474_v56 = vsel %vm2144_vm8, %v3473_v15, %v3469_v1 }
 0x573   :  { %v3208_v19 = vpop.permute.xlu1 %3207  ;;  %v3213_v43 = vpop.permute.xlu0 %3212  ;;  %v3513_v63 = vsel %vm2213_vm11, %v3474_v56, %v3512_v16  ;;  %v2602_v56 = vmul.f32 %v2525_v57, %v8439_v23  ;;  %v3259_v57 = vmul.f32 %v3198_v62, %v8438_v12 }
 0x574   :  { %v3552_v55 = vrot.slane %v3208_v19, %v7857_v36  ;;  %v3556_v27 = vrot.slane %v3213_v43, %v7860_v9  ;;  %v3262_v62 = vmul.f32 %v3213_v43, %v8438_v12 }
 0x575   :  { %v3271_v44 = vadd.f32 %v3255_v42, %v2602_v56  ;;  %v2607_v42 = vmul.f32 %v2550_v28, %v8439_v23  ;;  %v2609_v28 = vmul.f32 %v2560_v18, %v8439_v23 }
 0x576   :  { %v3557_v30 = vsel %vm3529_vm3, %v3556_v27, %v3552_v55  ;;  %v3256_v55 = vmul.f32 %v3183_v47, %v8438_v12  ;;  %v3273_v27 = vadd.f32 %v3257_v13, %v2604_v39  ;;  %v3260_v47 = vmul.f32 %v3203_v11, %v8438_v12 }
 0x577   :  { %v2565_v45 = vpop.permute.xlu1 %2564  ;;  %v2570_v3 = vpop.permute.xlu0 %2569  ;;  %v3596_v2 = vsel %vm2213_vm11, %v3557_v30, %v3595_v60  ;;  %v2605_v60 = vmul.f32 %v2540_v37, %v8439_v23  ;;  %v3351_v18 = vmul.f32 %v7698_v50, %v3271_v44 }
 0x578   :  { %v3478_v52 = vrot.slane %v2565_v45, %v7365_v54  ;;  %v3482_v16 = vrot.slane %v2570_v3, %v7368_v29  ;;  %v3353_v39 = vmul.f32 %v7702_v53, %v3273_v27  ;;  %v3276_v7 = vadd.f32 %v3260_v47, %v2607_v42 }
 0x579   :  { %v3274_v33 = vadd.f32 %v3258_v22, %v2605_v60  ;;  %v2608_v22 = vmul.f32 %v2555_v46, %v8439_v23  ;;  %v2611_v46 = vmul.f32 %v2570_v3, %v8439_v23 }
 0x57a   :  { %v3483_v26 = vsel %vm2144_vm8, %v3482_v16, %v3478_v52  ;;  %v3261_v16 = vmul.f32 %v3208_v19, %v8438_v12  ;;  %v3356_v42 = vmul.f32 %v7708_v8, %v3276_v7 }
 0x57b   :  { %v3218_v1 = vpop.permute.xlu1 %3217  ;;  %v3223_v15 = vpop.permute.xlu0 %3222  ;;  %v3514_v30 = vsel %vm2215_vm12, %v3483_v26, %v3513_v63  ;;  %v3272_v63 = vadd.f32 %v3256_v55, %v2603_v14  ;;  %v3354_v19 = vmul.f32 %v7704_v32, %v3274_v33 }
 0x57c   :  { %v3561_v10 = vrot.slane %v3218_v1, %v7857_v36  ;;  %v3565_v21 = vrot.slane %v3223_v15, %v7860_v9  ;;  %v3263_v56 = vmul.f32 %v3218_v1, %v8438_v12  ;;  %v3264_v55 = vmul.f32 %v3223_v15, %v8438_v12 }
 0x57d   :  { %v3277_v60 = vadd.f32 %v3261_v16, %v2608_v22  ;;  %v3352_v47 = vmul.f32 %v7700_v48, %v3272_v63  ;;  %v3367_v22 = vsel %vm55_vm2, %v3351_v18, 0.0 }
 0x57e   :  { %v3566_v13 = vsel %vm3529_vm3, %v3565_v21, %v3561_v10  ;;  %v2610_v10 = vmul.f32 %v2565_v45, %v8439_v23  ;;  %v3278_v21 = vadd.f32 %v3262_v62, %v2609_v28 }
 0x57f   :  { %v7905_v52 = vpop.permute.xlu1 %2574  ;;  %v7907_v37 = vpop.permute.xlu0 %2579  ;;  %v3597_v26 = vsel %vm2215_vm12, %v3566_v13, %v3596_v2  ;;  %v3275_v2 = vadd.f32 %v3259_v57, %v2606_v6  ;;  %v3280_v57 = vadd.f32 %v3264_v55, %v2611_v46  ;;  %v3376_v13 = vsel %vm55_vm2, %v3353_v39, 0.0 }
 0x580   :  { %v3487_v11 = vrot.slane %v7905_v52, %v7365_v54  ;;  %v3491_v53 = vrot.slane %v7907_v37, %v7368_v29  ;;  %v3279_v33 = vadd.f32 %v3263_v56, %v2610_v10  ;;  %v3377_v6 = vsel %vm55_vm2, %v3354_v19, 0.0 }
 0x581   :  { %v3358_v50 = vmul.f32 %v7712_v4, %v3278_v21  ;;  %v3360_v39 = vmul.f32 %v7716_v51, %v3280_v57  ;;  %v3378_v56 = vadd.f32 %v3377_v6, %v3376_v13  ;;  %v3386_v4 = vsel %vm55_vm2, %v3356_v42, 0.0 }
 0x582   :  { %v3492_v1 = vsel %vm2144_vm8, %v3491_v53, %v3487_v11  ;;  %v3357_v11 = vmul.f32 %v7710_v0, %v3277_v60  ;;  %v3359_v63 = vmul.f32 %v7714_v35, %v3279_v33 }
 0x583   :  { %v3228_v27 = vpop.permute.xlu1 %3227  ;;  %v3233_v43 = vpop.permute.xlu0 %3232  ;;  %v3515_v15 = vsel %vm2217_vm13, %v3492_v1, %v3514_v30  ;;  %v3355_v30 = vmul.f32 %v7706_v41, %v3275_v2  ;;  %v3368_v41 = vsel %vm55_vm2, %v3352_v47, 0.0  ;;  %v3395_v51 = vsel %vm55_vm2, %v3358_v50, 0.0 }
 0x584   :  { %v3570_v14 = vrot.slane %v3228_v27, %v7857_v36  ;;  %v3574_v32 = vrot.slane %v3233_v43, %v7860_v9  ;;  %v3394_v35 = vsel %vm55_vm2, %v3357_v11, 0.0  ;;  %v3369_v7 = vadd.f32 %v3368_v41, %v3367_v22 }
 0x585   :  { %v3385_v0 = vsel %vm55_vm2, %v3355_v30, 0.0  ;;  %v3403_v28 = vsel %vm55_vm2, %v3359_v63, 0.0  ;;  %v3404_v60 = vsel %vm55_vm2, %v3360_v39, 0.0  ;;  %v3379_v10 = vrot.slane %v3378_v56, 4 }
 0x586   :  { %v3575_v45 = vsel %vm3529_vm3, %v3574_v32, %v3570_v14  ;;  %v3387_v46 = vadd.f32 %v3386_v4, %v3385_v0  ;;  %v3266_v32 = vmul.f32 %v3233_v43, %v8438_v12  ;;  %v3405_v18 = vadd.f32 %v3404_v60, %v3403_v28 }
 0x587   :  { %v2585_v3 = vpop.permute.xlu1 %2584  ;;  %v2590_v16 = vpop.permute.xlu0 %2589  ;;  %v3598_v62 = vsel %vm2217_vm13, %v3575_v45, %v3597_v26  ;;  %v3370_v13 = vrot.slane %v3369_v7, 4  ;;  %v2613_v45 = vmul.f32 %v7907_v37, %v8439_v23  ;;  %v3265_v6 = vmul.f32 %v3228_v27, %v8438_v12 }
 0x588   :  { %v3496_v48 = vrot.slane %v2585_v3, %v7365_v54  ;;  %v3500_v44 = vrot.slane %v2590_v16, %v7368_v29  ;;  %v3380_v30 = vadd.f32 %v3379_v10, %v3378_v56  ;;  %v3388_v42 = vrot.slane %v3387_v46, 4 }
 0x589   :  { %v3371_v39 = vadd.f32 %v3370_v13, %v3369_v7  ;;  %v2615_v0 = vmul.f32 %v2590_v16, %v8439_v23 }
 0x58a   :  { %v3501_v8 = vsel %vm2144_vm8, %v3500_v44, %v3496_v48  ;;  %v3282_v44 = vadd.f32 %v3266_v32, %v2613_v45  ;;  %v3381_v41 = vrot.slane %v3380_v30, 2  ;;  %v3389_v56 = vadd.f32 %v3388_v42, %v3387_v46 }
 0x58b   :  { %v3238_v26 = vpop.permute.xlu1 %3237  ;;  %v3243_v55 = vpop.permute.xlu0 %3242  ;;  %v3516_v53 = vsel %vm2219_vm14, %v3501_v8, %v3515_v15  ;;  %v3396_v15 = vadd.f32 %v3395_v51, %v3394_v35  ;;  %v2614_v8 = vmul.f32 %v2585_v3, %v8439_v23  ;;  %v3372_v13 = vrot.slane %v3371_v39, 2 }
 0x58c   :  { %v3579_v19 = vrot.slane %v3238_v26, %v7857_v36  ;;  %v3583_v2 = vrot.slane %v3243_v55, %v7860_v9  ;;  %v3267_v63 = vmul.f32 %v3238_v26, %v8438_v12  ;;  %v3268_v37 = vmul.f32 %v3243_v55, %v8438_v12 }
 0x58d   :  { %v3397_v43 = vrot.slane %v3396_v15, 4  ;;  %v3390_v10 = vrot.slane %v3389_v56, 2 }
 0x58e   :  { %v3584_v1 = vsel %vm3529_vm3, %v3583_v2, %v3579_v19  ;;  %v3283_v2 = vadd.f32 %v3267_v63, %v2614_v8  ;;  %v3284_v7 = vadd.f32 %v3268_v37, %v2615_v0 }
 0x58f   :  { %v2595_v21 = vpop.permute.xlu1 %2594  ;;  %v2600_v14 = vpop.permute.xlu0 %2599  ;;  %v3599_v33 = vsel %vm2219_vm14, %v3584_v1, %v3598_v62  ;;  %v2612_v62 = vmul.f32 %v7905_v52, %v8439_v23  ;;  %v3398_v52 = vadd.f32 %v3397_v43, %v3396_v15 }
 0x590   :  { %v3505_v57 = vrot.slane %v2595_v21, %v7365_v54  ;;  %v3509_v47 = vrot.slane %v2600_v14, %v7368_v29  ;;  %v3406_v29 = vrot.slane %v3405_v18, 4  ;;  %v2616_v46 = vmul.f32 %v2595_v21, %v8439_v23 }
 0x591   :  { %v3281_v22 = vadd.f32 %v3265_v6, %v2612_v62  ;;  %v2617_v32 = vmul.f32 %v2600_v14, %v8439_v23  ;;  %v3399_v45 = vrot.slane %v3398_v52, 2  ;;  %v3391_v14 = vadd.f32 %v3390_v10, %v3389_v56 }
 0x592   :  { %v3510_v11 = vsel %vm2144_vm8, %v3509_v47, %v3505_v57  ;;  %v3407_v26 = vadd.f32 %v3406_v29, %v3405_v18  ;;  %v3373_v29 = vadd.f32 %v3372_v13, %v3371_v39 }
 0x593   :  { %v3248_v50 = vpop.permute.xlu1 %3247  ;;  %v3326_v48 = vpop.permute.xlu0 %3325  ;;  %v3517_v54 = vsel %vm2221_vm15, %v3510_v11, %v3516_v53  ;;  %v3400_v63 = vadd.f32 %v3399_v45, %v3398_v52 }
 0x594   :  { %v3362_v27 = vmul.f32 %v3326_v48, %v3282_v44  ;;  %v3588_v53 = vrot.slane %v3248_v50, %v7857_v36  ;;  %v3269_v55 = vmul.f32 %v3248_v50, %v8438_v12 }
 0x596   :  { %v3413_v28 = vsel %vm55_vm2, %v3362_v27, 0.0  ;;  %v3285_v11 = vadd.f32 %v3269_v55, %v2616_v46 }
 0x597   :  { %v3324_v4 = vpop.permute.xlu1 %3323  ;;  %v3253_v19 = vpop.permute.xlu0 %3252 }
 0x598   :  { %v3361_v35 = vmul.f32 %v3324_v4, %v3281_v22  ;;  %v3592_v51 = vrot.slane %v3253_v19, %v7860_v9  ;;  %v3270_v3 = vmul.f32 %v3253_v19, %v8438_v12  ;;  %v3408_v12 = vrot.slane %v3407_v26, 2 }
 0x59a   :  { %v3412_v60 = vsel %vm55_vm2, %v3361_v35, 0.0  ;;  %v3593_v16 = vsel %vm3529_vm3, %v3592_v51, %v3588_v53  ;;  %v3286_v50 = vadd.f32 %v3270_v3, %v2617_v32  ;;  %v3409_v22 = vadd.f32 %v3408_v12, %v3407_v26 }
 0x59b   :  { %v3414_v36 = vadd.f32 %v3413_v28, %v3412_v60  ;;  %v3600_v1 = vsel %vm2221_vm15, %v3593_v16, %v3599_v33  ;;  %v3328_v9 = vpop.permute.xlu1 %3327  ;;  %v3330_v15 = vpop.permute.xlu0 %3329  ;;  %v3382_v33 = vadd.f32 %v3381_v41, %v3380_v30  ;;  %v3392_v41 = vrot.slane %v3391_v14, 1 }
 0x59c   :  { %v7983_v57 = vsel %vm2224_vm0, %v3517_v54, %v3600_v1  ;;  %v3363_v18 = vmul.f32 %v3328_v9, %v3283_v2  ;;  %v3364_v47 = vmul.f32 %v3330_v15, %v3284_v7  ;;  %v3374_v35 = vrot.slane %v3373_v29, 1 }
 0x59d   :  { %v3415_v6 = vrot.slane %v3414_v36, 4  ;;  %v3383_v4 = vrot.slane %v3382_v33, 1  ;;  %v3401_v51 = vrot.slane %v3400_v63, 1  ;;  %v3410_v2 = vrot.slane %v3409_v22, 1 }
 0x59e   :  { %v3421_v42 = vsel %vm55_vm2, %v3363_v18, 0.0  ;;  %v3422_v21 = vsel %vm55_vm2, %v3364_v47, 0.0  ;;  %v3393_v60 = vadd.f32 %v3392_v41, %v3391_v14  ;;  %v3375_v26 = vadd.f32 %v3374_v35, %v3373_v29 }
 0x59f   :  { %v3416_v48 = vadd.f32 %v3415_v6, %v3414_v36  ;;  %v3423_v43 = vadd.f32 %v3422_v21, %v3421_v42  ;;  %v3332_v62 = vpop.permute.xlu1 %3331  ;;  %v3334_v23 = vpop.permute.xlu0 %3333  ;;  %v3384_v7 = vadd.f32 %v3383_v4, %v3382_v33  ;;  %v3402_v3 = vadd.f32 %v3401_v51, %v3400_v63 }
 0x5a0   :  { %v3365_v54 = vmul.f32 %v3332_v62, %v3285_v11  ;;  %v3366_v44 = vmul.f32 %v3334_v23, %v3286_v50  ;;  %v3411_v46 = vadd.f32 %v3410_v2, %v3409_v22  ;;  %v8440_v62 = vmov 0.0  }
 0x5a1   :  { %v3417_v37 = vrot.slane %v3416_v48, 2  ;;  %v3424_v27 = vrot.slane %v3423_v43, 4  ;;  %v3622_v36 = vsel %vm2209_vm9, %v3384_v7, %v3375_v26  ;;  %v8441_v23 = vpack.c.bf16 %v7814_v20, %v7812_v49 }
 0x5a2   :  { %v3430_v8 = vsel %vm55_vm2, %v3365_v54, 0.0  ;;  %v3431_v0 = vsel %vm55_vm2, %v3366_v44, 0.0  ;;  %v3623_v15 = vsel %vm2211_vm10, %v3393_v60, %v3622_v36  ;;  %v4149_v60 = vadd.s32 8, %v8437_v5 }
 0x5a3   :  { %v3418_v19 = vadd.f32 %v3417_v37, %v3416_v48  ;;  %v3425_v53 = vadd.f32 %v3424_v27, %v3423_v43  ;;  %v3432_v30 = vadd.f32 %v3431_v0, %v3430_v8  ;;  %v3624_v18 = vsel %vm2213_vm11, %v3402_v3, %v3623_v15  ;;  %v6420_v0 = vld [vmem:[%s8206_s0] sm:$0xff] }
 0x5a4   :  { %v3625_v13 = vsel %vm2215_vm12, %v3411_v46, %v3624_v18  ;;  %v4150_v3 = vadd.s32 16, %v8437_v5  ;;  %vm4153_vm4 = vcmp.eq.s32.totalorder %v4149_v60, %v8436_v31 }
 0x5a5   :  { %v3426_v55 = vrot.slane %v3425_v53, 2  ;;  %v3433_v56 = vrot.slane %v3432_v30, 4  ;;  %v3419_v39 = vrot.slane %v3418_v19, 1  ;;  %v8061_v46 = vsel %vm4153_vm4, 1.0, %v8440_v62 }
 0x5a6   :  { %vm4154_vm5 = vcmp.eq.s32.totalorder %v4150_v3, %v8436_v31 }
 0x5a7   :  { %v3427_v52 = vadd.f32 %v3426_v55, %v3425_v53  ;;  %v3434_v28 = vadd.f32 %v3433_v56, %v3432_v30  ;;  %v3420_v1 = vadd.f32 %v3419_v39, %v3418_v19  ;;  %v8064_v36 = vsel %vm4154_vm5, 1.0, %v8440_v62 }
 0x5a9   :  { %v3428_v16 = vrot.slane %v3427_v52, 1  ;;  %v3435_v10 = vrot.slane %v3434_v28, 2  ;;  %v3626_v45 = vsel %vm2217_vm13, %v3420_v1, %v3625_v13  ;;  %v4164_v1 = vsel %vm55_vm2, %v8061_v46, 0 }
 0x5ab   :  { %v3436_v9 = vadd.f32 %v3435_v10, %v3434_v28  ;;  %v3429_v32 = vadd.f32 %v3428_v16, %v3427_v52  ;;  %v4151_v10 = vadd.s32 24, %v8437_v5 }
 0x5ad   :  { %v3437_v47 = vrot.slane %v3436_v9, 1  ;;  %v3627_v6 = vsel %vm2219_vm14, %v3429_v32, %v3626_v45  ;;  %vm4155_vm6 = vcmp.eq.s32.totalorder %v4151_v10, %v8436_v31  ;;  %v5347_v45 = vld [vmem:[%s8211_s8] ss:$0 sm:$0xff] }
 0x5ae   :  { %v8072_v15 = vsel %vm4155_vm6, 1.0, %v8440_v62 }
 0x5af   :  { %v3438_v12 = vadd.f32 %v3437_v47, %v3436_v9  ;;  %v4167_v9 = vsel %vm55_vm2, %v8064_v36, 0  ;;  %v4170_v18 = vsel %vm55_vm2, %v8072_v15, 0 }
 0x5b0   :  { %v8076_v32 = vsub.f32 %v4167_v9, %v4167_v9 }
 0x5b1   :  { %v3628_v42 = vsel %vm2221_vm15, %v3438_v12, %v3627_v6  ;;  %v8089_v6 = vsub.f32 %v4170_v18, %v4170_v18 }
 0x5b2   :  { %v3629_v21 = vsel %vm55_vm2, %v3628_v42, 0 }
 0x5b3   :  { %v3700_v11 = vand.u32 4294901760, %v3629_v21 }
 0x5b5   :  { %v3701_v50 = vsub.f32 %v3629_v21, %v3700_v11  ;;  %v8092_v21 = vand.u32 4294901760, %v8076_v32 }
 0x5b7   :  { %v3702_v33 = vand.u32 4294901760, %v3701_v50 }
 0x5b9   :  { %v3703_v48 = vsub.f32 %v3701_v50, %v3702_v33 }
 0x5bb   :  { %v3704_v43 = vand.u32 4294901760, %v3703_v48 }
 0x5bd   :  { %5915 = vmatmul.mubr.f32.vlgmr.msra.gmra.mrb[2].mxu0 %v3704_v43  ;;  %v4264_v43 = vsub.f32 %v8076_v32, %v8092_v21 }
 0x5be   :  { %6184 = vmatpush3.bf16.msra.mxu0 %v7834_v59  ;;  %5925 = vmatprep.mubr.msk.f32.mxu0 %vm6422_vm1, %v8440_v62  ;;  %v8442_v59 = vpack.c.bf16 %v7818_v17, %v7816_v24  ;;  %v5345_v24 = vld [vmem:[%s8209_s6] ss:$0 sm:$0xff] }
 0x5bf   :  { %6185 = vmatprep.subr.bf16.mxu0 %v8435_v40 }
 0x5c2   :  { %6187 = vmatpush3.bf16.msra.mxu0 %v7836_v61 }
 0x5c3   :  { %6188 = vmatprep.subr.bf16.mxu0 %v8435_v40 }
 0x5c5   :  { %5926 = vmatmul.mubr.f32.vlgmr.msra.gmra.mrb[4].mxu0 %v3700_v11 }
 0x5c6   :  { %6190 = vmatpush3.bf16.msra.mxu0 %v8441_v23  ;;  %5936 = vmatprep.mubr.msk.f32.mxu0 %vm6422_vm1, %v8440_v62 }
 0x5c7   :  { %6191 = vmatprep.subr.bf16.mxu0 %v8435_v40 }
 0x5ca   :  { %6193 = vmatpush3.bf16.msra.mxu0 %v8442_v59 }
 0x5cb   :  { %6194 = vmatprep.subr.bf16.mxu0 %v8435_v40 }
 0x5cd   :  { %5937 = vmatmul.mubr.f32.vlgmr.msra.gmra.mrb[6].mxu0 %v3701_v50 }
 0x5ce   :  { %6196 = vmatpush3.bf16.msra.mxu0 %v7810_v34  ;;  %5947 = vmatprep.mubr.msk.f32.mxu0 %vm6422_vm1, %v8440_v62 }
 0x5cf   :  { %6197 = vmatprep.subr.bf16.mxu0 %v8435_v40 }
 0x5d2   :  { %6199 = vmatpush3.bf16.msra.mxu0 %v7821_v58 }
 0x5d3   :  { %6200 = vmatprep.subr.bf16.mxu0 %v8435_v40 }
 0x5d5   :  { %5948 = vmatmul.mubr.f32.vlgmr.msra.gmra.mrb[8].mxu0 %v3702_v33  ;;  %v8097_v33 = vand.u32 4294901760, %v8089_v6 }
 0x5d6   :  { %6202 = vmatpush3.bf16.msra.mxu0 %v7842_v25  ;;  %5958 = vmatprep.mubr.msk.f32.mxu0 %vm6422_vm1, %v8440_v62 }
 0x5d7   :  { %6203 = vmatprep.subr.bf16.mxu0 %v8435_v40  ;;  %v4274_v59 = vsub.f32 %v8089_v6, %v8097_v33 }
 0x5da   :  { %6205 = vmatpush3.bf16.msra.mxu0 %v7846_v38 }
 0x5db   :  { %6206 = vmatprep.subr.bf16.mxu0 %v8435_v40 }
 0x5dd   :  { %5959 = vmatmul.mubr.f32.vlgmr.msra.gmra.mrb[10].mxu0 %v3700_v11 }
 0x5de   :  { %6208 = vmatpush3.bf16.msra.mxu0 %v7810_v34  ;;  %5969 = vmatprep.mubr.msk.f32.mxu0 %vm6422_vm1, %v8440_v62  ;;  %vm4152_vm1 = vcmp.eq.s32.totalorder %v8437_v5, %v8436_v31  ;;  %v8074_v5 = vsub.f32 %v4164_v1, %v4164_v1  ;;  %v5346_v31 = vld [vmem:[%s8210_s7] ss:$0 sm:$0xff] }
 0x5df   :  { %6209 = vmatprep.subr.bf16.mxu0 %v8435_v40  ;;  %v8041_v55 = vsel %vm4152_vm1, 1.0, %v8440_v62 }
 0x5e0   :  { %v4161_v56 = vsel %vm55_vm2, %v8041_v55, 0  ;;  %v8087_v12 = vand.u32 4294901760, %v8074_v5 }
 0x5e1   :  { %v8045_v2 = vsub.f32 %v4161_v56, %v4161_v56 }
 0x5e2   :  { %6211 = vmatpush3.bf16.msra.mxu0 %v7821_v58  ;;  %v4254_v50 = vsub.f32 %v8074_v5, %v8087_v12 }
 0x5e3   :  { %v8048_v7 = vand.u32 4294901760, %v8045_v2 }
 0x5e4   :  { %v4255_v23 = vand.u32 4294901760, %v4254_v50 }
 0x5e5   :  { %5970 = vmatmul.mubr.f32.vlgmr.msra.gmra.mrb[12].mxu0 %v3700_v11  ;;  %v4244_v39 = vsub.f32 %v8045_v2, %v8048_v7 }
 0x5e7   :  { %v8052_v52 = vand.u32 4294901760, %v4244_v39 }
 0x5e9   :  { %5974 = vmatprep.mubr.f32.mxu0 %v8052_v52 }
 0x690   :  { %v3706_v49 = vpop.f32.mrb[2].mxu0 }
 0x691   :  { %v5916_v20 = vpop.f32.mrb[3].mxu0  ;;  %v3707_v17 = vadd.f32 %v5345_v24, %v3706_v49 }
 0x692   :  { %v4265_v20 = vand.u32 4294901760, %v4264_v43 }
 0x698   :  { %v3797_v61 = vpop.f32.mrb[4].mxu0 }
 0x699   :  { %v3798_v25 = vadd.f32 %v3797_v61, %v3707_v17  ;;  %v5927_v38 = vpop.f32.mrb[5].mxu0  ;;  %v4275_v17 = vand.u32 4294901760, %v4274_v59 }
 0x69a   :  { %v4756_v38 = vsel %vm55_vm2, %v7983_v57, 0 }
 0x6a0   :  { %v3877_v14 = vpop.f32.mrb[6].mxu0 }
 0x6a1   :  { %v3878_v34 = vadd.f32 %v3877_v14, %v3798_v25  ;;  %v5938_v54 = vpop.f32.mrb[7].mxu0  ;;  %v4759_v14 = vand.u32 4294901760, %v4756_v38 }
 0x6a8   :  { %v3954_v44 = vpop.f32.mrb[8].mxu0 }
 0x6a9   :  { %v3955_v29 = vadd.f32 %v3954_v44, %v3878_v34  ;;  %v5949_v63 = vpop.f32.mrb[9].mxu0  ;;  %v4866_v34 = vsub.f32 %v4756_v38, %v4759_v14 }
 0x6ab   :  { %v4867_v54 = vand.u32 4294901760, %v4866_v34 }
 0x6ad   :  { %v4868_v57 = vsub.f32 %v4866_v34, %v4867_v54 }
 0x6af   :  { %v4869_v44 = vand.u32 4294901760, %v4868_v57 }
 0x6b0   :  { %v4037_v40 = vpop.f32.mrb[10].mxu0 }
 0x6b1   :  { %v4038_v37 = vadd.f32 %v4037_v40, %v3955_v29  ;;  %v5960_v58 = vpop.f32.mrb[11].mxu0 }
 0x6b8   :  { %v4112_v27 = vpop.f32.mrb[12].mxu0 }
 0x6b9   :  { %v4113_v22 = vadd.f32 %v4112_v27, %v4038_v37  ;;  %v5971_v8 = vpop.f32.mrb[13].mxu0 }
 0x6bb   :  { %v4116_v4 = vadd.f32 %v6420_v0, %v4113_v22 }
 0x6bd   :  { %v4117_v19 = vsel %vm55_vm2, %v4116_v4, 0.0 }
 0x6be   :  { %4118 = vadd.xlane.f32.xlu1 %v4117_v19 }
 0x74b   :  { %v4119_v53 = vpop.xlane.xlu1 %4118 }
 0x74c   :  { %v4121_v30 = vmul.f32 0.03125, %v4119_v53 }
 0x74e   :  { %v4122_v41 = vsub.f32 %v4116_v4, %v4121_v30 }
 0x750   :  { %v4123_v35 = vmul.f32 %v4122_v41, %v4122_v41 }
 0x752   :  { %v4124_v51 = vsel %vm55_vm2, %v4123_v35, 0.0 }
 0x753   :  { %4125 = vadd.xlane.f32.xlu0 %v4124_v51 }
 0x7e0   :  { %v4126_v28 = vpop.xlane.xlu0 %4125 }
 0x7e1   :  { %v4127_v26 = vmul.f32 0.03125, %v4126_v28 }
 0x7e3   :  { %v4128_v16 = vadd.f32 1e-05, %v4127_v26 }
 0x7e5   :  { %6418 = vrsqrt.f32 %v4128_v16 }
 0x7ef   :  { %v6419_v47 = vpop.eup %6418 }
 0x7f0   :  { %v4130_v13 = vmul.f32 %v6419_v47, %v4122_v41 }
 0x7f2   :  { %v4138_v42 = vmul.f32 %v5346_v31, %v4130_v13 }
 0x7f4   :  { %v4146_v11 = vadd.f32 %v5347_v45, %v4138_v42 }
 0x7f6   :  { %v4173_v48 = vsel %vm55_vm2, %v4146_v11, 0 }
 0x7f7   :  { %v4176_v62 = vand.u32 4294901760, %v4173_v48 }
 0x7f9   :  { %5972 = vmatprep.subr.mxu0 %v4176_v62  ;;  %v4283_v49 = vsub.f32 %v4173_v48, %v4176_v62 }
 0x7fa   :  { %5973 = vmatpush3.xpose.msra.mxu0 %v4176_v62 }
 0x7fb   :  { %v4284_v24 = vand.u32 4294901760, %v4283_v49 }
 0x7fd   :  { %5975 = vmatmul.mubr.f32.vlgmr.msra.gmra.mrb[14].mxu0 %v4255_v23  ;;  %v4285_v61 = vsub.f32 %v4283_v49, %v4284_v24 }
 0x7fe   :  { %5977 = vmatprep.mubr.f32.mxu0 %v4265_v20 }
 0x7ff   :  { %v4286_v25 = vand.u32 4294901760, %v4285_v61 }
 0x801   :  { %5978 = vmatmul.mubr.f32.gmra.mrb[16].mxu0 %v4275_v17  ;;  %5980 = vmatprep.subr.mxu0 %v4286_v25 }
 0x802   :  { %5981 = vmatpush3.xpose.msra.mxu0 %v4286_v25  ;;  %5982 = vmatprep.mubr.msk.f32.mxu0 %vm55_vm2, %v8041_v55 }
 0x803   :  { %5988 = vmatprep.subr.mxu0 %v4283_v49 }
 0x805   :  { %5983 = vmatmul.mubr.msk.f32.vlgmr.msra.gmra.mrb[14].mxu0 %vm55_vm2, %v8061_v46 }
 0x806   :  { %5989 = vmatpush3.xpose.msra.mxu0 %v4283_v49  ;;  %5985 = vmatprep.mubr.msk.f32.mxu0 %vm55_vm2, %v8064_v36 }
 0x807   :  { %5996 = vmatprep.subr.mxu0 %v4176_v62 }
 0x809   :  { %5986 = vmatmul.mubr.msk.f32.gmra.mrb[16].mxu0 %vm55_vm2, %v8072_v15 }
 0x80a   :  { %5990 = vmatprep.mubr.f32.mxu0 %v8045_v2 }
 0x80d   :  { %5991 = vmatmul.mubr.f32.vlgmr.msra.gmra.mrb[14].mxu0 %v8074_v5 }
 0x80e   :  { %5997 = vmatpush3.xpose.msra.mxu0 %v4176_v62  ;;  %5993 = vmatprep.mubr.f32.mxu0 %v8076_v32 }
 0x80f   :  { %6004 = vmatprep.subr.mxu0 %v4284_v24 }
 0x811   :  { %5994 = vmatmul.mubr.f32.gmra.mrb[16].mxu0 %v8089_v6 }
 0x812   :  { %5998 = vmatprep.mubr.f32.mxu0 %v8048_v7 }
 0x815   :  { %5999 = vmatmul.mubr.f32.vlgmr.msra.gmra.mrb[14].mxu0 %v8087_v12 }
 0x816   :  { %6005 = vmatpush3.xpose.msra.mxu0 %v4284_v24  ;;  %6001 = vmatprep.mubr.f32.mxu0 %v8092_v21 }
 0x817   :  { %6012 = vmatprep.subr.mxu0 %v4176_v62 }
 0x819   :  { %6002 = vmatmul.mubr.f32.gmra.mrb[16].mxu0 %v8097_v33 }
 0x81a   :  { %6006 = vmatprep.mubr.msk.f32.mxu0 %vm55_vm2, %v8041_v55 }
 0x81d   :  { %6007 = vmatmul.mubr.msk.f32.vlgmr.msra.gmra.mrb[14].mxu0 %vm55_vm2, %v8061_v46 }
 0x81e   :  { %6013 = vmatpush3.xpose.msra.mxu0 %v4176_v62  ;;  %6009 = vmatprep.mubr.msk.f32.mxu0 %vm55_vm2, %v8064_v36 }
 0x81f   :  { %6020 = vmatprep.subr.mxu0 %v4759_v14 }
 0x821   :  { %6010 = vmatmul.mubr.msk.f32.gmra.mrb[16].mxu0 %vm55_vm2, %v8072_v15 }
 0x822   :  { %6014 = vmatprep.mubr.msk.f32.mxu0 %vm55_vm2, %v8041_v55 }
 0x825   :  { %6015 = vmatmul.mubr.msk.f32.vlgmr.msra.gmra.mrb[14].mxu0 %vm55_vm2, %v8061_v46 }
 0x826   :  { %6021 = vmatpush3.xpose.msra.mxu0 %v4759_v14  ;;  %6017 = vmatprep.mubr.msk.f32.mxu0 %vm55_vm2, %v8064_v36 }
 0x827   :  { %6028 = vmatprep.subr.mxu0 %v4869_v44 }
 0x829   :  { %6018 = vmatmul.mubr.msk.f32.gmra.mrb[16].mxu0 %vm55_vm2, %v8072_v15 }
 0x82a   :  { %6022 = vmatprep.mubr.f32.mxu0 %v8052_v52 }
 0x82d   :  { %6023 = vmatmul.mubr.f32.vlgmr.msra.gmra.mrb[18].mxu0 %v4255_v23 }
 0x82e   :  { %6029 = vmatpush3.xpose.msra.mxu0 %v4869_v44  ;;  %6025 = vmatprep.mubr.f32.mxu0 %v4265_v20 }
 0x82f   :  { %6036 = vmatprep.subr.mxu0 %v4866_v34 }
 0x831   :  { %6026 = vmatmul.mubr.f32.gmra.mrb[20].mxu0 %v4275_v17 }
 0x832   :  { %6030 = vmatprep.mubr.msk.f32.mxu0 %vm55_vm2, %v8041_v55 }
 0x835   :  { %6031 = vmatmul.mubr.msk.f32.vlgmr.msra.gmra.mrb[18].mxu0 %vm55_vm2, %v8061_v46 }
 0x836   :  { %6037 = vmatpush3.xpose.msra.mxu0 %v4866_v34  ;;  %6033 = vmatprep.mubr.msk.f32.mxu0 %vm55_vm2, %v8064_v36 }
 0x837   :  { %6044 = vmatprep.subr.mxu0 %v4759_v14 }
 0x839   :  { %6034 = vmatmul.mubr.msk.f32.gmra.mrb[20].mxu0 %vm55_vm2, %v8072_v15 }
 0x83a   :  { %6038 = vmatprep.mubr.f32.mxu0 %v8045_v2 }
 0x83d   :  { %6039 = vmatmul.mubr.f32.vlgmr.msra.gmra.mrb[18].mxu0 %v8074_v5 }
 0x83e   :  { %6045 = vmatpush3.xpose.msra.mxu0 %v4759_v14  ;;  %6041 = vmatprep.mubr.f32.mxu0 %v8076_v32 }
 0x83f   :  { %6052 = vmatprep.subr.mxu0 %v4867_v54 }
 0x841   :  { %6042 = vmatmul.mubr.f32.gmra.mrb[20].mxu0 %v8089_v6 }
 0x842   :  { %6046 = vmatprep.mubr.f32.mxu0 %v8048_v7 }
 0x845   :  { %6047 = vmatmul.mubr.f32.vlgmr.msra.gmra.mrb[18].mxu0 %v8087_v12 }
 0x846   :  { %6053 = vmatpush3.xpose.msra.mxu0 %v4867_v54  ;;  %6049 = vmatprep.mubr.f32.mxu0 %v8092_v21 }
 0x847   :  { %6060 = vmatprep.subr.mxu0 %v4759_v14 }
 0x849   :  { %6050 = vmatmul.mubr.f32.gmra.mrb[20].mxu0 %v8097_v33 }
 0x84a   :  { %6054 = vmatprep.mubr.msk.f32.mxu0 %vm55_vm2, %v8041_v55 }
 0x84d   :  { %6055 = vmatmul.mubr.msk.f32.vlgmr.msra.gmra.mrb[18].mxu0 %vm55_vm2, %v8061_v46 }
 0x84e   :  { %6061 = vmatpush3.xpose.msra.mxu0 %v4759_v14  ;;  %6057 = vmatprep.mubr.msk.f32.mxu0 %vm55_vm2, %v8064_v36 }
 0x851   :  { %6058 = vmatmul.mubr.msk.f32.gmra.mrb[20].mxu0 %vm55_vm2, %v8072_v15 }
 0x852   :  { %6062 = vmatprep.mubr.msk.f32.mxu0 %vm55_vm2, %v8041_v55 }
 0x855   :  { %6063 = vmatmul.mubr.msk.f32.vlgmr.msra.gmra.mrb[18].mxu0 %vm55_vm2, %v8061_v46 }
 0x856   :  { %6065 = vmatprep.mubr.msk.f32.mxu0 %vm55_vm2, %v8064_v36 }
 0x859   :  { %6066 = vmatmul.mubr.msk.f32.gmra.mrb[20].mxu0 %vm55_vm2, %v8072_v15 }
 0x8f8   :  { %v6016_v29 = vpop.f32.mrb[14].mxu0 }
 0x8f9   :  { %4752 = vst.msk [vmem:[%s8212_s9 + $0x8] sm:$0xff] %vm4750_vm7, %v6016_v29  ;;  %v4728_v63 = vpop.f32.mrb[15].mxu0 }
 0x8fa   :  { %4751 = vst.msk [vmem:[%s8212_s9] sm:$0xff] %vm4750_vm7, %v4728_v63 }
 0x8fc   :  { %v6019_v40 = vpop.f32.mrb[16].mxu0 }
 0x8fd   :  { %4754 = vst.msk [vmem:[%s8212_s9 + $0x18] sm:$0xff] %vm4750_vm7, %v6019_v40  ;;  %v4740_v37 = vpop.f32.mrb[17].mxu0 }
 0x8fe   :  { %4753 = vst.msk [vmem:[%s8212_s9 + $0x10] sm:$0xff] %vm4750_vm7, %v4740_v37 }
 0x928   :  { %v6064_v58 = vpop.f32.mrb[18].mxu0 }
 0x929   :  { %5334 = vst.msk [vmem:[%s8213_s10 + $0x8] sm:$0xff] %vm4750_vm7, %v6064_v58  ;;  %v5311_v27 = vpop.f32.mrb[19].mxu0 }
 0x92a   :  { %5333 = vst.msk [vmem:[%s8213_s10] sm:$0xff] %vm4750_vm7, %v5311_v27 }
 0x92c   :  { %v6067_v22 = vpop.f32.mrb[20].mxu0 }
 0x92d   :  { %5336 = vst.msk [vmem:[%s8213_s10 + $0x18] sm:$0xff] %vm4750_vm7, %v6067_v22  ;;  %v5323_v8 = vpop.f32.mrb[21].mxu0 }
 0x92e   :  { %5335 = vst.msk [vmem:[%s8213_s10 + $0x10] sm:$0xff] %vm4750_vm7, %v5323_v8 }

</bundles_post_ra>
